<compile_context>
chip_gen: v6e
topology: v6e:2x2x1
jax: 0.10.0
libtpu: 0.0.40
codegen_flags: <defaults>
</compile_context>

<pallas_src>
import math

import jax
import jax.numpy as jnp
from jax import lax
from jax.experimental import pallas as pl
from jax.experimental.pallas import tpu as pltpu

# -------------------- config (synthetic, small) --------------------
B = 2            # batch
L = 16           # sequence length
D_MODEL = 64     # config.d_model
D_INNER = 128    # config.d_inner (expand=2)
D_CONV = 4       # config.d_conv
D_STATE = 16     # config.d_state
DT_RANK = 4      # ceil(d_model / 16)
DT_MIN, DT_MAX, DT_INIT_FLOOR, DT_SCALE = 1e-3, 1e-1, 1e-4, 1.0
N_DBC = DT_RANK + 2 * D_STATE  # x_proj output width


# -------------------- Pallas kernel --------------------
def mamba_block_kernel(x_ref, w_in_ref, rows_ref, w_delta_ref, w_xbc_ref,
                       a_logT_ref, w_out_ref,
                       o_ref,
                       da_scr, bx_scr):
    f32 = jnp.float32
    x = x_ref[...]                                              # (B*L, d_model)

    # ---- in_proj + split (split point = D_INNER = 128 -> lane-aligned) ----
    xz = jnp.dot(x, w_in_ref[...], preferred_element_type=f32)  # (B*L, 2*d_inner)
    x_in = xz[:, :D_INNER]
    z = xz[:, D_INNER:]

    # ---- causal depthwise conv1d + SiLU, per batch (no cross-batch leakage) ----
    # rows_ref layout: rows 0..D_CONV-1 = conv taps, D_CONV = conv bias,
    #                  D_CONV+1 = dt_proj bias, D_CONV+2 = D.
    conv_b = rows_ref[D_CONV:D_CONV + 1, :]                     # (1, d_inner)
    zpad = jnp.zeros((D_CONV - 1, D_INNER), f32)
    xc_parts = []
    for b in range(B):                                          # static trip count
        xb = x_in[b * L:(b + 1) * L]                            # (L, d_inner)
        xb_pad = jnp.concatenate([zpad, xb], axis=0)            # (L+d_conv-1, d_inner)
        acc = conv_b + xb * rows_ref[D_CONV - 1:D_CONV, :]      # tap k = d_conv-1
        for k in range(D_CONV - 1):                             # shifted taps
            acc = acc + xb_pad[k:k + L, :] * rows_ref[k:k + 1, :]
        xc_parts.append(acc * jax.nn.sigmoid(acc))              # SiLU
    x_c = jnp.concatenate(xc_parts, axis=0)                     # (B*L, d_inner)

    # ---- fused delta path: softplus(x_c @ (W_x_delta @ W_dt) + b_dt) ----
    b_dt = rows_ref[D_CONV + 1:D_CONV + 2, :]
    delta = jax.nn.softplus(
        jnp.dot(x_c, w_delta_ref[...], preferred_element_type=f32) + b_dt)

    # ---- merged B|C projection (one matmul; 16-lane slices in one vreg) ----
    bc = jnp.dot(x_c, w_xbc_ref[...], preferred_element_type=f32)  # (B*L, 2*d_state)
    Bm = bc[:, :D_STATE]
    Cm = bc[:, D_STATE:]

    # ---- discretize into lane-dense (L, d_state, d_inner) slabs, per batch ----
    A_T = -jnp.exp(a_logT_ref[...])                             # (d_state, d_inner)
    u = delta * x_c                                             # (B*L, d_inner)
    for b in range(B):
        d_b = delta[b * L:(b + 1) * L]                          # (L, d_inner)
        da_scr[b * L:(b + 1) * L] = jnp.exp(d_b[:, None, :] * A_T[None, :, :])
        bx_scr[b * L:(b + 1) * L] = (u[b * L:(b + 1) * L][:, None, :]
                                     * Bm[b * L:(b + 1) * L][:, :, None])

    # ---- selective scan: both batch chains interleaved, fully unrolled ----
    # Only the h recurrence sits on the serial chain; h_t is stored back over the
    # already-consumed deltaA entry (aligned 2-vreg store) for the post-loop readout.
    h = [jnp.zeros((D_STATE, D_INNER), f32) for _ in range(B)]
    for t in range(L):                                          # static trip count
        for b in range(B):
            r = b * L + t
            h[b] = da_scr[r] * h[b] + bx_scr[r]
            da_scr[r] = h[b]                                    # reuse slab as hs

    # ---- vectorized C-readout (off the chain), D skip, gate, out_proj ----
    ys = []
    for b in range(B):
        hs_b = da_scr[b * L:(b + 1) * L]                        # (L, d_state, d_inner)
        ys.append(jnp.sum(hs_b * Cm[b * L:(b + 1) * L][:, :, None], axis=1))
    y = jnp.concatenate(ys, axis=0)                             # (B*L, d_inner)
    y = y + rows_ref[D_CONV + 2:D_CONV + 3, :] * x_c            # D skip
    gated = y * (z * jax.nn.sigmoid(z))                         # SiLU(z) gate
    out = jnp.dot(gated, w_out_ref[...], preferred_element_type=f32)  # (B*L, d_model)
    # lane-dense writeback: (L, B*d_model) = (16, 128) -> unmasked stores
    o_ref[...] = jnp.concatenate(
        [out[b * L:(b + 1) * L] for b in range(B)], axis=1).astype(o_ref.dtype)


def mamba_block_pallas(x, params):
    (w_in, conv_w, conv_b, w_x, w_dt, b_dt, a_log, d_par, w_out) = params
    # One-time parameter preprocessing (would be cached in a real model):
    w_delta = w_x[:, :DT_RANK] @ w_dt                 # fused x_proj(delta) @ dt_proj
    w_xbc = w_x[:, DT_RANK:]                          # merged B|C projection weight
    a_log_t = a_log.T                                 # (d_state, d_inner)
    rows = jnp.concatenate([conv_w, conv_b, b_dt, d_par], axis=0)  # (d_conv+3, d_inner)
    x2d = x.reshape(B * L, D_MODEL)                   # fold batch into rows (free)

    grid_spec = pltpu.PrefetchScalarGridSpec(
        num_scalar_prefetch=0,
        grid=(1,),                                    # single step: B folded
        in_specs=[
            pl.BlockSpec((B * L, D_MODEL), lambda i: (0, 0)),        # x (folded)
            pl.BlockSpec((D_MODEL, 2 * D_INNER), lambda i: (0, 0)),  # in_proj W
            pl.BlockSpec((D_CONV + 3, D_INNER), lambda i: (0, 0)),   # taps|conv_b|dt_b|D
            pl.BlockSpec((D_INNER, D_INNER), lambda i: (0, 0)),      # fused delta W
            pl.BlockSpec((D_INNER, 2 * D_STATE), lambda i: (0, 0)),  # x_proj W (B|C)
            pl.BlockSpec((D_STATE, D_INNER), lambda i: (0, 0)),      # A_log^T
            pl.BlockSpec((D_INNER, D_MODEL), lambda i: (0, 0)),      # out_proj W
        ],
        out_specs=pl.BlockSpec((L, B * D_MODEL), lambda i: (0, 0)),
        scratch_shapes=[
            pltpu.VMEM((B * L, D_STATE, D_INNER), jnp.float32),  # deltaA, then hs
            pltpu.VMEM((B * L, D_STATE, D_INNER), jnp.float32),  # deltaB * x
        ],
    )
    out_wide = pl.pallas_call(
        mamba_block_kernel,
        out_shape=jax.ShapeDtypeStruct((L, B * D_MODEL), jnp.float32),
        grid_spec=grid_spec,
        compiler_params=pltpu.CompilerParams(
            dimension_semantics=("arbitrary",)),      # latency-bound; 1 TC is fine
    )(x2d, w_in, rows, w_delta, w_xbc, a_log_t, w_out)
    # de-interleave the lane-dense (L, B*d_model) slab back to (B, L, d_model)
    return jnp.swapaxes(out_wide.reshape(L, B, D_MODEL), 0, 1)


# -------------------- pure-JAX reference (selective_scan_seq semantics) ----------
def mamba_block_ref(x, params):
    (w_in, conv_w, conv_b, w_x, w_dt, b_dt, a_log, d_par, w_out) = params
    xz = x @ w_in
    x_in, z = xz[..., :D_INNER], xz[..., D_INNER:]
    x_pad = jnp.pad(x_in, ((0, 0), (D_CONV - 1, 0), (0, 0)))
    conv = sum(x_pad[:, k:k + L, :] * conv_w[k][None, None, :]
               for k in range(D_CONV)) + conv_b[0][None, None, :]
    x_c = jax.nn.silu(conv)
    dbc = x_c @ w_x
    delta_r = dbc[..., :DT_RANK]
    Bm = dbc[..., DT_RANK:DT_RANK + D_STATE]
    Cm = dbc[..., DT_RANK + D_STATE:]
    delta = jax.nn.softplus(delta_r @ w_dt + b_dt[0])
    A = -jnp.exp(a_log)
    deltaA = jnp.exp(delta[..., None] * A[None, None])          # (B, L, ED, N)
    bx = delta[..., None] * Bm[:, :, None, :] * x_c[..., None]  # (B, L, ED, N)

    def step(h, inp):
        dA_t, bx_t = inp
        h = dA_t * h + bx_t
        return h, h

    h0 = jnp.zeros((B, D_INNER, D_STATE), jnp.float32)
    _, hs = lax.scan(step, h0,
                     (jnp.swapaxes(deltaA, 0, 1), jnp.swapaxes(bx, 0, 1)))
    hs = jnp.swapaxes(hs, 0, 1)                                 # (B, L, ED, N)
    y = jnp.sum(hs * Cm[:, :, None, :], axis=-1) + d_par[0] * x_c
    return (y * jax.nn.silu(z)) @ w_out


# -------------------- deterministic parameter init --------------------
def make_params(key):
    ks = jax.random.split(key, 8)
    w_in = jax.random.normal(ks[0], (D_MODEL, 2 * D_INNER), jnp.float32) * 0.02
    conv_w = jax.random.normal(ks[1], (D_CONV, D_INNER), jnp.float32) * 0.1
    conv_b = jax.random.normal(ks[2], (1, D_INNER), jnp.float32) * 0.01
    w_x = jax.random.normal(ks[3], (D_INNER, N_DBC), jnp.float32) * 0.02
    dt_init_std = DT_RANK ** -0.5 * DT_SCALE
    w_dt = jax.random.uniform(ks[4], (DT_RANK, D_INNER), jnp.float32,
                              minval=-dt_init_std, maxval=dt_init_std)
    dt = jnp.maximum(
        jnp.exp(jax.random.uniform(ks[5], (D_INNER,), jnp.float32)
                * (math.log(DT_MAX) - math.log(DT_MIN)) + math.log(DT_MIN)),
        DT_INIT_FLOOR)
    inv_dt = dt + jnp.log(-jnp.expm1(-dt))
    b_dt = inv_dt.reshape(1, D_INNER)
    a_log = jnp.log(jnp.tile(jnp.arange(1, D_STATE + 1, dtype=jnp.float32),
                             (D_INNER, 1)))                     # (d_inner, d_state)
    d_par = jnp.ones((1, D_INNER), jnp.float32)
    w_out = jax.random.normal(ks[6], (D_INNER, D_MODEL), jnp.float32) * 0.02
    return (w_in, conv_w, conv_b, w_x, w_dt, b_dt, a_log, d_par, w_out), ks[7]


if __name__ == "__main__":
    params, xkey = make_params(jax.random.PRNGKey(0))
    x = jax.random.normal(xkey, (B, L, D_MODEL), jnp.float32)

    out = mamba_block_pallas(x, params)
    out = jax.block_until_ready(out)

    ref = jax.block_until_ready(mamba_block_ref(x, params))
    assert out.shape == (B, L, D_MODEL)
    assert jnp.allclose(out, ref, rtol=1e-3, atol=1e-3), \
        f"max abs err {jnp.max(jnp.abs(out - ref))}"
    print("KERNEL_OK")
</pallas_src>

<mosaic_0001>
module attributes {stable_mosaic.version = 11 : i64} {
  func.func @mamba_block_kernel(%arg0: i32, %arg1: memref<32x64xf32, #tpu.memory_space<vmem>>, %arg2: memref<64x256xf32, #tpu.memory_space<vmem>>, %arg3: memref<7x128xf32, #tpu.memory_space<vmem>>, %arg4: memref<128x128xf32, #tpu.memory_space<vmem>>, %arg5: memref<128x32xf32, #tpu.memory_space<vmem>>, %arg6: memref<16x128xf32, #tpu.memory_space<vmem>>, %arg7: memref<128x64xf32, #tpu.memory_space<vmem>>, %arg8: memref<16x128xf32, #tpu.memory_space<vmem>>, %arg9: memref<32x16x128xf32, #tpu.memory_space<vmem>>, %arg10: memref<32x16x128xf32, #tpu.memory_space<vmem>>) attributes {dimension_semantics = [#tpu.dimension_semantics<arbitrary>], iteration_bounds = array<i64: 1>, scalar_prefetch = 0 : i64, scratch_operands = 2 : i64, tpu.core_type = #tpu.core_type<tc>, window_params = [{pipeline_mode = #tpu.pipeline_mode<synchronous>, transform_indices = @transform_0, window_bounds = array<i64: 32, 64>}, {pipeline_mode = #tpu.pipeline_mode<synchronous>, transform_indices = @transform_1, window_bounds = array<i64: 64, 256>}, {pipeline_mode = #tpu.pipeline_mode<synchronous>, transform_indices = @transform_2, window_bounds = array<i64: 7, 128>}, {pipeline_mode = #tpu.pipeline_mode<synchronous>, transform_indices = @transform_3, window_bounds = array<i64: 128, 128>}, {pipeline_mode = #tpu.pipeline_mode<synchronous>, transform_indices = @transform_4, window_bounds = array<i64: 128, 32>}, {pipeline_mode = #tpu.pipeline_mode<synchronous>, transform_indices = @transform_5, window_bounds = array<i64: 16, 128>}, {pipeline_mode = #tpu.pipeline_mode<synchronous>, transform_indices = @transform_6, window_bounds = array<i64: 128, 64>}, {pipeline_mode = #tpu.pipeline_mode<synchronous>, transform_indices = @transform_7, window_bounds = array<i64: 16, 128>}]} {
    %c0 = arith.constant 0 : index
    %c0_0 = arith.constant 0 : index
    %0 = vector.load %arg1[%c0, %c0_0] : memref<32x64xf32, #tpu.memory_space<vmem>>, vector<32x64xf32>
    %c0_1 = arith.constant 0 : index
    %c0_2 = arith.constant 0 : index
    %1 = vector.load %arg2[%c0_1, %c0_2] : memref<64x256xf32, #tpu.memory_space<vmem>>, vector<64x256xf32>
    %cst = arith.constant dense<0.000000e+00> : vector<32x256xf32>
    %2 = tpu.matmul %0, %1, %cst {dimension_numbers = #tpu.dot_dimension_numbers<[1], [0], [0], [1], [0, 0, 1, 1], [], []>} : vector<32x64xf32>, vector<64x256xf32>, vector<32x256xf32> -> vector<32x256xf32>
    %3 = vector.extract_strided_slice %2 {offsets = [0, 0], sizes = [32, 128], strides = [1, 1]} : vector<32x256xf32> to vector<32x128xf32>
    %4 = vector.extract_strided_slice %2 {offsets = [0, 128], sizes = [32, 128], strides = [1, 1]} : vector<32x256xf32> to vector<32x128xf32>
    %c4 = arith.constant 4 : index
    %c0_3 = arith.constant 0 : index
    %5 = vector.load %arg3[%c4, %c0_3] : memref<7x128xf32, #tpu.memory_space<vmem>>, vector<1x128xf32>
    %cst_4 = arith.constant 0.000000e+00 : f32
    %6 = vector.broadcast %cst_4 : f32 to vector<3x128xf32>
    %7 = vector.extract_strided_slice %3 {offsets = [0, 0], sizes = [16, 128], strides = [1, 1]} : vector<32x128xf32> to vector<16x128xf32>
    %8 = tpu.concatenate %6, %7 in 0 : vector<3x128xf32>, vector<16x128xf32> -> vector<19x128xf32>
    %c3 = arith.constant 3 : index
    %c0_5 = arith.constant 0 : index
    %9 = vector.load %arg3[%c3, %c0_5] : memref<7x128xf32, #tpu.memory_space<vmem>>, vector<1x128xf32>
    %10 = vector.broadcast %9 : vector<1x128xf32> to vector<16x128xf32>
    %11 = arith.mulf %7, %10 : vector<16x128xf32>
    %12 = vector.broadcast %5 : vector<1x128xf32> to vector<16x128xf32>
    %13 = arith.addf %12, %11 : vector<16x128xf32>
    %14 = vector.extract_strided_slice %8 {offsets = [0, 0], sizes = [16, 128], strides = [1, 1]} : vector<19x128xf32> to vector<16x128xf32>
    %c0_6 = arith.constant 0 : index
    %c0_7 = arith.constant 0 : index
    %15 = vector.load %arg3[%c0_6, %c0_7] : memref<7x128xf32, #tpu.memory_space<vmem>>, vector<1x128xf32>
    %16 = vector.broadcast %15 : vector<1x128xf32> to vector<16x128xf32>
    %17 = arith.mulf %14, %16 : vector<16x128xf32>
    %18 = arith.addf %13, %17 : vector<16x128xf32>
    %19 = vector.extract_strided_slice %8 {offsets = [1, 0], sizes = [16, 128], strides = [1, 1]} : vector<19x128xf32> to vector<16x128xf32>
    %c1 = arith.constant 1 : index
    %c0_8 = arith.constant 0 : index
    %20 = vector.load %arg3[%c1, %c0_8] : memref<7x128xf32, #tpu.memory_space<vmem>>, vector<1x128xf32>
    %21 = vector.broadcast %20 : vector<1x128xf32> to vector<16x128xf32>
    %22 = arith.mulf %19, %21 : vector<16x128xf32>
    %23 = arith.addf %18, %22 : vector<16x128xf32>
    %24 = vector.extract_strided_slice %8 {offsets = [2, 0], sizes = [16, 128], strides = [1, 1]} : vector<19x128xf32> to vector<16x128xf32>
    %c2 = arith.constant 2 : index
    %c0_9 = arith.constant 0 : index
    %25 = vector.load %arg3[%c2, %c0_9] : memref<7x128xf32, #tpu.memory_space<vmem>>, vector<1x128xf32>
    %26 = vector.broadcast %25 : vector<1x128xf32> to vector<16x128xf32>
    %27 = arith.mulf %24, %26 : vector<16x128xf32>
    %28 = arith.addf %23, %27 : vector<16x128xf32>
    %29 = arith.negf %28 : vector<16x128xf32>
    %30 = math.exp %29 : vector<16x128xf32>
    %cst_10 = arith.constant 1.000000e+00 : f32
    %31 = vector.broadcast %cst_10 : f32 to vector<16x128xf32>
    %32 = arith.addf %31, %30 : vector<16x128xf32>
    %33 = arith.divf %31, %32 : vector<16x128xf32>
    %34 = arith.mulf %28, %33 : vector<16x128xf32>
    %35 = vector.extract_strided_slice %3 {offsets = [16, 0], sizes = [16, 128], strides = [1, 1]} : vector<32x128xf32> to vector<16x128xf32>
    %36 = tpu.concatenate %6, %35 in 0 : vector<3x128xf32>, vector<16x128xf32> -> vector<19x128xf32>
    %c3_11 = arith.constant 3 : index
    %c0_12 = arith.constant 0 : index
    %37 = vector.load %arg3[%c3_11, %c0_12] : memref<7x128xf32, #tpu.memory_space<vmem>>, vector<1x128xf32>
    %38 = vector.broadcast %37 : vector<1x128xf32> to vector<16x128xf32>
    %39 = arith.mulf %35, %38 : vector<16x128xf32>
    %40 = vector.broadcast %5 : vector<1x128xf32> to vector<16x128xf32>
    %41 = arith.addf %40, %39 : vector<16x128xf32>
    %42 = vector.extract_strided_slice %36 {offsets = [0, 0], sizes = [16, 128], strides = [1, 1]} : vector<19x128xf32> to vector<16x128xf32>
    %c0_13 = arith.constant 0 : index
    %c0_14 = arith.constant 0 : index
    %43 = vector.load %arg3[%c0_13, %c0_14] : memref<7x128xf32, #tpu.memory_space<vmem>>, vector<1x128xf32>
    %44 = vector.broadcast %43 : vector<1x128xf32> to vector<16x128xf32>
    %45 = arith.mulf %42, %44 : vector<16x128xf32>
    %46 = arith.addf %41, %45 : vector<16x128xf32>
    %47 = vector.extract_strided_slice %36 {offsets = [1, 0], sizes = [16, 128], strides = [1, 1]} : vector<19x128xf32> to vector<16x128xf32>
    %c1_15 = arith.constant 1 : index
    %c0_16 = arith.constant 0 : index
    %48 = vector.load %arg3[%c1_15, %c0_16] : memref<7x128xf32, #tpu.memory_space<vmem>>, vector<1x128xf32>
    %49 = vector.broadcast %48 : vector<1x128xf32> to vector<16x128xf32>
    %50 = arith.mulf %47, %49 : vector<16x128xf32>
    %51 = arith.addf %46, %50 : vector<16x128xf32>
    %52 = vector.extract_strided_slice %36 {offsets = [2, 0], sizes = [16, 128], strides = [1, 1]} : vector<19x128xf32> to vector<16x128xf32>
    %c2_17 = arith.constant 2 : index
    %c0_18 = arith.constant 0 : index
    %53 = vector.load %arg3[%c2_17, %c0_18] : memref<7x128xf32, #tpu.memory_space<vmem>>, vector<1x128xf32>
    %54 = vector.broadcast %53 : vector<1x128xf32> to vector<16x128xf32>
    %55 = arith.mulf %52, %54 : vector<16x128xf32>
    %56 = arith.addf %51, %55 : vector<16x128xf32>
    %57 = arith.negf %56 : vector<16x128xf32>
    %58 = math.exp %57 : vector<16x128xf32>
    %cst_19 = arith.constant 1.000000e+00 : f32
    %59 = vector.broadcast %cst_19 : f32 to vector<16x128xf32>
    %60 = arith.addf %59, %58 : vector<16x128xf32>
    %61 = arith.divf %59, %60 : vector<16x128xf32>
    %62 = arith.mulf %56, %61 : vector<16x128xf32>
    %63 = tpu.concatenate %34, %62 in 0 : vector<16x128xf32>, vector<16x128xf32> -> vector<32x128xf32>
    %c5 = arith.constant 5 : index
    %c0_20 = arith.constant 0 : index
    %64 = vector.load %arg3[%c5, %c0_20] : memref<7x128xf32, #tpu.memory_space<vmem>>, vector<1x128xf32>
    %c0_21 = arith.constant 0 : index
    %c0_22 = arith.constant 0 : index
    %65 = vector.load %arg4[%c0_21, %c0_22] : memref<128x128xf32, #tpu.memory_space<vmem>>, vector<128x128xf32>
    %cst_23 = arith.constant dense<0.000000e+00> : vector<32x128xf32>
    %66 = tpu.matmul %63, %65, %cst_23 {dimension_numbers = #tpu.dot_dimension_numbers<[1], [0], [0], [1], [0, 0, 1, 1], [], []>} : vector<32x128xf32>, vector<128x128xf32>, vector<32x128xf32> -> vector<32x128xf32>
    %67 = vector.broadcast %64 : vector<1x128xf32> to vector<32x128xf32>
    %68 = arith.addf %66, %67 : vector<32x128xf32>
    %cst_24 = arith.constant 0.000000e+00 : f32
    %69 = vector.broadcast %cst_24 : f32 to vector<32x128xf32>
    %70 = arith.maximumf %68, %69 : vector<32x128xf32>
    %71 = vector.broadcast %cst_24 : f32 to vector<32x128xf32>
    %72 = arith.subf %68, %71 : vector<32x128xf32>
    %73 = arith.cmpf one, %72, %72 : vector<32x128xf32>
    %74 = vector.broadcast %cst_24 : f32 to vector<32x128xf32>
    %75 = arith.addf %68, %74 : vector<32x128xf32>
    %76 = math.absf %72 : vector<32x128xf32>
    %cst_25 = arith.constant 0.000000e+00 : f32
    %77 = vector.broadcast %cst_25 : f32 to vector<32x128xf32>
    %78 = arith.subf %77, %76 : vector<32x128xf32>
    %79 = math.exp %78 : vector<32x128xf32>
    %80 = math.log1p %79 : vector<32x128xf32>
    %81 = arith.addf %70, %80 : vector<32x128xf32>
    %82 = arith.select %73, %75, %81 : vector<32x128xi1>, vector<32x128xf32>
    %c0_26 = arith.constant 0 : index
    %c0_27 = arith.constant 0 : index
    %83 = vector.load %arg5[%c0_26, %c0_27] : memref<128x32xf32, #tpu.memory_space<vmem>>, vector<128x32xf32>
    %cst_28 = arith.constant dense<0.000000e+00> : vector<32x32xf32>
    %84 = tpu.matmul %63, %83, %cst_28 {dimension_numbers = #tpu.dot_dimension_numbers<[1], [0], [0], [1], [0, 0, 1, 1], [], []>} : vector<32x128xf32>, vector<128x32xf32>, vector<32x32xf32> -> vector<32x32xf32>
    %85 = vector.extract_strided_slice %84 {offsets = [0, 0], sizes = [32, 16], strides = [1, 1]} : vector<32x32xf32> to vector<32x16xf32>
    %86 = vector.extract_strided_slice %84 {offsets = [0, 16], sizes = [32, 16], strides = [1, 1]} : vector<32x32xf32> to vector<32x16xf32>
    %c0_29 = arith.constant 0 : index
    %c0_30 = arith.constant 0 : index
    %87 = vector.load %arg6[%c0_29, %c0_30] : memref<16x128xf32, #tpu.memory_space<vmem>>, vector<16x128xf32>
    %88 = math.exp %87 : vector<16x128xf32>
    %cst_31 = arith.constant 0.000000e+00 : f32
    %89 = vector.broadcast %cst_31 : f32 to vector<16x128xf32>
    %90 = arith.subf %89, %88 : vector<16x128xf32>
    %91 = arith.mulf %82, %63 : vector<32x128xf32>
    %92 = vector.extract_strided_slice %82 {offsets = [0, 0], sizes = [16, 128], strides = [1, 1]} : vector<32x128xf32> to vector<16x128xf32>
    %93 = vector.shape_cast %92 : vector<16x128xf32> to vector<16x1x128xf32>
    %94 = vector.shape_cast %90 : vector<16x128xf32> to vector<1x16x128xf32>
    %95 = vector.broadcast %93 : vector<16x1x128xf32> to vector<16x16x128xf32>
    %96 = vector.broadcast %94 : vector<1x16x128xf32> to vector<16x16x128xf32>
    %97 = arith.mulf %95, %96 : vector<16x16x128xf32>
    %98 = math.exp %97 : vector<16x16x128xf32>
    %c0_32 = arith.constant 0 : index
    %c0_33 = arith.constant 0 : index
    %c0_34 = arith.constant 0 : index
    %99 = vector.load %arg9[%c0_32, %c0_33, %c0_34] : memref<32x16x128xf32, #tpu.memory_space<vmem>>, vector<16x16x128xf32>
    tpu.vector_store %arg9[%c0_32, %c0_33, %c0_34], %98 {strides = array<i32>} : memref<32x16x128xf32, #tpu.memory_space<vmem>>, vector<16x16x128xf32>,
    %100 = vector.extract_strided_slice %91 {offsets = [0, 0], sizes = [16, 128], strides = [1, 1]} : vector<32x128xf32> to vector<16x128xf32>
    %101 = vector.shape_cast %100 : vector<16x128xf32> to vector<16x1x128xf32>
    %102 = vector.extract_strided_slice %85 {offsets = [0, 0], sizes = [16, 16], strides = [1, 1]} : vector<32x16xf32> to vector<16x16xf32>
    %103 = vector.shape_cast %102 : vector<16x16xf32> to vector<16x16x1xf32>
    %104 = vector.broadcast %101 : vector<16x1x128xf32> to vector<16x16x128xf32>
    %105 = vector.broadcast %103 : vector<16x16x1xf32> to vector<16x16x128xf32>
    %106 = arith.mulf %104, %105 : vector<16x16x128xf32>
    %c0_35 = arith.constant 0 : index
    %c0_36 = arith.constant 0 : index
    %c0_37 = arith.constant 0 : index
    %107 = vector.load %arg10[%c0_35, %c0_36, %c0_37] : memref<32x16x128xf32, #tpu.memory_space<vmem>>, vector<16x16x128xf32>
    tpu.vector_store %arg10[%c0_35, %c0_36, %c0_37], %106 {strides = array<i32>} : memref<32x16x128xf32, #tpu.memory_space<vmem>>, vector<16x16x128xf32>,
    %108 = vector.extract_strided_slice %82 {offsets = [16, 0], sizes = [16, 128], strides = [1, 1]} : vector<32x128xf32> to vector<16x128xf32>
    %109 = vector.shape_cast %108 : vector<16x128xf32> to vector<16x1x128xf32>
    %110 = vector.shape_cast %90 : vector<16x128xf32> to vector<1x16x128xf32>
    %111 = vector.broadcast %109 : vector<16x1x128xf32> to vector<16x16x128xf32>
    %112 = vector.broadcast %110 : vector<1x16x128xf32> to vector<16x16x128xf32>
    %113 = arith.mulf %111, %112 : vector<16x16x128xf32>
    %114 = math.exp %113 : vector<16x16x128xf32>
    %c16 = arith.constant 16 : index
    %c0_38 = arith.constant 0 : index
    %c0_39 = arith.constant 0 : index
    %115 = vector.load %arg9[%c16, %c0_38, %c0_39] : memref<32x16x128xf32, #tpu.memory_space<vmem>>, vector<16x16x128xf32>
    tpu.vector_store %arg9[%c16, %c0_38, %c0_39], %114 {strides = array<i32>} : memref<32x16x128xf32, #tpu.memory_space<vmem>>, vector<16x16x128xf32>,
    %116 = vector.extract_strided_slice %91 {offsets = [16, 0], sizes = [16, 128], strides = [1, 1]} : vector<32x128xf32> to vector<16x128xf32>
    %117 = vector.shape_cast %116 : vector<16x128xf32> to vector<16x1x128xf32>
    %118 = vector.extract_strided_slice %85 {offsets = [16, 0], sizes = [16, 16], strides = [1, 1]} : vector<32x16xf32> to vector<16x16xf32>
    %119 = vector.shape_cast %118 : vector<16x16xf32> to vector<16x16x1xf32>
    %120 = vector.broadcast %117 : vector<16x1x128xf32> to vector<16x16x128xf32>
    %121 = vector.broadcast %119 : vector<16x16x1xf32> to vector<16x16x128xf32>
    %122 = arith.mulf %120, %121 : vector<16x16x128xf32>
    %c16_40 = arith.constant 16 : index
    %c0_41 = arith.constant 0 : index
    %c0_42 = arith.constant 0 : index
    %123 = vector.load %arg10[%c16_40, %c0_41, %c0_42] : memref<32x16x128xf32, #tpu.memory_space<vmem>>, vector<16x16x128xf32>
    tpu.vector_store %arg10[%c16_40, %c0_41, %c0_42], %122 {strides = array<i32>} : memref<32x16x128xf32, #tpu.memory_space<vmem>>, vector<16x16x128xf32>,
    %cst_43 = arith.constant 0.000000e+00 : f32
    %124 = vector.broadcast %cst_43 : f32 to vector<16x128xf32>
    %cst_44 = arith.constant 0.000000e+00 : f32
    %125 = vector.broadcast %cst_44 : f32 to vector<16x128xf32>
    %c0_45 = arith.constant 0 : index
    %c0_46 = arith.constant 0 : index
    %c0_47 = arith.constant 0 : index
    %126 = vector.load %arg9[%c0_45, %c0_46, %c0_47] : memref<32x16x128xf32, #tpu.memory_space<vmem>>, vector<1x16x128xf32>
    %127 = vector.shape_cast %126 : vector<1x16x128xf32> to vector<16x128xf32>
    %128 = arith.mulf %127, %124 : vector<16x128xf32>
    %c0_48 = arith.constant 0 : index
    %c0_49 = arith.constant 0 : index
    %c0_50 = arith.constant 0 : index
    %129 = vector.load %arg10[%c0_48, %c0_49, %c0_50] : memref<32x16x128xf32, #tpu.memory_space<vmem>>, vector<1x16x128xf32>
    %130 = vector.shape_cast %129 : vector<1x16x128xf32> to vector<16x128xf32>
    %131 = arith.addf %128, %130 : vector<16x128xf32>
    %c0_51 = arith.constant 0 : index
    %c0_52 = arith.constant 0 : index
    %c0_53 = arith.constant 0 : index
    %132 = vector.load %arg9[%c0_51, %c0_52, %c0_53] : memref<32x16x128xf32, #tpu.memory_space<vmem>>, vector<1x16x128xf32>
    %133 = vector.shape_cast %132 : vector<1x16x128xf32> to vector<16x128xf32>
    %134 = vector.shape_cast %131 : vector<16x128xf32> to vector<1x16x128xf32>
    tpu.vector_store %arg9[%c0_51, %c0_52, %c0_53], %134 {strides = array<i32>} : memref<32x16x128xf32, #tpu.memory_space<vmem>>, vector<1x16x128xf32>,
    %c16_54 = arith.constant 16 : index
    %c0_55 = arith.constant 0 : index
    %c0_56 = arith.constant 0 : index
    %135 = vector.load %arg9[%c16_54, %c0_55, %c0_56] : memref<32x16x128xf32, #tpu.memory_space<vmem>>, vector<1x16x128xf32>
    %136 = vector.shape_cast %135 : vector<1x16x128xf32> to vector<16x128xf32>
    %137 = arith.mulf %136, %125 : vector<16x128xf32>
    %c16_57 = arith.constant 16 : index
    %c0_58 = arith.constant 0 : index
    %c0_59 = arith.constant 0 : index
    %138 = vector.load %arg10[%c16_57, %c0_58, %c0_59] : memref<32x16x128xf32, #tpu.memory_space<vmem>>, vector<1x16x128xf32>
    %139 = vector.shape_cast %138 : vector<1x16x128xf32> to vector<16x128xf32>
    %140 = arith.addf %137, %139 : vector<16x128xf32>
    %c16_60 = arith.constant 16 : index
    %c0_61 = arith.constant 0 : index
    %c0_62 = arith.constant 0 : index
    %141 = vector.load %arg9[%c16_60, %c0_61, %c0_62] : memref<32x16x128xf32, #tpu.memory_space<vmem>>, vector<1x16x128xf32>
    %142 = vector.shape_cast %141 : vector<1x16x128xf32> to vector<16x128xf32>
    %143 = vector.shape_cast %140 : vector<16x128xf32> to vector<1x16x128xf32>
    tpu.vector_store %arg9[%c16_60, %c0_61, %c0_62], %143 {strides = array<i32>} : memref<32x16x128xf32, #tpu.memory_space<vmem>>, vector<1x16x128xf32>,
    %c1_63 = arith.constant 1 : index
    %c0_64 = arith.constant 0 : index
    %c0_65 = arith.constant 0 : index
    %144 = vector.load %arg9[%c1_63, %c0_64, %c0_65] : memref<32x16x128xf32, #tpu.memory_space<vmem>>, vector<1x16x128xf32>
    %145 = vector.shape_cast %144 : vector<1x16x128xf32> to vector<16x128xf32>
    %146 = arith.mulf %145, %131 : vector<16x128xf32>
    %c1_66 = arith.constant 1 : index
    %c0_67 = arith.constant 0 : index
    %c0_68 = arith.constant 0 : index
    %147 = vector.load %arg10[%c1_66, %c0_67, %c0_68] : memref<32x16x128xf32, #tpu.memory_space<vmem>>, vector<1x16x128xf32>
    %148 = vector.shape_cast %147 : vector<1x16x128xf32> to vector<16x128xf32>
    %149 = arith.addf %146, %148 : vector<16x128xf32>
    %c1_69 = arith.constant 1 : index
    %c0_70 = arith.constant 0 : index
    %c0_71 = arith.constant 0 : index
    %150 = vector.load %arg9[%c1_69, %c0_70, %c0_71] : memref<32x16x128xf32, #tpu.memory_space<vmem>>, vector<1x16x128xf32>
    %151 = vector.shape_cast %150 : vector<1x16x128xf32> to vector<16x128xf32>
    %152 = vector.shape_cast %149 : vector<16x128xf32> to vector<1x16x128xf32>
    tpu.vector_store %arg9[%c1_69, %c0_70, %c0_71], %152 {strides = array<i32>} : memref<32x16x128xf32, #tpu.memory_space<vmem>>, vector<1x16x128xf32>,
    %c17 = arith.constant 17 : index
    %c0_72 = arith.constant 0 : index
    %c0_73 = arith.constant 0 : index
    %153 = vector.load %arg9[%c17, %c0_72, %c0_73] : memref<32x16x128xf32, #tpu.memory_space<vmem>>, vector<1x16x128xf32>
    %154 = vector.shape_cast %153 : vector<1x16x128xf32> to vector<16x128xf32>
    %155 = arith.mulf %154, %140 : vector<16x128xf32>
    %c17_74 = arith.constant 17 : index
    %c0_75 = arith.constant 0 : index
    %c0_76 = arith.constant 0 : index
    %156 = vector.load %arg10[%c17_74, %c0_75, %c0_76] : memref<32x16x128xf32, #tpu.memory_space<vmem>>, vector<1x16x128xf32>
    %157 = vector.shape_cast %156 : vector<1x16x128xf32> to vector<16x128xf32>
    %158 = arith.addf %155, %157 : vector<16x128xf32>
    %c17_77 = arith.constant 17 : index
    %c0_78 = arith.constant 0 : index
    %c0_79 = arith.constant 0 : index
    %159 = vector.load %arg9[%c17_77, %c0_78, %c0_79] : memref<32x16x128xf32, #tpu.memory_space<vmem>>, vector<1x16x128xf32>
    %160 = vector.shape_cast %159 : vector<1x16x128xf32> to vector<16x128xf32>
    %161 = vector.shape_cast %158 : vector<16x128xf32> to vector<1x16x128xf32>
    tpu.vector_store %arg9[%c17_77, %c0_78, %c0_79], %161 {strides = array<i32>} : memref<32x16x128xf32, #tpu.memory_space<vmem>>, vector<1x16x128xf32>,
    %c2_80 = arith.constant 2 : index
    %c0_81 = arith.constant 0 : index
    %c0_82 = arith.constant 0 : index
    %162 = vector.load %arg9[%c2_80, %c0_81, %c0_82] : memref<32x16x128xf32, #tpu.memory_space<vmem>>, vector<1x16x128xf32>
    %163 = vector.shape_cast %162 : vector<1x16x128xf32> to vector<16x128xf32>
    %164 = arith.mulf %163, %149 : vector<16x128xf32>
    %c2_83 = arith.constant 2 : index
    %c0_84 = arith.constant 0 : index
    %c0_85 = arith.constant 0 : index
    %165 = vector.load %arg10[%c2_83, %c0_84, %c0_85] : memref<32x16x128xf32, #tpu.memory_space<vmem>>, vector<1x16x128xf32>
    %166 = vector.shape_cast %165 : vector<1x16x128xf32> to vector<16x128xf32>
    %167 = arith.addf %164, %166 : vector<16x128xf32>
    %c2_86 = arith.constant 2 : index
    %c0_87 = arith.constant 0 : index
    %c0_88 = arith.constant 0 : index
    %168 = vector.load %arg9[%c2_86, %c0_87, %c0_88] : memref<32x16x128xf32, #tpu.memory_space<vmem>>, vector<1x16x128xf32>
    %169 = vector.shape_cast %168 : vector<1x16x128xf32> to vector<16x128xf32>
    %170 = vector.shape_cast %167 : vector<16x128xf32> to vector<1x16x128xf32>
    tpu.vector_store %arg9[%c2_86, %c0_87, %c0_88], %170 {strides = array<i32>} : memref<32x16x128xf32, #tpu.memory_space<vmem>>, vector<1x16x128xf32>,
    %c18 = arith.constant 18 : index
    %c0_89 = arith.constant 0 : index
    %c0_90 = arith.constant 0 : index
    %171 = vector.load %arg9[%c18, %c0_89, %c0_90] : memref<32x16x128xf32, #tpu.memory_space<vmem>>, vector<1x16x128xf32>
    %172 = vector.shape_cast %171 : vector<1x16x128xf32> to vector<16x128xf32>
    %173 = arith.mulf %172, %158 : vector<16x128xf32>
    %c18_91 = arith.constant 18 : index
    %c0_92 = arith.constant 0 : index
    %c0_93 = arith.constant 0 : index
    %174 = vector.load %arg10[%c18_91, %c0_92, %c0_93] : memref<32x16x128xf32, #tpu.memory_space<vmem>>, vector<1x16x128xf32>
    %175 = vector.shape_cast %174 : vector<1x16x128xf32> to vector<16x128xf32>
    %176 = arith.addf %173, %175 : vector<16x128xf32>
    %c18_94 = arith.constant 18 : index
    %c0_95 = arith.constant 0 : index
    %c0_96 = arith.constant 0 : index
    %177 = vector.load %arg9[%c18_94, %c0_95, %c0_96] : memref<32x16x128xf32, #tpu.memory_space<vmem>>, vector<1x16x128xf32>
    %178 = vector.shape_cast %177 : vector<1x16x128xf32> to vector<16x128xf32>
    %179 = vector.shape_cast %176 : vector<16x128xf32> to vector<1x16x128xf32>
    tpu.vector_store %arg9[%c18_94, %c0_95, %c0_96], %179 {strides = array<i32>} : memref<32x16x128xf32, #tpu.memory_space<vmem>>, vector<1x16x128xf32>,
    %c3_97 = arith.constant 3 : index
    %c0_98 = arith.constant 0 : index
    %c0_99 = arith.constant 0 : index
    %180 = vector.load %arg9[%c3_97, %c0_98, %c0_99] : memref<32x16x128xf32, #tpu.memory_space<vmem>>, vector<1x16x128xf32>
    %181 = vector.shape_cast %180 : vector<1x16x128xf32> to vector<16x128xf32>
    %182 = arith.mulf %181, %167 : vector<16x128xf32>
    %c3_100 = arith.constant 3 : index
    %c0_101 = arith.constant 0 : index
    %c0_102 = arith.constant 0 : index
    %183 = vector.load %arg10[%c3_100, %c0_101, %c0_102] : memref<32x16x128xf32, #tpu.memory_space<vmem>>, vector<1x16x128xf32>
    %184 = vector.shape_cast %183 : vector<1x16x128xf32> to vector<16x128xf32>
    %185 = arith.addf %182, %184 : vector<16x128xf32>
    %c3_103 = arith.constant 3 : index
    %c0_104 = arith.constant 0 : index
    %c0_105 = arith.constant 0 : index
    %186 = vector.load %arg9[%c3_103, %c0_104, %c0_105] : memref<32x16x128xf32, #tpu.memory_space<vmem>>, vector<1x16x128xf32>
    %187 = vector.shape_cast %186 : vector<1x16x128xf32> to vector<16x128xf32>
    %188 = vector.shape_cast %185 : vector<16x128xf32> to vector<1x16x128xf32>
    tpu.vector_store %arg9[%c3_103, %c0_104, %c0_105], %188 {strides = array<i32>} : memref<32x16x128xf32, #tpu.memory_space<vmem>>, vector<1x16x128xf32>,
    %c19 = arith.constant 19 : index
    %c0_106 = arith.constant 0 : index
    %c0_107 = arith.constant 0 : index
    %189 = vector.load %arg9[%c19, %c0_106, %c0_107] : memref<32x16x128xf32, #tpu.memory_space<vmem>>, vector<1x16x128xf32>
    %190 = vector.shape_cast %189 : vector<1x16x128xf32> to vector<16x128xf32>
    %191 = arith.mulf %190, %176 : vector<16x128xf32>
    %c19_108 = arith.constant 19 : index
    %c0_109 = arith.constant 0 : index
    %c0_110 = arith.constant 0 : index
    %192 = vector.load %arg10[%c19_108, %c0_109, %c0_110] : memref<32x16x128xf32, #tpu.memory_space<vmem>>, vector<1x16x128xf32>
    %193 = vector.shape_cast %192 : vector<1x16x128xf32> to vector<16x128xf32>
    %194 = arith.addf %191, %193 : vector<16x128xf32>
    %c19_111 = arith.constant 19 : index
    %c0_112 = arith.constant 0 : index
    %c0_113 = arith.constant 0 : index
    %195 = vector.load %arg9[%c19_111, %c0_112, %c0_113] : memref<32x16x128xf32, #tpu.memory_space<vmem>>, vector<1x16x128xf32>
    %196 = vector.shape_cast %195 : vector<1x16x128xf32> to vector<16x128xf32>
    %197 = vector.shape_cast %194 : vector<16x128xf32> to vector<1x16x128xf32>
    tpu.vector_store %arg9[%c19_111, %c0_112, %c0_113], %197 {strides = array<i32>} : memref<32x16x128xf32, #tpu.memory_space<vmem>>, vector<1x16x128xf32>,
    %c4_114 = arith.constant 4 : index
    %c0_115 = arith.constant 0 : index
    %c0_116 = arith.constant 0 : index
    %198 = vector.load %arg9[%c4_114, %c0_115, %c0_116] : memref<32x16x128xf32, #tpu.memory_space<vmem>>, vector<1x16x128xf32>
    %199 = vector.shape_cast %198 : vector<1x16x128xf32> to vector<16x128xf32>
    %200 = arith.mulf %199, %185 : vector<16x128xf32>
    %c4_117 = arith.constant 4 : index
    %c0_118 = arith.constant 0 : index
    %c0_119 = arith.constant 0 : index
    %201 = vector.load %arg10[%c4_117, %c0_118, %c0_119] : memref<32x16x128xf32, #tpu.memory_space<vmem>>, vector<1x16x128xf32>
    %202 = vector.shape_cast %201 : vector<1x16x128xf32> to vector<16x128xf32>
    %203 = arith.addf %200, %202 : vector<16x128xf32>
    %c4_120 = arith.constant 4 : index
    %c0_121 = arith.constant 0 : index
    %c0_122 = arith.constant 0 : index
    %204 = vector.load %arg9[%c4_120, %c0_121, %c0_122] : memref<32x16x128xf32, #tpu.memory_space<vmem>>, vector<1x16x128xf32>
    %205 = vector.shape_cast %204 : vector<1x16x128xf32> to vector<16x128xf32>
    %206 = vector.shape_cast %203 : vector<16x128xf32> to vector<1x16x128xf32>
    tpu.vector_store %arg9[%c4_120, %c0_121, %c0_122], %206 {strides = array<i32>} : memref<32x16x128xf32, #tpu.memory_space<vmem>>, vector<1x16x128xf32>,
    %c20 = arith.constant 20 : index
    %c0_123 = arith.constant 0 : index
    %c0_124 = arith.constant 0 : index
    %207 = vector.load %arg9[%c20, %c0_123, %c0_124] : memref<32x16x128xf32, #tpu.memory_space<vmem>>, vector<1x16x128xf32>
    %208 = vector.shape_cast %207 : vector<1x16x128xf32> to vector<16x128xf32>
    %209 = arith.mulf %208, %194 : vector<16x128xf32>
    %c20_125 = arith.constant 20 : index
    %c0_126 = arith.constant 0 : index
    %c0_127 = arith.constant 0 : index
    %210 = vector.load %arg10[%c20_125, %c0_126, %c0_127] : memref<32x16x128xf32, #tpu.memory_space<vmem>>, vector<1x16x128xf32>
    %211 = vector.shape_cast %210 : vector<1x16x128xf32> to vector<16x128xf32>
    %212 = arith.addf %209, %211 : vector<16x128xf32>
    %c20_128 = arith.constant 20 : index
    %c0_129 = arith.constant 0 : index
    %c0_130 = arith.constant 0 : index
    %213 = vector.load %arg9[%c20_128, %c0_129, %c0_130] : memref<32x16x128xf32, #tpu.memory_space<vmem>>, vector<1x16x128xf32>
    %214 = vector.shape_cast %213 : vector<1x16x128xf32> to vector<16x128xf32>
    %215 = vector.shape_cast %212 : vector<16x128xf32> to vector<1x16x128xf32>
    tpu.vector_store %arg9[%c20_128, %c0_129, %c0_130], %215 {strides = array<i32>} : memref<32x16x128xf32, #tpu.memory_space<vmem>>, vector<1x16x128xf32>,
    %c5_131 = arith.constant 5 : index
    %c0_132 = arith.constant 0 : index
    %c0_133 = arith.constant 0 : index
    %216 = vector.load %arg9[%c5_131, %c0_132, %c0_133] : memref<32x16x128xf32, #tpu.memory_space<vmem>>, vector<1x16x128xf32>
    %217 = vector.shape_cast %216 : vector<1x16x128xf32> to vector<16x128xf32>
    %218 = arith.mulf %217, %203 : vector<16x128xf32>
    %c5_134 = arith.constant 5 : index
    %c0_135 = arith.constant 0 : index
    %c0_136 = arith.constant 0 : index
    %219 = vector.load %arg10[%c5_134, %c0_135, %c0_136] : memref<32x16x128xf32, #tpu.memory_space<vmem>>, vector<1x16x128xf32>
    %220 = vector.shape_cast %219 : vector<1x16x128xf32> to vector<16x128xf32>
    %221 = arith.addf %218, %220 : vector<16x128xf32>
    %c5_137 = arith.constant 5 : index
    %c0_138 = arith.constant 0 : index
    %c0_139 = arith.constant 0 : index
    %222 = vector.load %arg9[%c5_137, %c0_138, %c0_139] : memref<32x16x128xf32, #tpu.memory_space<vmem>>, vector<1x16x128xf32>
    %223 = vector.shape_cast %222 : vector<1x16x128xf32> to vector<16x128xf32>
    %224 = vector.shape_cast %221 : vector<16x128xf32> to vector<1x16x128xf32>
    tpu.vector_store %arg9[%c5_137, %c0_138, %c0_139], %224 {strides = array<i32>} : memref<32x16x128xf32, #tpu.memory_space<vmem>>, vector<1x16x128xf32>,
    %c21 = arith.constant 21 : index
    %c0_140 = arith.constant 0 : index
    %c0_141 = arith.constant 0 : index
    %225 = vector.load %arg9[%c21, %c0_140, %c0_141] : memref<32x16x128xf32, #tpu.memory_space<vmem>>, vector<1x16x128xf32>
    %226 = vector.shape_cast %225 : vector<1x16x128xf32> to vector<16x128xf32>
    %227 = arith.mulf %226, %212 : vector<16x128xf32>
    %c21_142 = arith.constant 21 : index
    %c0_143 = arith.constant 0 : index
    %c0_144 = arith.constant 0 : index
    %228 = vector.load %arg10[%c21_142, %c0_143, %c0_144] : memref<32x16x128xf32, #tpu.memory_space<vmem>>, vector<1x16x128xf32>
    %229 = vector.shape_cast %228 : vector<1x16x128xf32> to vector<16x128xf32>
    %230 = arith.addf %227, %229 : vector<16x128xf32>
    %c21_145 = arith.constant 21 : index
    %c0_146 = arith.constant 0 : index
    %c0_147 = arith.constant 0 : index
    %231 = vector.load %arg9[%c21_145, %c0_146, %c0_147] : memref<32x16x128xf32, #tpu.memory_space<vmem>>, vector<1x16x128xf32>
    %232 = vector.shape_cast %231 : vector<1x16x128xf32> to vector<16x128xf32>
    %233 = vector.shape_cast %230 : vector<16x128xf32> to vector<1x16x128xf32>
    tpu.vector_store %arg9[%c21_145, %c0_146, %c0_147], %233 {strides = array<i32>} : memref<32x16x128xf32, #tpu.memory_space<vmem>>, vector<1x16x128xf32>,
    %c6 = arith.constant 6 : index
    %c0_148 = arith.constant 0 : index
    %c0_149 = arith.constant 0 : index
    %234 = vector.load %arg9[%c6, %c0_148, %c0_149] : memref<32x16x128xf32, #tpu.memory_space<vmem>>, vector<1x16x128xf32>
    %235 = vector.shape_cast %234 : vector<1x16x128xf32> to vector<16x128xf32>
    %236 = arith.mulf %235, %221 : vector<16x128xf32>
    %c6_150 = arith.constant 6 : index
    %c0_151 = arith.constant 0 : index
    %c0_152 = arith.constant 0 : index
    %237 = vector.load %arg10[%c6_150, %c0_151, %c0_152] : memref<32x16x128xf32, #tpu.memory_space<vmem>>, vector<1x16x128xf32>
    %238 = vector.shape_cast %237 : vector<1x16x128xf32> to vector<16x128xf32>
    %239 = arith.addf %236, %238 : vector<16x128xf32>
    %c6_153 = arith.constant 6 : index
    %c0_154 = arith.constant 0 : index
    %c0_155 = arith.constant 0 : index
    %240 = vector.load %arg9[%c6_153, %c0_154, %c0_155] : memref<32x16x128xf32, #tpu.memory_space<vmem>>, vector<1x16x128xf32>
    %241 = vector.shape_cast %240 : vector<1x16x128xf32> to vector<16x128xf32>
    %242 = vector.shape_cast %239 : vector<16x128xf32> to vector<1x16x128xf32>
    tpu.vector_store %arg9[%c6_153, %c0_154, %c0_155], %242 {strides = array<i32>} : memref<32x16x128xf32, #tpu.memory_space<vmem>>, vector<1x16x128xf32>,
    %c22 = arith.constant 22 : index
    %c0_156 = arith.constant 0 : index
    %c0_157 = arith.constant 0 : index
    %243 = vector.load %arg9[%c22, %c0_156, %c0_157] : memref<32x16x128xf32, #tpu.memory_space<vmem>>, vector<1x16x128xf32>
    %244 = vector.shape_cast %243 : vector<1x16x128xf32> to vector<16x128xf32>
    %245 = arith.mulf %244, %230 : vector<16x128xf32>
    %c22_158 = arith.constant 22 : index
    %c0_159 = arith.constant 0 : index
    %c0_160 = arith.constant 0 : index
    %246 = vector.load %arg10[%c22_158, %c0_159, %c0_160] : memref<32x16x128xf32, #tpu.memory_space<vmem>>, vector<1x16x128xf32>
    %247 = vector.shape_cast %246 : vector<1x16x128xf32> to vector<16x128xf32>
    %248 = arith.addf %245, %247 : vector<16x128xf32>
    %c22_161 = arith.constant 22 : index
    %c0_162 = arith.constant 0 : index
    %c0_163 = arith.constant 0 : index
    %249 = vector.load %arg9[%c22_161, %c0_162, %c0_163] : memref<32x16x128xf32, #tpu.memory_space<vmem>>, vector<1x16x128xf32>
    %250 = vector.shape_cast %249 : vector<1x16x128xf32> to vector<16x128xf32>
    %251 = vector.shape_cast %248 : vector<16x128xf32> to vector<1x16x128xf32>
    tpu.vector_store %arg9[%c22_161, %c0_162, %c0_163], %251 {strides = array<i32>} : memref<32x16x128xf32, #tpu.memory_space<vmem>>, vector<1x16x128xf32>,
    %c7 = arith.constant 7 : index
    %c0_164 = arith.constant 0 : index
    %c0_165 = arith.constant 0 : index
    %252 = vector.load %arg9[%c7, %c0_164, %c0_165] : memref<32x16x128xf32, #tpu.memory_space<vmem>>, vector<1x16x128xf32>
    %253 = vector.shape_cast %252 : vector<1x16x128xf32> to vector<16x128xf32>
    %254 = arith.mulf %253, %239 : vector<16x128xf32>
    %c7_166 = arith.constant 7 : index
    %c0_167 = arith.constant 0 : index
    %c0_168 = arith.constant 0 : index
    %255 = vector.load %arg10[%c7_166, %c0_167, %c0_168] : memref<32x16x128xf32, #tpu.memory_space<vmem>>, vector<1x16x128xf32>
    %256 = vector.shape_cast %255 : vector<1x16x128xf32> to vector<16x128xf32>
    %257 = arith.addf %254, %256 : vector<16x128xf32>
    %c7_169 = arith.constant 7 : index
    %c0_170 = arith.constant 0 : index
    %c0_171 = arith.constant 0 : index
    %258 = vector.load %arg9[%c7_169, %c0_170, %c0_171] : memref<32x16x128xf32, #tpu.memory_space<vmem>>, vector<1x16x128xf32>
    %259 = vector.shape_cast %258 : vector<1x16x128xf32> to vector<16x128xf32>
    %260 = vector.shape_cast %257 : vector<16x128xf32> to vector<1x16x128xf32>
    tpu.vector_store %arg9[%c7_169, %c0_170, %c0_171], %260 {strides = array<i32>} : memref<32x16x128xf32, #tpu.memory_space<vmem>>, vector<1x16x128xf32>,
    %c23 = arith.constant 23 : index
    %c0_172 = arith.constant 0 : index
    %c0_173 = arith.constant 0 : index
    %261 = vector.load %arg9[%c23, %c0_172, %c0_173] : memref<32x16x128xf32, #tpu.memory_space<vmem>>, vector<1x16x128xf32>
    %262 = vector.shape_cast %261 : vector<1x16x128xf32> to vector<16x128xf32>
    %263 = arith.mulf %262, %248 : vector<16x128xf32>
    %c23_174 = arith.constant 23 : index
    %c0_175 = arith.constant 0 : index
    %c0_176 = arith.constant 0 : index
    %264 = vector.load %arg10[%c23_174, %c0_175, %c0_176] : memref<32x16x128xf32, #tpu.memory_space<vmem>>, vector<1x16x128xf32>
    %265 = vector.shape_cast %264 : vector<1x16x128xf32> to vector<16x128xf32>
    %266 = arith.addf %263, %265 : vector<16x128xf32>
    %c23_177 = arith.constant 23 : index
    %c0_178 = arith.constant 0 : index
    %c0_179 = arith.constant 0 : index
    %267 = vector.load %arg9[%c23_177, %c0_178, %c0_179] : memref<32x16x128xf32, #tpu.memory_space<vmem>>, vector<1x16x128xf32>
    %268 = vector.shape_cast %267 : vector<1x16x128xf32> to vector<16x128xf32>
    %269 = vector.shape_cast %266 : vector<16x128xf32> to vector<1x16x128xf32>
    tpu.vector_store %arg9[%c23_177, %c0_178, %c0_179], %269 {strides = array<i32>} : memref<32x16x128xf32, #tpu.memory_space<vmem>>, vector<1x16x128xf32>,
    %c8 = arith.constant 8 : index
    %c0_180 = arith.constant 0 : index
    %c0_181 = arith.constant 0 : index
    %270 = vector.load %arg9[%c8, %c0_180, %c0_181] : memref<32x16x128xf32, #tpu.memory_space<vmem>>, vector<1x16x128xf32>
    %271 = vector.shape_cast %270 : vector<1x16x128xf32> to vector<16x128xf32>
    %272 = arith.mulf %271, %257 : vector<16x128xf32>
    %c8_182 = arith.constant 8 : index
    %c0_183 = arith.constant 0 : index
    %c0_184 = arith.constant 0 : index
    %273 = vector.load %arg10[%c8_182, %c0_183, %c0_184] : memref<32x16x128xf32, #tpu.memory_space<vmem>>, vector<1x16x128xf32>
    %274 = vector.shape_cast %273 : vector<1x16x128xf32> to vector<16x128xf32>
    %275 = arith.addf %272, %274 : vector<16x128xf32>
    %c8_185 = arith.constant 8 : index
    %c0_186 = arith.constant 0 : index
    %c0_187 = arith.constant 0 : index
    %276 = vector.load %arg9[%c8_185, %c0_186, %c0_187] : memref<32x16x128xf32, #tpu.memory_space<vmem>>, vector<1x16x128xf32>
    %277 = vector.shape_cast %276 : vector<1x16x128xf32> to vector<16x128xf32>
    %278 = vector.shape_cast %275 : vector<16x128xf32> to vector<1x16x128xf32>
    tpu.vector_store %arg9[%c8_185, %c0_186, %c0_187], %278 {strides = array<i32>} : memref<32x16x128xf32, #tpu.memory_space<vmem>>, vector<1x16x128xf32>,
    %c24 = arith.constant 24 : index
    %c0_188 = arith.constant 0 : index
    %c0_189 = arith.constant 0 : index
    %279 = vector.load %arg9[%c24, %c0_188, %c0_189] : memref<32x16x128xf32, #tpu.memory_space<vmem>>, vector<1x16x128xf32>
    %280 = vector.shape_cast %279 : vector<1x16x128xf32> to vector<16x128xf32>
    %281 = arith.mulf %280, %266 : vector<16x128xf32>
    %c24_190 = arith.constant 24 : index
    %c0_191 = arith.constant 0 : index
    %c0_192 = arith.constant 0 : index
    %282 = vector.load %arg10[%c24_190, %c0_191, %c0_192] : memref<32x16x128xf32, #tpu.memory_space<vmem>>, vector<1x16x128xf32>
    %283 = vector.shape_cast %282 : vector<1x16x128xf32> to vector<16x128xf32>
    %284 = arith.addf %281, %283 : vector<16x128xf32>
    %c24_193 = arith.constant 24 : index
    %c0_194 = arith.constant 0 : index
    %c0_195 = arith.constant 0 : index
    %285 = vector.load %arg9[%c24_193, %c0_194, %c0_195] : memref<32x16x128xf32, #tpu.memory_space<vmem>>, vector<1x16x128xf32>
    %286 = vector.shape_cast %285 : vector<1x16x128xf32> to vector<16x128xf32>
    %287 = vector.shape_cast %284 : vector<16x128xf32> to vector<1x16x128xf32>
    tpu.vector_store %arg9[%c24_193, %c0_194, %c0_195], %287 {strides = array<i32>} : memref<32x16x128xf32, #tpu.memory_space<vmem>>, vector<1x16x128xf32>,
    %c9 = arith.constant 9 : index
    %c0_196 = arith.constant 0 : index
    %c0_197 = arith.constant 0 : index
    %288 = vector.load %arg9[%c9, %c0_196, %c0_197] : memref<32x16x128xf32, #tpu.memory_space<vmem>>, vector<1x16x128xf32>
    %289 = vector.shape_cast %288 : vector<1x16x128xf32> to vector<16x128xf32>
    %290 = arith.mulf %289, %275 : vector<16x128xf32>
    %c9_198 = arith.constant 9 : index
    %c0_199 = arith.constant 0 : index
    %c0_200 = arith.constant 0 : index
    %291 = vector.load %arg10[%c9_198, %c0_199, %c0_200] : memref<32x16x128xf32, #tpu.memory_space<vmem>>, vector<1x16x128xf32>
    %292 = vector.shape_cast %291 : vector<1x16x128xf32> to vector<16x128xf32>
    %293 = arith.addf %290, %292 : vector<16x128xf32>
    %c9_201 = arith.constant 9 : index
    %c0_202 = arith.constant 0 : index
    %c0_203 = arith.constant 0 : index
    %294 = vector.load %arg9[%c9_201, %c0_202, %c0_203] : memref<32x16x128xf32, #tpu.memory_space<vmem>>, vector<1x16x128xf32>
    %295 = vector.shape_cast %294 : vector<1x16x128xf32> to vector<16x128xf32>
    %296 = vector.shape_cast %293 : vector<16x128xf32> to vector<1x16x128xf32>
    tpu.vector_store %arg9[%c9_201, %c0_202, %c0_203], %296 {strides = array<i32>} : memref<32x16x128xf32, #tpu.memory_space<vmem>>, vector<1x16x128xf32>,
    %c25 = arith.constant 25 : index
    %c0_204 = arith.constant 0 : index
    %c0_205 = arith.constant 0 : index
    %297 = vector.load %arg9[%c25, %c0_204, %c0_205] : memref<32x16x128xf32, #tpu.memory_space<vmem>>, vector<1x16x128xf32>
    %298 = vector.shape_cast %297 : vector<1x16x128xf32> to vector<16x128xf32>
    %299 = arith.mulf %298, %284 : vector<16x128xf32>
    %c25_206 = arith.constant 25 : index
    %c0_207 = arith.constant 0 : index
    %c0_208 = arith.constant 0 : index
    %300 = vector.load %arg10[%c25_206, %c0_207, %c0_208] : memref<32x16x128xf32, #tpu.memory_space<vmem>>, vector<1x16x128xf32>
    %301 = vector.shape_cast %300 : vector<1x16x128xf32> to vector<16x128xf32>
    %302 = arith.addf %299, %301 : vector<16x128xf32>
    %c25_209 = arith.constant 25 : index
    %c0_210 = arith.constant 0 : index
    %c0_211 = arith.constant 0 : index
    %303 = vector.load %arg9[%c25_209, %c0_210, %c0_211] : memref<32x16x128xf32, #tpu.memory_space<vmem>>, vector<1x16x128xf32>
    %304 = vector.shape_cast %303 : vector<1x16x128xf32> to vector<16x128xf32>
    %305 = vector.shape_cast %302 : vector<16x128xf32> to vector<1x16x128xf32>
    tpu.vector_store %arg9[%c25_209, %c0_210, %c0_211], %305 {strides = array<i32>} : memref<32x16x128xf32, #tpu.memory_space<vmem>>, vector<1x16x128xf32>,
    %c10 = arith.constant 10 : index
    %c0_212 = arith.constant 0 : index
    %c0_213 = arith.constant 0 : index
    %306 = vector.load %arg9[%c10, %c0_212, %c0_213] : memref<32x16x128xf32, #tpu.memory_space<vmem>>, vector<1x16x128xf32>
    %307 = vector.shape_cast %306 : vector<1x16x128xf32> to vector<16x128xf32>
    %308 = arith.mulf %307, %293 : vector<16x128xf32>
    %c10_214 = arith.constant 10 : index
    %c0_215 = arith.constant 0 : index
    %c0_216 = arith.constant 0 : index
    %309 = vector.load %arg10[%c10_214, %c0_215, %c0_216] : memref<32x16x128xf32, #tpu.memory_space<vmem>>, vector<1x16x128xf32>
    %310 = vector.shape_cast %309 : vector<1x16x128xf32> to vector<16x128xf32>
    %311 = arith.addf %308, %310 : vector<16x128xf32>
    %c10_217 = arith.constant 10 : index
    %c0_218 = arith.constant 0 : index
    %c0_219 = arith.constant 0 : index
    %312 = vector.load %arg9[%c10_217, %c0_218, %c0_219] : memref<32x16x128xf32, #tpu.memory_space<vmem>>, vector<1x16x128xf32>
    %313 = vector.shape_cast %312 : vector<1x16x128xf32> to vector<16x128xf32>
    %314 = vector.shape_cast %311 : vector<16x128xf32> to vector<1x16x128xf32>
    tpu.vector_store %arg9[%c10_217, %c0_218, %c0_219], %314 {strides = array<i32>} : memref<32x16x128xf32, #tpu.memory_space<vmem>>, vector<1x16x128xf32>,
    %c26 = arith.constant 26 : index
    %c0_220 = arith.constant 0 : index
    %c0_221 = arith.constant 0 : index
    %315 = vector.load %arg9[%c26, %c0_220, %c0_221] : memref<32x16x128xf32, #tpu.memory_space<vmem>>, vector<1x16x128xf32>
    %316 = vector.shape_cast %315 : vector<1x16x128xf32> to vector<16x128xf32>
    %317 = arith.mulf %316, %302 : vector<16x128xf32>
    %c26_222 = arith.constant 26 : index
    %c0_223 = arith.constant 0 : index
    %c0_224 = arith.constant 0 : index
    %318 = vector.load %arg10[%c26_222, %c0_223, %c0_224] : memref<32x16x128xf32, #tpu.memory_space<vmem>>, vector<1x16x128xf32>
    %319 = vector.shape_cast %318 : vector<1x16x128xf32> to vector<16x128xf32>
    %320 = arith.addf %317, %319 : vector<16x128xf32>
    %c26_225 = arith.constant 26 : index
    %c0_226 = arith.constant 0 : index
    %c0_227 = arith.constant 0 : index
    %321 = vector.load %arg9[%c26_225, %c0_226, %c0_227] : memref<32x16x128xf32, #tpu.memory_space<vmem>>, vector<1x16x128xf32>
    %322 = vector.shape_cast %321 : vector<1x16x128xf32> to vector<16x128xf32>
    %323 = vector.shape_cast %320 : vector<16x128xf32> to vector<1x16x128xf32>
    tpu.vector_store %arg9[%c26_225, %c0_226, %c0_227], %323 {strides = array<i32>} : memref<32x16x128xf32, #tpu.memory_space<vmem>>, vector<1x16x128xf32>,
    %c11 = arith.constant 11 : index
    %c0_228 = arith.constant 0 : index
    %c0_229 = arith.constant 0 : index
    %324 = vector.load %arg9[%c11, %c0_228, %c0_229] : memref<32x16x128xf32, #tpu.memory_space<vmem>>, vector<1x16x128xf32>
    %325 = vector.shape_cast %324 : vector<1x16x128xf32> to vector<16x128xf32>
    %326 = arith.mulf %325, %311 : vector<16x128xf32>
    %c11_230 = arith.constant 11 : index
    %c0_231 = arith.constant 0 : index
    %c0_232 = arith.constant 0 : index
    %327 = vector.load %arg10[%c11_230, %c0_231, %c0_232] : memref<32x16x128xf32, #tpu.memory_space<vmem>>, vector<1x16x128xf32>
    %328 = vector.shape_cast %327 : vector<1x16x128xf32> to vector<16x128xf32>
    %329 = arith.addf %326, %328 : vector<16x128xf32>
    %c11_233 = arith.constant 11 : index
    %c0_234 = arith.constant 0 : index
    %c0_235 = arith.constant 0 : index
    %330 = vector.load %arg9[%c11_233, %c0_234, %c0_235] : memref<32x16x128xf32, #tpu.memory_space<vmem>>, vector<1x16x128xf32>
    %331 = vector.shape_cast %330 : vector<1x16x128xf32> to vector<16x128xf32>
    %332 = vector.shape_cast %329 : vector<16x128xf32> to vector<1x16x128xf32>
    tpu.vector_store %arg9[%c11_233, %c0_234, %c0_235], %332 {strides = array<i32>} : memref<32x16x128xf32, #tpu.memory_space<vmem>>, vector<1x16x128xf32>,
    %c27 = arith.constant 27 : index
    %c0_236 = arith.constant 0 : index
    %c0_237 = arith.constant 0 : index
    %333 = vector.load %arg9[%c27, %c0_236, %c0_237] : memref<32x16x128xf32, #tpu.memory_space<vmem>>, vector<1x16x128xf32>
    %334 = vector.shape_cast %333 : vector<1x16x128xf32> to vector<16x128xf32>
    %335 = arith.mulf %334, %320 : vector<16x128xf32>
    %c27_238 = arith.constant 27 : index
    %c0_239 = arith.constant 0 : index
    %c0_240 = arith.constant 0 : index
    %336 = vector.load %arg10[%c27_238, %c0_239, %c0_240] : memref<32x16x128xf32, #tpu.memory_space<vmem>>, vector<1x16x128xf32>
    %337 = vector.shape_cast %336 : vector<1x16x128xf32> to vector<16x128xf32>
    %338 = arith.addf %335, %337 : vector<16x128xf32>
    %c27_241 = arith.constant 27 : index
    %c0_242 = arith.constant 0 : index
    %c0_243 = arith.constant 0 : index
    %339 = vector.load %arg9[%c27_241, %c0_242, %c0_243] : memref<32x16x128xf32, #tpu.memory_space<vmem>>, vector<1x16x128xf32>
    %340 = vector.shape_cast %339 : vector<1x16x128xf32> to vector<16x128xf32>
    %341 = vector.shape_cast %338 : vector<16x128xf32> to vector<1x16x128xf32>
    tpu.vector_store %arg9[%c27_241, %c0_242, %c0_243], %341 {strides = array<i32>} : memref<32x16x128xf32, #tpu.memory_space<vmem>>, vector<1x16x128xf32>,
    %c12 = arith.constant 12 : index
    %c0_244 = arith.constant 0 : index
    %c0_245 = arith.constant 0 : index
    %342 = vector.load %arg9[%c12, %c0_244, %c0_245] : memref<32x16x128xf32, #tpu.memory_space<vmem>>, vector<1x16x128xf32>
    %343 = vector.shape_cast %342 : vector<1x16x128xf32> to vector<16x128xf32>
    %344 = arith.mulf %343, %329 : vector<16x128xf32>
    %c12_246 = arith.constant 12 : index
    %c0_247 = arith.constant 0 : index
    %c0_248 = arith.constant 0 : index
    %345 = vector.load %arg10[%c12_246, %c0_247, %c0_248] : memref<32x16x128xf32, #tpu.memory_space<vmem>>, vector<1x16x128xf32>
    %346 = vector.shape_cast %345 : vector<1x16x128xf32> to vector<16x128xf32>
    %347 = arith.addf %344, %346 : vector<16x128xf32>
    %c12_249 = arith.constant 12 : index
    %c0_250 = arith.constant 0 : index
    %c0_251 = arith.constant 0 : index
    %348 = vector.load %arg9[%c12_249, %c0_250, %c0_251] : memref<32x16x128xf32, #tpu.memory_space<vmem>>, vector<1x16x128xf32>
    %349 = vector.shape_cast %348 : vector<1x16x128xf32> to vector<16x128xf32>
    %350 = vector.shape_cast %347 : vector<16x128xf32> to vector<1x16x128xf32>
    tpu.vector_store %arg9[%c12_249, %c0_250, %c0_251], %350 {strides = array<i32>} : memref<32x16x128xf32, #tpu.memory_space<vmem>>, vector<1x16x128xf32>,
    %c28 = arith.constant 28 : index
    %c0_252 = arith.constant 0 : index
    %c0_253 = arith.constant 0 : index
    %351 = vector.load %arg9[%c28, %c0_252, %c0_253] : memref<32x16x128xf32, #tpu.memory_space<vmem>>, vector<1x16x128xf32>
    %352 = vector.shape_cast %351 : vector<1x16x128xf32> to vector<16x128xf32>
    %353 = arith.mulf %352, %338 : vector<16x128xf32>
    %c28_254 = arith.constant 28 : index
    %c0_255 = arith.constant 0 : index
    %c0_256 = arith.constant 0 : index
    %354 = vector.load %arg10[%c28_254, %c0_255, %c0_256] : memref<32x16x128xf32, #tpu.memory_space<vmem>>, vector<1x16x128xf32>
    %355 = vector.shape_cast %354 : vector<1x16x128xf32> to vector<16x128xf32>
    %356 = arith.addf %353, %355 : vector<16x128xf32>
    %c28_257 = arith.constant 28 : index
    %c0_258 = arith.constant 0 : index
    %c0_259 = arith.constant 0 : index
    %357 = vector.load %arg9[%c28_257, %c0_258, %c0_259] : memref<32x16x128xf32, #tpu.memory_space<vmem>>, vector<1x16x128xf32>
    %358 = vector.shape_cast %357 : vector<1x16x128xf32> to vector<16x128xf32>
    %359 = vector.shape_cast %356 : vector<16x128xf32> to vector<1x16x128xf32>
    tpu.vector_store %arg9[%c28_257, %c0_258, %c0_259], %359 {strides = array<i32>} : memref<32x16x128xf32, #tpu.memory_space<vmem>>, vector<1x16x128xf32>,
    %c13 = arith.constant 13 : index
    %c0_260 = arith.constant 0 : index
    %c0_261 = arith.constant 0 : index
    %360 = vector.load %arg9[%c13, %c0_260, %c0_261] : memref<32x16x128xf32, #tpu.memory_space<vmem>>, vector<1x16x128xf32>
    %361 = vector.shape_cast %360 : vector<1x16x128xf32> to vector<16x128xf32>
    %362 = arith.mulf %361, %347 : vector<16x128xf32>
    %c13_262 = arith.constant 13 : index
    %c0_263 = arith.constant 0 : index
    %c0_264 = arith.constant 0 : index
    %363 = vector.load %arg10[%c13_262, %c0_263, %c0_264] : memref<32x16x128xf32, #tpu.memory_space<vmem>>, vector<1x16x128xf32>
    %364 = vector.shape_cast %363 : vector<1x16x128xf32> to vector<16x128xf32>
    %365 = arith.addf %362, %364 : vector<16x128xf32>
    %c13_265 = arith.constant 13 : index
    %c0_266 = arith.constant 0 : index
    %c0_267 = arith.constant 0 : index
    %366 = vector.load %arg9[%c13_265, %c0_266, %c0_267] : memref<32x16x128xf32, #tpu.memory_space<vmem>>, vector<1x16x128xf32>
    %367 = vector.shape_cast %366 : vector<1x16x128xf32> to vector<16x128xf32>
    %368 = vector.shape_cast %365 : vector<16x128xf32> to vector<1x16x128xf32>
    tpu.vector_store %arg9[%c13_265, %c0_266, %c0_267], %368 {strides = array<i32>} : memref<32x16x128xf32, #tpu.memory_space<vmem>>, vector<1x16x128xf32>,
    %c29 = arith.constant 29 : index
    %c0_268 = arith.constant 0 : index
    %c0_269 = arith.constant 0 : index
    %369 = vector.load %arg9[%c29, %c0_268, %c0_269] : memref<32x16x128xf32, #tpu.memory_space<vmem>>, vector<1x16x128xf32>
    %370 = vector.shape_cast %369 : vector<1x16x128xf32> to vector<16x128xf32>
    %371 = arith.mulf %370, %356 : vector<16x128xf32>
    %c29_270 = arith.constant 29 : index
    %c0_271 = arith.constant 0 : index
    %c0_272 = arith.constant 0 : index
    %372 = vector.load %arg10[%c29_270, %c0_271, %c0_272] : memref<32x16x128xf32, #tpu.memory_space<vmem>>, vector<1x16x128xf32>
    %373 = vector.shape_cast %372 : vector<1x16x128xf32> to vector<16x128xf32>
    %374 = arith.addf %371, %373 : vector<16x128xf32>
    %c29_273 = arith.constant 29 : index
    %c0_274 = arith.constant 0 : index
    %c0_275 = arith.constant 0 : index
    %375 = vector.load %arg9[%c29_273, %c0_274, %c0_275] : memref<32x16x128xf32, #tpu.memory_space<vmem>>, vector<1x16x128xf32>
    %376 = vector.shape_cast %375 : vector<1x16x128xf32> to vector<16x128xf32>
    %377 = vector.shape_cast %374 : vector<16x128xf32> to vector<1x16x128xf32>
    tpu.vector_store %arg9[%c29_273, %c0_274, %c0_275], %377 {strides = array<i32>} : memref<32x16x128xf32, #tpu.memory_space<vmem>>, vector<1x16x128xf32>,
    %c14 = arith.constant 14 : index
    %c0_276 = arith.constant 0 : index
    %c0_277 = arith.constant 0 : index
    %378 = vector.load %arg9[%c14, %c0_276, %c0_277] : memref<32x16x128xf32, #tpu.memory_space<vmem>>, vector<1x16x128xf32>
    %379 = vector.shape_cast %378 : vector<1x16x128xf32> to vector<16x128xf32>
    %380 = arith.mulf %379, %365 : vector<16x128xf32>
    %c14_278 = arith.constant 14 : index
    %c0_279 = arith.constant 0 : index
    %c0_280 = arith.constant 0 : index
    %381 = vector.load %arg10[%c14_278, %c0_279, %c0_280] : memref<32x16x128xf32, #tpu.memory_space<vmem>>, vector<1x16x128xf32>
    %382 = vector.shape_cast %381 : vector<1x16x128xf32> to vector<16x128xf32>
    %383 = arith.addf %380, %382 : vector<16x128xf32>
    %c14_281 = arith.constant 14 : index
    %c0_282 = arith.constant 0 : index
    %c0_283 = arith.constant 0 : index
    %384 = vector.load %arg9[%c14_281, %c0_282, %c0_283] : memref<32x16x128xf32, #tpu.memory_space<vmem>>, vector<1x16x128xf32>
    %385 = vector.shape_cast %384 : vector<1x16x128xf32> to vector<16x128xf32>
    %386 = vector.shape_cast %383 : vector<16x128xf32> to vector<1x16x128xf32>
    tpu.vector_store %arg9[%c14_281, %c0_282, %c0_283], %386 {strides = array<i32>} : memref<32x16x128xf32, #tpu.memory_space<vmem>>, vector<1x16x128xf32>,
    %c30 = arith.constant 30 : index
    %c0_284 = arith.constant 0 : index
    %c0_285 = arith.constant 0 : index
    %387 = vector.load %arg9[%c30, %c0_284, %c0_285] : memref<32x16x128xf32, #tpu.memory_space<vmem>>, vector<1x16x128xf32>
    %388 = vector.shape_cast %387 : vector<1x16x128xf32> to vector<16x128xf32>
    %389 = arith.mulf %388, %374 : vector<16x128xf32>
    %c30_286 = arith.constant 30 : index
    %c0_287 = arith.constant 0 : index
    %c0_288 = arith.constant 0 : index
    %390 = vector.load %arg10[%c30_286, %c0_287, %c0_288] : memref<32x16x128xf32, #tpu.memory_space<vmem>>, vector<1x16x128xf32>
    %391 = vector.shape_cast %390 : vector<1x16x128xf32> to vector<16x128xf32>
    %392 = arith.addf %389, %391 : vector<16x128xf32>
    %c30_289 = arith.constant 30 : index
    %c0_290 = arith.constant 0 : index
    %c0_291 = arith.constant 0 : index
    %393 = vector.load %arg9[%c30_289, %c0_290, %c0_291] : memref<32x16x128xf32, #tpu.memory_space<vmem>>, vector<1x16x128xf32>
    %394 = vector.shape_cast %393 : vector<1x16x128xf32> to vector<16x128xf32>
    %395 = vector.shape_cast %392 : vector<16x128xf32> to vector<1x16x128xf32>
    tpu.vector_store %arg9[%c30_289, %c0_290, %c0_291], %395 {strides = array<i32>} : memref<32x16x128xf32, #tpu.memory_space<vmem>>, vector<1x16x128xf32>,
    %c15 = arith.constant 15 : index
    %c0_292 = arith.constant 0 : index
    %c0_293 = arith.constant 0 : index
    %396 = vector.load %arg9[%c15, %c0_292, %c0_293] : memref<32x16x128xf32, #tpu.memory_space<vmem>>, vector<1x16x128xf32>
    %397 = vector.shape_cast %396 : vector<1x16x128xf32> to vector<16x128xf32>
    %398 = arith.mulf %397, %383 : vector<16x128xf32>
    %c15_294 = arith.constant 15 : index
    %c0_295 = arith.constant 0 : index
    %c0_296 = arith.constant 0 : index
    %399 = vector.load %arg10[%c15_294, %c0_295, %c0_296] : memref<32x16x128xf32, #tpu.memory_space<vmem>>, vector<1x16x128xf32>
    %400 = vector.shape_cast %399 : vector<1x16x128xf32> to vector<16x128xf32>
    %401 = arith.addf %398, %400 : vector<16x128xf32>
    %c15_297 = arith.constant 15 : index
    %c0_298 = arith.constant 0 : index
    %c0_299 = arith.constant 0 : index
    %402 = vector.load %arg9[%c15_297, %c0_298, %c0_299] : memref<32x16x128xf32, #tpu.memory_space<vmem>>, vector<1x16x128xf32>
    %403 = vector.shape_cast %402 : vector<1x16x128xf32> to vector<16x128xf32>
    %404 = vector.shape_cast %401 : vector<16x128xf32> to vector<1x16x128xf32>
    tpu.vector_store %arg9[%c15_297, %c0_298, %c0_299], %404 {strides = array<i32>} : memref<32x16x128xf32, #tpu.memory_space<vmem>>, vector<1x16x128xf32>,
    %c31 = arith.constant 31 : index
    %c0_300 = arith.constant 0 : index
    %c0_301 = arith.constant 0 : index
    %405 = vector.load %arg9[%c31, %c0_300, %c0_301] : memref<32x16x128xf32, #tpu.memory_space<vmem>>, vector<1x16x128xf32>
    %406 = vector.shape_cast %405 : vector<1x16x128xf32> to vector<16x128xf32>
    %407 = arith.mulf %406, %392 : vector<16x128xf32>
    %c31_302 = arith.constant 31 : index
    %c0_303 = arith.constant 0 : index
    %c0_304 = arith.constant 0 : index
    %408 = vector.load %arg10[%c31_302, %c0_303, %c0_304] : memref<32x16x128xf32, #tpu.memory_space<vmem>>, vector<1x16x128xf32>
    %409 = vector.shape_cast %408 : vector<1x16x128xf32> to vector<16x128xf32>
    %410 = arith.addf %407, %409 : vector<16x128xf32>
    %c31_305 = arith.constant 31 : index
    %c0_306 = arith.constant 0 : index
    %c0_307 = arith.constant 0 : index
    %411 = vector.load %arg9[%c31_305, %c0_306, %c0_307] : memref<32x16x128xf32, #tpu.memory_space<vmem>>, vector<1x16x128xf32>
    %412 = vector.shape_cast %411 : vector<1x16x128xf32> to vector<16x128xf32>
    %413 = vector.shape_cast %410 : vector<16x128xf32> to vector<1x16x128xf32>
    tpu.vector_store %arg9[%c31_305, %c0_306, %c0_307], %413 {strides = array<i32>} : memref<32x16x128xf32, #tpu.memory_space<vmem>>, vector<1x16x128xf32>,
    %c0_308 = arith.constant 0 : index
    %c0_309 = arith.constant 0 : index
    %c0_310 = arith.constant 0 : index
    %414 = vector.load %arg9[%c0_308, %c0_309, %c0_310] : memref<32x16x128xf32, #tpu.memory_space<vmem>>, vector<16x16x128xf32>
    %415 = vector.extract_strided_slice %86 {offsets = [0, 0], sizes = [16, 16], strides = [1, 1]} : vector<32x16xf32> to vector<16x16xf32>
    %416 = vector.shape_cast %415 : vector<16x16xf32> to vector<16x16x1xf32>
    %417 = vector.broadcast %416 : vector<16x16x1xf32> to vector<16x16x128xf32>
    %418 = arith.mulf %414, %417 : vector<16x16x128xf32>
    %cst_311 = arith.constant dense<0.000000e+00> : vector<16x128xf32>
    %419 = vector.multi_reduction <add>, %418, %cst_311 [1] : vector<16x16x128xf32> to vector<16x128xf32>
    %c16_312 = arith.constant 16 : index
    %c0_313 = arith.constant 0 : index
    %c0_314 = arith.constant 0 : index
    %420 = vector.load %arg9[%c16_312, %c0_313, %c0_314] : memref<32x16x128xf32, #tpu.memory_space<vmem>>, vector<16x16x128xf32>
    %421 = vector.extract_strided_slice %86 {offsets = [16, 0], sizes = [16, 16], strides = [1, 1]} : vector<32x16xf32> to vector<16x16xf32>
    %422 = vector.shape_cast %421 : vector<16x16xf32> to vector<16x16x1xf32>
    %423 = vector.broadcast %422 : vector<16x16x1xf32> to vector<16x16x128xf32>
    %424 = arith.mulf %420, %423 : vector<16x16x128xf32>
    %cst_315 = arith.constant dense<0.000000e+00> : vector<16x128xf32>
    %425 = vector.multi_reduction <add>, %424, %cst_315 [1] : vector<16x16x128xf32> to vector<16x128xf32>
    %426 = tpu.concatenate %419, %425 in 0 : vector<16x128xf32>, vector<16x128xf32> -> vector<32x128xf32>
    %c6_316 = arith.constant 6 : index
    %c0_317 = arith.constant 0 : index
    %427 = vector.load %arg3[%c6_316, %c0_317] : memref<7x128xf32, #tpu.memory_space<vmem>>, vector<1x128xf32>
    %428 = vector.broadcast %427 : vector<1x128xf32> to vector<32x128xf32>
    %429 = arith.mulf %428, %63 : vector<32x128xf32>
    %430 = arith.addf %426, %429 : vector<32x128xf32>
    %431 = arith.negf %4 : vector<32x128xf32>
    %432 = math.exp %431 : vector<32x128xf32>
    %cst_318 = arith.constant 1.000000e+00 : f32
    %433 = vector.broadcast %cst_318 : f32 to vector<32x128xf32>
    %434 = arith.addf %433, %432 : vector<32x128xf32>
    %435 = arith.divf %433, %434 : vector<32x128xf32>
    %436 = arith.mulf %4, %435 : vector<32x128xf32>
    %437 = arith.mulf %430, %436 : vector<32x128xf32>
    %c0_319 = arith.constant 0 : index
    %c0_320 = arith.constant 0 : index
    %438 = vector.load %arg7[%c0_319, %c0_320] : memref<128x64xf32, #tpu.memory_space<vmem>>, vector<128x64xf32>
    %cst_321 = arith.constant dense<0.000000e+00> : vector<32x64xf32>
    %439 = tpu.matmul %437, %438, %cst_321 {dimension_numbers = #tpu.dot_dimension_numbers<[1], [0], [0], [1], [0, 0, 1, 1], [], []>} : vector<32x128xf32>, vector<128x64xf32>, vector<32x64xf32> -> vector<32x64xf32>
    %440 = vector.extract_strided_slice %439 {offsets = [0, 0], sizes = [16, 64], strides = [1, 1]} : vector<32x64xf32> to vector<16x64xf32>
    %441 = vector.extract_strided_slice %439 {offsets = [16, 0], sizes = [16, 64], strides = [1, 1]} : vector<32x64xf32> to vector<16x64xf32>
    %442 = tpu.concatenate %440, %441 in 1 : vector<16x64xf32>, vector<16x64xf32> -> vector<16x128xf32>
    %c0_322 = arith.constant 0 : index
    %c0_323 = arith.constant 0 : index
    %443 = vector.load %arg8[%c0_322, %c0_323] : memref<16x128xf32, #tpu.memory_space<vmem>>, vector<16x128xf32>
    tpu.vector_store %arg8[%c0_322, %c0_323], %442 {strides = array<i32>} : memref<16x128xf32, #tpu.memory_space<vmem>>, vector<16x128xf32>,
    return
  }
  func.func @transform_0(%arg0: i32) -> (i32, i32) {
    %c0_i32 = arith.constant 0 : i32
    %c0_i32_0 = arith.constant 0 : i32
    %c0_i32_1 = arith.constant 0 : i32
    return %c0_i32, %c0_i32_0 : i32, i32
  }
  func.func @transform_1(%arg0: i32) -> (i32, i32) {
    %c0_i32 = arith.constant 0 : i32
    %c0_i32_0 = arith.constant 0 : i32
    %c0_i32_1 = arith.constant 0 : i32
    return %c0_i32, %c0_i32_0 : i32, i32
  }
  func.func @transform_2(%arg0: i32) -> (i32, i32) {
    %c0_i32 = arith.constant 0 : i32
    %c0_i32_0 = arith.constant 0 : i32
    %c0_i32_1 = arith.constant 0 : i32
    return %c0_i32, %c0_i32_0 : i32, i32
  }
  func.func @transform_3(%arg0: i32) -> (i32, i32) {
    %c0_i32 = arith.constant 0 : i32
    %c0_i32_0 = arith.constant 0 : i32
    %c0_i32_1 = arith.constant 0 : i32
    return %c0_i32, %c0_i32_0 : i32, i32
  }
  func.func @transform_4(%arg0: i32) -> (i32, i32) {
    %c0_i32 = arith.constant 0 : i32
    %c0_i32_0 = arith.constant 0 : i32
    %c0_i32_1 = arith.constant 0 : i32
    return %c0_i32, %c0_i32_0 : i32, i32
  }
  func.func @transform_5(%arg0: i32) -> (i32, i32) {
    %c0_i32 = arith.constant 0 : i32
    %c0_i32_0 = arith.constant 0 : i32
    %c0_i32_1 = arith.constant 0 : i32
    return %c0_i32, %c0_i32_0 : i32, i32
  }
  func.func @transform_6(%arg0: i32) -> (i32, i32) {
    %c0_i32 = arith.constant 0 : i32
    %c0_i32_0 = arith.constant 0 : i32
    %c0_i32_1 = arith.constant 0 : i32
    return %c0_i32, %c0_i32_0 : i32, i32
  }
  func.func @transform_7(%arg0: i32) -> (i32, i32) {
    %c0_i32 = arith.constant 0 : i32
    %c0_i32_0 = arith.constant 0 : i32
    %c0_i32_1 = arith.constant 0 : i32
    return %c0_i32, %c0_i32_0 : i32, i32
  }
}

</mosaic_0001>

<bundles_post_ra>
// kernel: tpu_custom_call.1
= control target key start
LH: loop header
LB: loop body
LE: loop exit
PB: predicated region body
PF: predicated region fallthrough
CT: control target
= control target key end

     0   :  { %12 = vsyncpa [#allocation5], 0  ;;  %s5250_s0 = inlined_call_operand.vmem [shape: f32[32,64], index: 0, kind: input, shape index: {}]   ;;  %s5251_s1 = inlined_call_operand.vmem [shape: f32[64,256], index: 1, kind: input, shape index: {}]   ;;  %s5252_s2 = inlined_call_operand.hbm [shape: f32[7,128], index: 2, kind: input, shape index: {}]   ;;  %s5253_s3 = inlined_call_operand.vmem [shape: f32[128,128], index: 3, kind: input, shape index: {}]   ;;  %s5254_s4 = inlined_call_operand.vmem [shape: f32[128,32], index: 4, kind: input, shape index: {}]   ;;  %s5255_s5 = inlined_call_operand.hbm [shape: f32[16,128], index: 5, kind: input, shape index: {}]   ;;  %s5256_s6 = inlined_call_operand.vmem [shape: f32[128,64], index: 6, kind: input, shape index: {}]   ;;  %s5257_s7 = inlined_call_operand.hbm [shape: f32[16,128], index: 7, kind: output, shape index: {}]  }
   0x1   :  { %13 = vsyncpa [#allocation8], 0 }
   0x2   :  { %14 = vsyncpa [#allocation6], 0  ;;  %s3757_s24 = smov [#allocation4]   ;;  %s3758_s26 = smov [#allocation7]  }
   0x3   :  { %s25_s25 = sshll.u32 %s3757_s24, 4  ;;  %s38_s27 = sshll.u32 %s3758_s26, 4  ;;  %s26_s25 = int_to_ptr.vmem [resolvable:$true] %s25_s25  ;;  %s39_s27 = int_to_ptr.vmem [resolvable:$true] %s38_s27 }
   0x4   :  { %s3699_s28 = scalar_lea.vmem %s26_s25, 128  ;;  %p3704_p1 = scmp.lt.s32.totalorder %s26_s25, %s26_s25 }
   0x5   :  { %p3700_p0 = scmp.ne.s32.totalorder %s26_s25, %s3699_s28  ;;  %p3705_p2 = scmp.lt.s32.totalorder %s3699_s28, %s3699_s28 }
   0x7   :  { %p3706_p3 = por %p3705_p2, %p3704_p1 }
   0x9   :  { %p3707_p4 = pnand %p3706_p3, %p3700_p0 }
   0xb   :  { %3710 = shalt.err (!%p3707_p4)
}
   0xc   :  { %28 = dma.hbm_to_vmem [thread:$0]  %s5252_s2, 128, %s26_s25, [#allocation5]  }
   0xd   :  { %s3719_s8 = scalar_lea.vmem %s39_s27, 256  ;;  %p3724_p6 = scmp.lt.s32.totalorder %s39_s27, %s39_s27 }
   0xe   :  { %p3720_p5 = scmp.ne.s32.totalorder %s39_s27, %s3719_s8  ;;  %p3725_p7 = scmp.lt.s32.totalorder %s3719_s8, %s3719_s8 }
  0x10   :  { %p3726_p8 = por %p3725_p7, %p3724_p6 }
  0x12   :  { %p3727_p9 = pnand %p3726_p8, %p3720_p5 }
  0x14   :  { %3730 = shalt.err (!%p3727_p9)
}
  0x15   :  { %s3759_s9 = smov 128   ;;  %s3760_s10 = smov 8  }
  0x16   :  { %44 = dma.hbm_to_vmem [thread:$0]  %s5255_s5, 256, %s39_s27, [#allocation8], %s3759_s9, %s3759_s9, %s3760_s10  }
  0x17   :  { %3751 = dma.done.wait [#allocation5], 128  }
  0x18   :  { %3752 = vsyncadd [#allocation5], 4294967168 }
  0x19   :  { %3753 = dma.done.wait [#allocation8], 256  }
  0x1a   :  { %3754 = vsyncadd [#allocation8], 4294967040  ;;  %v3761_v0 = vmov 0.0   ;;  %v72_v1 = vld [vmem:[%s5251_s1 + $0x78] sm:$0xff]  ;;  %v71_v2 = vld [vmem:[%s5251_s1 + $0x70] sm:$0xff]  ;;  %vm73_vm0 = vcmask 523264  }
  0x1b   :  { %150 = vmatprep.mubr.f32.mxu0 %v3761_v0  ;;  %v70_v3 = vld [vmem:[%s5251_s1 + $0x68] sm:$0xff]  ;;  %102 = vmatprep.subr.mxu0 %v72_v1  ;;  %v69_v4 = vld [vmem:[%s5251_s1 + $0x60] sm:$0xff]  ;;  %v68_v5 = vld [vmem:[%s5251_s1 + $0x58] sm:$0xff]  ;;  %vm178_vm1 = vcmask 1042432   ;;  %vm219_vm2 = vcmask 1046528   ;;  %vm240_vm3 = vcmask 1045504  }
  0x1c   :  { %103 = vmatpush1.msra.mxu0 %v71_v2  ;;  %v67_v6 = vld [vmem:[%s5251_s1 + $0x50] sm:$0xff]  ;;  %v66_v7 = vld [vmem:[%s5251_s1 + $0x48] sm:$0xff]  ;;  %v65_v8 = vld [vmem:[%s5251_s1 + $0x40] sm:$0xff]  ;;  %vm3078_vm11 = vcmask 1041409   ;;  %vm3080_vm12 = vcmask 1042434   ;;  %vm3082_vm13 = vcmask 1043459  }
  0x1d   :  { %104 = vmatprep.subr.mxu0 %v70_v3  ;;  %v64_v9 = vld [vmem:[%s5251_s1 + $0x38] sm:$0xff]  ;;  %v63_v10 = vld [vmem:[%s5251_s1 + $0x30] sm:$0xff]  ;;  %v62_v11 = vld [vmem:[%s5251_s1 + $0x28] sm:$0xff]  ;;  %vm3084_vm14 = vcmask 1044484   ;;  %vm3086_vm15 = vcmask 1045509   ;;  %s3764_s20 = smov [#allocation9]  }
  0x1e   :  { %105 = vmatpush1.msra.mxu0 %v69_v4  ;;  %v61_v12 = vld [vmem:[%s5251_s1 + $0x20] sm:$0xff]  ;;  %v60_v13 = vld [vmem:[%s5251_s1 + $0x18] sm:$0xff]  ;;  %v59_v14 = vld [vmem:[%s5251_s1 + $0x10] sm:$0xff]  ;;  %s3296_s21 = sshll.u32 %s3764_s20, 4  ;;  %s3297_s21 = int_to_ptr.vmem [resolvable:$true] %s3296_s21 }
  0x1f   :  { %106 = vmatprep.subr.mxu0 %v68_v5  ;;  %v58_v15 = vld [vmem:[%s5251_s1 + $0x8] sm:$0xff]  ;;  %v57_v16 = vld [vmem:[%s5251_s1] sm:$0xff]  ;;  %v55_v19 = vld [vmem:[%s5250_s0 + $0x10] sm:$0xff]  ;;  %s3731_s22 = scalar_lea.vmem %s3297_s21, 256  ;;  %p3736_p11 = scmp.lt.s32.totalorder %s3297_s21, %s3297_s21 }
  0x20   :  { %107 = vmatpush1.msra.mxu0 %v67_v6  ;;  %v53_v17 = vld [vmem:[%s5250_s0] sm:$0xff]  ;;  %v54_v18 = vld [vmem:[%s5250_s0 + $0x8] sm:$0xff]  ;;  %v56_v20 = vld [vmem:[%s5250_s0 + $0x18] sm:$0xff]  ;;  %p3732_p10 = scmp.ne.s32.totalorder %s3297_s21, %s3731_s22  ;;  %p3737_p12 = scmp.lt.s32.totalorder %s3731_s22, %s3731_s22 }
  0x21   :  { %108 = vmatprep.subr.mxu0 %v66_v7  ;;  %v341_v21 = vld [vmem:[%s5253_s3 + $0x78] sm:$0xff]  ;;  %v340_v23 = vld [vmem:[%s5253_s3 + $0x70] sm:$0xff]  ;;  %v339_v25 = vld [vmem:[%s5253_s3 + $0x68] sm:$0xff] }
  0x22   :  { %109 = vmatpush1.msra.mxu0 %v65_v8  ;;  %v518_v22 = vld [vmem:[%s5254_s4 + $0x78] sm:$0xff]  ;;  %3388 = vmatprep.subr.mxu1 %v341_v21  ;;  %v517_v24 = vld [vmem:[%s5254_s4 + $0x70] sm:$0xff]  ;;  %v516_v26 = vld [vmem:[%s5254_s4 + $0x68] sm:$0xff]  ;;  %p3738_p13 = por %p3737_p12, %p3736_p11 }
  0x23   :  { %110 = vmatprep.subr.mxu0 %v64_v9  ;;  %3389 = vmatpush3.msra.mxu1 %v341_v21  ;;  %v338_v27 = vld [vmem:[%s5253_s3 + $0x60] sm:$0xff]  ;;  %v337_v29 = vld [vmem:[%s5253_s3 + $0x58] sm:$0xff]  ;;  %v336_v31 = vld [vmem:[%s5253_s3 + $0x50] sm:$0xff] }
  0x24   :  { %111 = vmatpush1.msra.mxu0 %v63_v10  ;;  %3390 = vmatprep.subr.mxu1 %v340_v23  ;;  %v515_v28 = vld [vmem:[%s5254_s4 + $0x60] sm:$0xff]  ;;  %v514_v30 = vld [vmem:[%s5254_s4 + $0x58] sm:$0xff]  ;;  %v513_v32 = vld [vmem:[%s5254_s4 + $0x50] sm:$0xff]  ;;  %p3739_p0 = pnand %p3738_p13, %p3732_p10 }
  0x25   :  { %112 = vmatprep.subr.mxu0 %v62_v11  ;;  %3391 = vmatpush3.msra.mxu1 %v340_v23  ;;  %v335_v33 = vld [vmem:[%s5253_s3 + $0x48] sm:$0xff]  ;;  %v334_v35 = vld [vmem:[%s5253_s3 + $0x40] sm:$0xff]  ;;  %v333_v37 = vld [vmem:[%s5253_s3 + $0x38] sm:$0xff] }
  0x26   :  { %113 = vmatpush1.msra.mxu0 %v61_v12  ;;  %3392 = vmatprep.subr.mxu1 %v339_v25  ;;  %v512_v34 = vld [vmem:[%s5254_s4 + $0x48] sm:$0xff]  ;;  %v511_v36 = vld [vmem:[%s5254_s4 + $0x40] sm:$0xff]  ;;  %v510_v38 = vld [vmem:[%s5254_s4 + $0x38] sm:$0xff] }
  0x27   :  { %114 = vmatprep.subr.mxu0 %v60_v13  ;;  %3393 = vmatpush3.msra.mxu1 %v339_v25  ;;  %v332_v39 = vld [vmem:[%s5253_s3 + $0x30] sm:$0xff]  ;;  %v331_v41 = vld [vmem:[%s5253_s3 + $0x28] sm:$0xff]  ;;  %v330_v43 = vld [vmem:[%s5253_s3 + $0x20] sm:$0xff] }
  0x28   :  { %115 = vmatpush1.msra.mxu0 %v59_v14  ;;  %3394 = vmatprep.subr.mxu1 %v338_v27  ;;  %v509_v40 = vld [vmem:[%s5254_s4 + $0x30] sm:$0xff]  ;;  %v508_v42 = vld [vmem:[%s5254_s4 + $0x28] sm:$0xff]  ;;  %v507_v44 = vld [vmem:[%s5254_s4 + $0x20] sm:$0xff] }
  0x29   :  { %116 = vmatprep.subr.mxu0 %v58_v15  ;;  %3395 = vmatpush3.msra.mxu1 %v338_v27  ;;  %v329_v45 = vld [vmem:[%s5253_s3 + $0x18] sm:$0xff]  ;;  %v328_v47 = vld [vmem:[%s5253_s3 + $0x10] sm:$0xff]  ;;  %v327_v49 = vld [vmem:[%s5253_s3 + $0x8] sm:$0xff] }
  0x2a   :  { %117 = vmatpush1.msra.mxu0 %v57_v16  ;;  %3396 = vmatprep.subr.mxu1 %v337_v29  ;;  %v506_v46 = vld [vmem:[%s5254_s4 + $0x18] sm:$0xff]  ;;  %v505_v48 = vld [vmem:[%s5254_s4 + $0x10] sm:$0xff]  ;;  %v504_v50 = vld [vmem:[%s5254_s4 + $0x8] sm:$0xff] }
  0x2b   :  { %3309 = vmatmul.mubr.msk.f32.vlgmr.msra.gmra.mxu0 %vm73_vm0, %v53_v17  ;;  %3426 = vmatprep.subr.mxu0 %v518_v22  ;;  %v326_v51 = vld [vmem:[%s5253_s3] sm:$0xff] }
  0x2c   :  { %156 = vmatprep.mubr.f32.mxu0 %v3761_v0  ;;  %3427 = vmatpush3.msra.mxu0 %v518_v22  ;;  %v503_v52 = vld [vmem:[%s5254_s4] sm:$0xff] }
  0x2d   :  { %3428 = vmatprep.subr.mxu0 %v517_v24  ;;  %3397 = vmatpush3.msra.mxu1 %v337_v29  ;;  %v3313_v53 = vld [vmem:[#allocation4 + $0x3] ss:$0 sm:$0xff]  ;;  %v3314_v56 = vld [vmem:[#allocation4 + $0x4] ss:$0 sm:$0xff]  ;;  %v3315_v58 = vld [vmem:[#allocation4] ss:$0 sm:$0xff] }
  0x2e   :  { %3429 = vmatpush3.msra.mxu0 %v517_v24  ;;  %3398 = vmatprep.subr.mxu1 %v336_v31  ;;  %v3316_v61 = vld [vmem:[#allocation4 + $0x1] ss:$0 sm:$0xff]  ;;  %v3317_v62 = vld [vmem:[#allocation4 + $0x2] ss:$0 sm:$0xff] }
  0x2f   :  { %3310 = vmatmul.mubr.msk.f32.gmra.mxu0 %vm73_vm0, %v54_v18  ;;  %3430 = vmatprep.subr.mxu0 %v516_v26 }
  0x30   :  { %162 = vmatprep.mubr.f32.mxu0 %v3761_v0  ;;  %3431 = vmatpush3.msra.mxu0 %v516_v26 }
  0x31   :  { %3432 = vmatprep.subr.mxu0 %v515_v28  ;;  %3399 = vmatpush3.msra.mxu1 %v336_v31 }
  0x32   :  { %3433 = vmatpush3.msra.mxu0 %v515_v28  ;;  %3400 = vmatprep.subr.mxu1 %v335_v33 }
  0x33   :  { %3311 = vmatmul.mubr.msk.f32.gmra.mxu0 %vm73_vm0, %v55_v19  ;;  %3434 = vmatprep.subr.mxu0 %v514_v30 }
  0x34   :  { %168 = vmatprep.mubr.f32.mxu0 %v3761_v0  ;;  %3435 = vmatpush3.msra.mxu0 %v514_v30 }
  0x35   :  { %3436 = vmatprep.subr.mxu0 %v513_v32  ;;  %3401 = vmatpush3.msra.mxu1 %v335_v33 }
  0x36   :  { %3437 = vmatpush3.msra.mxu0 %v513_v32  ;;  %3402 = vmatprep.subr.mxu1 %v334_v35 }
  0x37   :  { %3312 = vmatmul.mubr.msk.f32.gmra.mxu0 %vm73_vm0, %v56_v20  ;;  %3438 = vmatprep.subr.mxu0 %v512_v34 }
  0x38   :  { %3439 = vmatpush3.msra.mxu0 %v512_v34  ;;  %3403 = vmatpush3.msra.mxu1 %v334_v35 }
  0x39   :  { %3440 = vmatprep.subr.mxu0 %v511_v36  ;;  %3404 = vmatprep.subr.mxu1 %v333_v37 }
  0x3a   :  { %3441 = vmatpush3.msra.mxu0 %v511_v36  ;;  %3405 = vmatpush3.msra.mxu1 %v333_v37 }
  0x3b   :  { %3442 = vmatprep.subr.mxu0 %v510_v38  ;;  %3406 = vmatprep.subr.mxu1 %v332_v39 }
  0x3c   :  { %3443 = vmatpush3.msra.mxu0 %v510_v38  ;;  %3407 = vmatpush3.msra.mxu1 %v332_v39 }
  0x3d   :  { %3444 = vmatprep.subr.mxu0 %v509_v40  ;;  %3408 = vmatprep.subr.mxu1 %v331_v41 }
  0x3e   :  { %3445 = vmatpush3.msra.mxu0 %v509_v40  ;;  %3409 = vmatpush3.msra.mxu1 %v331_v41 }
  0x3f   :  { %3446 = vmatprep.subr.mxu0 %v508_v42  ;;  %3410 = vmatprep.subr.mxu1 %v330_v43 }
  0x40   :  { %3447 = vmatpush3.msra.mxu0 %v508_v42  ;;  %3411 = vmatpush3.msra.mxu1 %v330_v43 }
  0x41   :  { %3448 = vmatprep.subr.mxu0 %v507_v44  ;;  %3412 = vmatprep.subr.mxu1 %v329_v45 }
  0x42   :  { %3449 = vmatpush3.msra.mxu0 %v507_v44  ;;  %3413 = vmatpush3.msra.mxu1 %v329_v45 }
  0x43   :  { %3450 = vmatprep.subr.mxu0 %v506_v46  ;;  %3414 = vmatprep.subr.mxu1 %v328_v47 }
  0x44   :  { %3451 = vmatpush3.msra.mxu0 %v506_v46  ;;  %3415 = vmatpush3.msra.mxu1 %v328_v47 }
  0x45   :  { %3452 = vmatprep.subr.mxu0 %v505_v48  ;;  %3416 = vmatprep.subr.mxu1 %v327_v49 }
  0x46   :  { %3453 = vmatpush3.msra.mxu0 %v505_v48  ;;  %3417 = vmatpush3.msra.mxu1 %v327_v49 }
  0x47   :  { %3454 = vmatprep.subr.mxu0 %v504_v50  ;;  %3418 = vmatprep.subr.mxu1 %v326_v51 }
  0x48   :  { %3455 = vmatpush3.msra.mxu0 %v504_v50  ;;  %3419 = vmatpush3.msra.mxu1 %v326_v51 }
  0x49   :  { %3456 = vmatprep.subr.mxu0 %v503_v52 }
  0x4a   :  { %3457 = vmatpush3.msra.mxu0 %v503_v52 }
  0xeb   :  { %v152_v54 = vpop.f32.mrf.mxu0 }
  0xec   :  { %v179_v55 = vrot.slane %v152_v54, 5  ;;  %v191_v57 = vmul.f32 %v3313_v53, %v152_v54 }
  0xed   :  { %v3974_v59 = vpop.f32.mrf.mxu0 }
  0xee   :  { %v185_v60 = vsel %vm178_vm1, 0.0, %v179_v55  ;;  %v197_v2 = vadd.f32 %v3314_v56, %v191_v57 }
  0xef   :  { %v158_v63 = vpop.f32.mrf.mxu0  ;;  %v204_v3 = vmul.f32 %v3315_v58, %v185_v60  ;;  %v213_v4 = vmul.f32 %v3316_v61, %v185_v60  ;;  %v234_v5 = vmul.f32 %v3317_v62, %v185_v60 }
  0xf0   :  { %v180_v0 = vrot.slane %v158_v63, 5  ;;  %v192_v1 = vmul.f32 %v3313_v53, %v158_v63 }
  0xf1   :  { %v3977_v6 = vpop.f32.mrf.mxu0  ;;  %v206_v18 = vadd.f32 %v204_v3, %v197_v2  ;;  %v220_v19 = vrot.slane %v213_v4, 1  ;;  %v241_v23 = vrot.slane %v234_v5, 2 }
  0xf2   :  { %5286 = vst [vmem:[#allocation13_spill] sm:$0xff] %v3977_v6  ;;  %v181_v7 = vsel %vm178_vm1, %v179_v55, %v180_v0  ;;  %v198_v8 = vadd.f32 %v3314_v56, %v192_v1  ;;  %v215_v9 = vmul.f32 %v3316_v61, %v180_v0  ;;  %v236_v10 = vmul.f32 %v3317_v62, %v180_v0 }
  0xf3   :  { %v205_v11 = vmul.f32 %v3315_v58, %v181_v7  ;;  %v214_v12 = vmul.f32 %v3316_v61, %v181_v7  ;;  %v164_v13 = vpop.f32.mrf.mxu0  ;;  %v235_v15 = vmul.f32 %v3317_v62, %v181_v7 }
  0xf4   :  { %v223_v14 = vrot.slane %v215_v9, 1  ;;  %v266_v16 = vrot.slane %v164_v13, 5  ;;  %v273_v17 = vmul.f32 %v3313_v53, %v164_v13  ;;  %v244_v24 = vrot.slane %v236_v10, 2 }
  0xf5   :  { %v207_v20 = vadd.f32 %v205_v11, %v198_v8  ;;  %v221_v21 = vrot.slane %v214_v12, 1  ;;  %v3980_v22 = vpop.f32.mrf.mxu0  ;;  %v242_v33 = vrot.slane %v235_v15, 2 }
  0xf6   :  { %5287 = vst [vmem:[#allocation14_spill] sm:$0xff] %v3980_v22  ;;  %v272_v25 = vsel %vm178_vm1, 0.0, %v266_v16  ;;  %v275_v26 = vadd.f32 %v3314_v56, %v273_v17 }
  0xf7   :  { %v224_v27 = vsel %vm219_vm2, %v221_v21, %v223_v14  ;;  %v277_v28 = vmul.f32 %v3315_v58, %v272_v25  ;;  %v281_v29 = vmul.f32 %v3316_v61, %v272_v25  ;;  %v296_v30 = vmul.f32 %v3317_v62, %v272_v25  ;;  %v170_v31 = vpop.f32.mrf.mxu0 }
  0xf8   :  { %v228_v32 = vadd.f32 %v224_v27, %v207_v20  ;;  %v267_v34 = vrot.slane %v170_v31, 5  ;;  %v274_v35 = vmul.f32 %v3313_v53, %v170_v31  ;;  %v222_v39 = vsel %vm219_vm2, %v220_v19, %v221_v21 }
  0xf9   :  { %v279_v36 = vadd.f32 %v277_v28, %v275_v26  ;;  %v287_v37 = vrot.slane %v281_v29, 1  ;;  %v302_v38 = vrot.slane %v296_v30, 2  ;;  %v227_v47 = vadd.f32 %v222_v39, %v206_v18  ;;  %v4013_v27 = vpop.f32.mrf.mxu0 }
  0xfa   :  { %v268_v40 = vsel %vm178_vm1, %v266_v16, %v267_v34  ;;  %v276_v41 = vadd.f32 %v3314_v56, %v274_v35  ;;  %v283_v42 = vmul.f32 %v3316_v61, %v267_v34  ;;  %v298_v43 = vmul.f32 %v3317_v62, %v267_v34  ;;  %5292 = vst [vmem:[#allocation19_spill] sm:$0xff] %v4013_v27 }
  0xfb   :  { %v278_v44 = vmul.f32 %v3315_v58, %v268_v40  ;;  %v282_v45 = vmul.f32 %v3316_v61, %v268_v40  ;;  %v297_v46 = vmul.f32 %v3317_v62, %v268_v40  ;;  %v243_v50 = vsel %vm240_vm3, %v241_v23, %v242_v33 }
  0xfc   :  { %v290_v48 = vrot.slane %v283_v42, 1  ;;  %v305_v49 = vrot.slane %v298_v43, 2  ;;  %v245_v51 = vsel %vm240_vm3, %v242_v33, %v244_v24  ;;  %v248_v55 = vadd.f32 %v243_v50, %v227_v47  ;;  %v3322_v50 = vld [vmem:[#allocation4 + $0x5] ss:$0 sm:$0xff] }
  0xfd   :  { %v280_v52 = vadd.f32 %v278_v44, %v276_v41  ;;  %v288_v53 = vrot.slane %v282_v45, 1  ;;  %v303_v54 = vrot.slane %v297_v46, 2  ;;  %v249_v57 = vadd.f32 %v245_v51, %v228_v32 }
  0xfe   :  { %v3318_v56 = vmul.f32 -1.442695, %v248_v55  ;;  %v622_v24 = vlaneseq  ;;  %vm3088_vm1 = vcmask 1046534  }
  0xff   :  { %v291_v60 = vsel %vm219_vm2, %v288_v53, %v290_v48  ;;  %v289_v63 = vsel %vm219_vm2, %v287_v37, %v288_v53  ;;  %v304_v58 = vsel %vm240_vm3, %v302_v38, %v303_v54  ;;  %v3319_v62 = vmul.f32 -1.442695, %v249_v57 }
 0x100   :  { %v295_v61 = vadd.f32 %v291_v60, %v280_v52  ;;  %v294_v0 = vadd.f32 %v289_v63, %v279_v36  ;;  %3510 = vpow2.f32 %v3318_v56  ;;  %v306_v1 = vsel %vm240_vm3, %v303_v54, %v305_v49 }
 0x101   :  { %3512 = vpow2.f32 %v3319_v62  ;;  %v4008_v25 = vshrl.u32 %v622_v24, 7  ;;  %vm3090_vm2 = vcmask 1047559  }
 0x102   :  { %v309_v2 = vadd.f32 %v304_v58, %v294_v0  ;;  %v310_v3 = vadd.f32 %v306_v1, %v295_v61 }
 0x103   :  { %v4011_v26 = vsub.s32 0, %v4008_v25  ;;  %v4017_v30 = vsub.s32 1, %v4008_v25  ;;  %v4021_v32 = vsub.s32 2, %v4008_v25  ;;  %v4025_v34 = vsub.s32 3, %v4008_v25 }
 0x104   :  { %v3320_v4 = vmul.f32 -1.442695, %v309_v2  ;;  %v3321_v5 = vmul.f32 -1.442695, %v310_v3  ;;  %v4029_v36 = vsub.s32 4, %v4008_v25  ;;  %v4033_v38 = vsub.s32 5, %v4008_v25 }
 0x105   :  { %5291 = vst [vmem:[#allocation18_spill] sm:$0xff] %v4011_v26  ;;  %v4037_v40 = vsub.s32 6, %v4008_v25  ;;  %v4041_v42 = vsub.s32 7, %v4008_v25 }
 0x106   :  { %3514 = vpow2.f32 %v3320_v4 }
 0x107   :  { %3516 = vpow2.f32 %v3321_v5 }
 0x10d   :  { %v3511_v7 = vpop.eup %3510 }
 0x10e   :  { %v3513_v8 = vpop.eup %3512  ;;  %v256_v9 = vadd.f32 1.0, %v3511_v7 }
 0x10f   :  { %v257_v10 = vadd.f32 1.0, %v3513_v8  ;;  %v3324_v8 = vmul.f32 -1.442695, %v3974_v59 }
 0x110   :  { %3518 = vrcp.f32 %v256_v9 }
 0x111   :  { %3520 = vrcp.f32 %v257_v10 }
 0x113   :  { %v3515_v11 = vpop.eup %3514 }
 0x114   :  { %v3517_v12 = vpop.eup %3516  ;;  %v317_v13 = vadd.f32 1.0, %v3515_v11 }
 0x115   :  { %v318_v14 = vadd.f32 1.0, %v3517_v12 }
 0x116   :  { %3522 = vrcp.f32 %v317_v13 }
 0x117   :  { %3524 = vrcp.f32 %v318_v14 }
 0x11d   :  { %v3519_v15 = vpop.eup %3518 }
 0x11e   :  { %v3521_v16 = vpop.eup %3520  ;;  %v3992_v17 = vmul.f32 %v3519_v15, %v248_v55 }
 0x11f   :  { %v3994_v18 = vmul.f32 %v3521_v16, %v249_v57 }
 0x120   :  { %3420 = vmatprep.mubr.f32.mxu1 %v3992_v17  ;;  %3458 = vmatprep.mubr.f32.mxu0 %v3992_v17 }
 0x121   :  { %5288 = vst [vmem:[#allocation15_spill] sm:$0xff] %v3994_v18  ;;  %3421 = vmatmul.mubr.f32.vlgmr.msra.gmra.mxu1 %v3994_v18  ;;  %3459 = vmatmul.mubr.f32.vlgmr.msra.gmra.mxu0 %v3994_v18 }
 0x123   :  { %v3523_v19 = vpop.eup %3522 }
 0x124   :  { %v3525_v20 = vpop.eup %3524  ;;  %v4000_v21 = vmul.f32 %v3523_v19, %v309_v2 }
 0x125   :  { %v4002_v23 = vmul.f32 %v3525_v20, %v310_v3 }
 0x126   :  { %5289 = vst [vmem:[#allocation16_spill] sm:$0xff] %v4000_v21  ;;  %3423 = vmatprep.mubr.f32.mxu1 %v4000_v21  ;;  %3461 = vmatprep.mubr.f32.mxu0 %v4000_v21 }
 0x127   :  { %5290 = vst [vmem:[#allocation17_spill] sm:$0xff] %v4002_v23  ;;  %3424 = vmatmul.mubr.f32.gmra.mxu1 %v4002_v23  ;;  %3462 = vmatmul.mubr.f32.gmra.mxu0 %v4002_v23 }
 0x1e1   :  { %v3460_v28 = vpop.f32.mrf.mxu0  ;;  %v3422_v47 = vpop.f32.mrf.mxu1 }
 0x1e2   :  { %v1115_v29 = vrot.slane %v3460_v28, %v4011_v26  ;;  %v1126_v31 = vrot.slane %v3460_v28, %v4017_v30  ;;  %v1137_v33 = vrot.slane %v3460_v28, %v4021_v32  ;;  %v1148_v35 = vrot.slane %v3460_v28, %v4025_v34 }
 0x1e3   :  { %v1159_v37 = vrot.slane %v3460_v28, %v4029_v36  ;;  %v1170_v39 = vrot.slane %v3460_v28, %v4033_v38  ;;  %v1181_v41 = vrot.slane %v3460_v28, %v4037_v40  ;;  %v1192_v43 = vrot.slane %v3460_v28, %v4041_v42  ;;  %v585_v44 = vpop.f32.mrf.mxu0  ;;  %v412_v49 = vpop.f32.mrf.mxu1 }
 0x1e4   :  { %1121 = vbcast.lane.b32.xlu1 %v1115_v29, 264  ;;  %1117 = vbcast.lane.b32.xlu0 %v1115_v29, 256  ;;  %v1038_v45 = vrot.slane %v585_v44, %v4017_v30  ;;  %v1027_v46 = vrot.slane %v585_v44, %v4011_v26  ;;  %v1049_v48 = vrot.slane %v585_v44, %v4021_v32 }
 0x1e5   :  { %v4047_v51 = vadd.f32 %v3322_v50, %v412_v49  ;;  %v1060_v52 = vrot.slane %v585_v44, %v4025_v34  ;;  %v4050_v53 = vadd.f32 %v3422_v47, %v3322_v50  ;;  %v1071_v55 = vrot.slane %v585_v44, %v4029_v36 }
 0x1e6   :  { %v1082_v56 = vrot.slane %v585_v44, %v4033_v38  ;;  %v1093_v61 = vrot.slane %v585_v44, %v4037_v40  ;;  %v4058_v0 = vrot.slane %v585_v44, %v4041_v42  ;;  %v3193_v44 = vld [vmem:[%s5256_s6 + $0x78] sm:$0xff] }
 0x1e7   :  { %v443_v54 = vand.u32 2147483647, %v4047_v51  ;;  %v444_v57 = vand.u32 2147483647, %v4050_v53  ;;  %v3425_v1 = vpop.f32.mrf.mxu1  ;;  %3464 = vmatprep.subr.mxu1 %v3193_v44  ;;  %vm435_vm6 = vcmp.ne.f32.partialorder %v4047_v51, %v4047_v51  ;;  %vm436_vm7 = vcmp.ne.f32.partialorder %v4050_v53, %v4050_v53 }
 0x1e8   :  { %1132 = vbcast.lane.b32.xlu1 %v1126_v31, 264  ;;  %1128 = vbcast.lane.b32.xlu0 %v1126_v31, 256  ;;  %v4062_v2 = vadd.f32 %v3425_v1, %v3322_v50 }
 0x1e9   :  { %v447_v60 = vsub.f32 0.0, %v443_v54  ;;  %v448_v63 = vsub.f32 0.0, %v444_v57  ;;  %v422_v3 = vpop.f32.mrf.mxu1  ;;  %3465 = vmatpush3.msra.mxu1 %v3193_v44  ;;  %v3191_v44 = vld [vmem:[%s5256_s6 + $0x68] sm:$0xff] }
 0x1ea   :  { %v446_v4 = vand.u32 2147483647, %v4062_v2  ;;  %v4065_v5 = vadd.f32 %v3322_v50, %v422_v3  ;;  %vm438_vm10 = vcmp.ne.f32.partialorder %v4062_v2, %v4062_v2 }
 0x1eb   :  { %v451_v58 = vmul.f32 1.442695, %v447_v60  ;;  %v453_v62 = vmul.f32 1.442695, %v448_v63  ;;  %v4109_v63 = vpop.f32.mrf.mxu0 }
 0x1ec   :  { %1143 = vbcast.lane.b32.xlu1 %v1137_v33, 264  ;;  %1139 = vbcast.lane.b32.xlu0 %v1137_v33, 256  ;;  %5293 = vst [vmem:[#allocation20_spill] sm:$0xff] %v4065_v5  ;;  %v450_v9 = vsub.f32 0.0, %v446_v4  ;;  %v445_v10 = vand.u32 2147483647, %v4065_v5 }
 0x1ed   :  { %3526 = vpow2.f32 %v451_v58  ;;  %v4231_v22 = vpop.f32.mrf.mxu0 }
 0x1ee   :  { %3528 = vpow2.f32 %v453_v62  ;;  %v457_v15 = vmul.f32 1.442695, %v450_v9  ;;  %v449_v16 = vsub.f32 0.0, %v445_v10  ;;  %v4113_v62 = vrot.slane %v4109_v63, %v4011_v26 }
 0x1ef   :  { %3530 = vpow2.f32 %v3324_v8 }
 0x1f0   :  { %1154 = vbcast.lane.b32.xlu1 %v1148_v35, 264  ;;  %1150 = vbcast.lane.b32.xlu0 %v1148_v35, 256  ;;  %v455_v28 = vmul.f32 1.442695, %v449_v16  ;;  %v3762_v16 = vmov 1966171168  }
 0x1f4   :  { %1165 = vbcast.lane.b32.xlu1 %v1159_v37, 264  ;;  %1161 = vbcast.lane.b32.xlu0 %v1159_v37, 256 }
 0x1f8   :  { %1176 = vbcast.lane.b32.xlu1 %v1170_v39, 264  ;;  %1172 = vbcast.lane.b32.xlu0 %v1170_v39, 256 }
 0x1fa   :  { %v4067_v7 = vpop.eup %3526 }
 0x1fb   :  { %v4071_v11 = vpop.eup %3528  ;;  %v459_v12 = vadd.f32 1.0, %v4067_v7 }
 0x1fc   :  { %1187 = vbcast.lane.b32.xlu1 %v1181_v41, 264  ;;  %1183 = vbcast.lane.b32.xlu0 %v1181_v41, 256  ;;  %v468_v19 = vadd.f32 1.0, %v4071_v11  ;;  %v471_v49 = vmul.f32 -0.5, %v4071_v11  ;;  %v474_v4 = vand.u32 2147483647, %v4071_v11 }
 0x1fd   :  { %3532 = vlog2.f32 %v459_v12  ;;  %v3188_v12 = vld [vmem:[%s5256_s6 + $0x50] sm:$0xff] }
 0x1fe   :  { %3534 = vpow2.f32 %v457_v15  ;;  %v472_v1 = vadd.f32 1.0, %v471_v49  ;;  %vm4145_vm5 = vcmp.lt.f32.partialorder %v474_v4, 0.0004427343  ;;  %v432_v49 = vmax.f32 %v4050_v53, 0.0 }
 0x1ff   :  { %3536 = vlog2.f32 %v468_v19  ;;  %v620_v19 = vunpack.c.l.s4 %v3762_v16 }
 0x200   :  { %2556 = vbcast.lane.b32.xlu1 %v1115_v29, 280  ;;  %2552 = vbcast.lane.b32.xlu0 %v1115_v29, 272  ;;  %3538 = vpow2.f32 %v455_v28 }
 0x204   :  { %2564 = vbcast.lane.b32.xlu1 %v1126_v31, 280  ;;  %2560 = vbcast.lane.b32.xlu0 %v1126_v31, 272 }
 0x208   :  { %2572 = vbcast.lane.b32.xlu1 %v1137_v33, 280  ;;  %2568 = vbcast.lane.b32.xlu0 %v1137_v33, 272 }
 0x20c   :  { %1198 = vbcast.lane.b32.xlu1 %v1192_v43, 264  ;;  %1194 = vbcast.lane.b32.xlu0 %v1192_v43, 256 }
 0x210   :  { %2580 = vbcast.lane.b32.xlu1 %v1148_v35, 280  ;;  %2576 = vbcast.lane.b32.xlu0 %v1148_v35, 272 }
 0x214   :  { %2588 = vbcast.lane.b32.xlu1 %v1159_v37, 280  ;;  %2584 = vbcast.lane.b32.xlu0 %v1159_v37, 272  ;;  %v3531_v37 = vpop.eup %3530 }
 0x215   :  { %v3533_v47 = vpop.eup %3532 }
 0x216   :  { %v4106_v57 = vpop.eup %3534 }
 0x217   :  { %v3537_v58 = vpop.eup %3536  ;;  %v486_v15 = vadd.f32 1.0, %v4106_v57 }
 0x218   :  { %2596 = vbcast.lane.b32.xlu1 %v1170_v39, 280  ;;  %2592 = vbcast.lane.b32.xlu0 %v1170_v39, 272  ;;  %v3325_v39 = vmul.f32 -1.442695, %v3977_v6  ;;  %v4123_v9 = vpop.eup %3538  ;;  %v470_v10 = vmul.f32 0.6931472, %v3537_v58 }
 0x219   :  { %v434_v6 = vmax.f32 %v4062_v2, 0.0 }
 0x21a   :  { %3540 = vpow2.f32 %v3325_v39  ;;  %v431_v39 = vmax.f32 %v4047_v51, 0.0 }
 0x21c   :  { %2604 = vbcast.lane.b32.xlu1 %v1181_v41, 280  ;;  %2600 = vbcast.lane.b32.xlu0 %v1181_v41, 272  ;;  %v462_v41 = vmul.f32 -0.5, %v4067_v7 }
 0x220   :  { %2612 = vbcast.lane.b32.xlu1 %v1192_v43, 280  ;;  %2608 = vbcast.lane.b32.xlu0 %v1192_v43, 272  ;;  %v604_v43 = vld [vmem:[#allocation7] sm:$0xff] }
 0x221   :  { %v606_v54 = vmul.f32 1.442695, %v604_v43 }
 0x224   :  { %1040 = vbcast.lane.b32.xlu1 %v1038_v45, 256  ;;  %1029 = vbcast.lane.b32.xlu0 %v1027_v46, 256 }
 0x228   :  { %1044 = vbcast.lane.b32.xlu1 %v1038_v45, 264  ;;  %1033 = vbcast.lane.b32.xlu0 %v1027_v46, 264 }
 0x22c   :  { %1055 = vbcast.lane.b32.xlu1 %v1049_v48, 264  ;;  %1051 = vbcast.lane.b32.xlu0 %v1049_v48, 256 }
 0x230   :  { %1066 = vbcast.lane.b32.xlu1 %v1060_v52, 264  ;;  %1062 = vbcast.lane.b32.xlu0 %v1060_v52, 256 }
 0x234   :  { %1077 = vbcast.lane.b32.xlu1 %v1071_v55, 264  ;;  %1073 = vbcast.lane.b32.xlu0 %v1071_v55, 256 }
 0x238   :  { %1088 = vbcast.lane.b32.xlu1 %v1082_v56, 264  ;;  %1084 = vbcast.lane.b32.xlu0 %v1082_v56, 256 }
 0x23c   :  { %1099 = vbcast.lane.b32.xlu1 %v1093_v61, 264  ;;  %1095 = vbcast.lane.b32.xlu0 %v1093_v61, 256 }
 0x240   :  { %1110 = vbcast.lane.b32.xlu1 %v4058_v0, 264  ;;  %1106 = vbcast.lane.b32.xlu0 %v4058_v0, 256 }
 0x244   :  { %2492 = vbcast.lane.b32.xlu1 %v1027_v46, 280  ;;  %2488 = vbcast.lane.b32.xlu0 %v1027_v46, 272  ;;  %v3192_v46 = vld [vmem:[%s5256_s6 + $0x70] sm:$0xff] }
 0x245   :  { %3466 = vmatprep.subr.mxu1 %v3192_v46 }
 0x246   :  { %3467 = vmatpush3.msra.mxu1 %v3192_v46  ;;  %v477_v46 = vadd.f32 1.0, %v4123_v9 }
 0x247   :  { %3468 = vmatprep.subr.mxu1 %v3191_v44 }
 0x248   :  { %2500 = vbcast.lane.b32.xlu1 %v1038_v45, 280  ;;  %2496 = vbcast.lane.b32.xlu0 %v1038_v45, 272  ;;  %v605_v45 = vld [vmem:[#allocation7 + $0x8] sm:$0xff] }
 0x249   :  { %v608_v60 = vmul.f32 1.442695, %v605_v45  ;;  %3469 = vmatpush3.msra.mxu1 %v3191_v44  ;;  %v489_v44 = vmul.f32 -0.5, %v4106_v57 }
 0x24b   :  { %v490_v21 = vadd.f32 1.0, %v489_v44 }
 0x24c   :  { %2508 = vbcast.lane.b32.xlu1 %v1049_v48, 280  ;;  %2504 = vbcast.lane.b32.xlu0 %v1049_v48, 272  ;;  %v3158_v48 = vadd.f32 1.0, %v3531_v37  ;;  %v473_v37 = vmul.f32 %v4071_v11, %v472_v1  ;;  %v3190_v11 = vld [vmem:[%s5256_s6 + $0x60] sm:$0xff]  ;;  %v3541_v1 = vpop.eup %3540 }
 0x24d   :  { %3470 = vmatprep.subr.mxu1 %v3190_v11  ;;  %v3159_v16 = vadd.f32 1.0, %v3541_v1 }
 0x24e   :  { %3542 = vrcp.f32 %v3158_v48  ;;  %3471 = vmatpush3.msra.mxu1 %v3190_v11 }
 0x24f   :  { %3544 = vpow2.f32 %v606_v54  ;;  %v621_v54 = vunpack.c.0.s8 %v620_v19 }
 0x250   :  { %2516 = vbcast.lane.b32.xlu1 %v1060_v52, 280  ;;  %2512 = vbcast.lane.b32.xlu0 %v1060_v52, 272  ;;  %3546 = vpow2.f32 %v608_v60 }
 0x251   :  { %3548 = vlog2.f32 %v486_v15 }
 0x252   :  { %3550 = vlog2.f32 %v477_v46  ;;  %v3323_v46 = vld [vmem:[#allocation4 + $0x6] ss:$0 sm:$0xff] }
 0x253   :  { %3552 = vrcp.f32 %v3159_v16 }
 0x254   :  { %2524 = vbcast.lane.b32.xlu1 %v1071_v55, 280  ;;  %2520 = vbcast.lane.b32.xlu0 %v1071_v55, 272  ;;  %v463_v55 = vadd.f32 1.0, %v462_v41 }
 0x256   :  { %v4074_v13 = vpop.permute.xlu1 %1121  ;;  %v4076_v14 = vpop.permute.xlu0 %1117  ;;  %v464_v8 = vmul.f32 %v4067_v7, %v463_v55  ;;  %v4160_v55 = vrot.slane %v4109_v63, %v4021_v32 }
 0x258   :  { %2532 = vbcast.lane.b32.xlu1 %v1082_v56, 280  ;;  %2528 = vbcast.lane.b32.xlu0 %v1082_v56, 272  ;;  %v465_v56 = vand.u32 2147483647, %v4067_v7  ;;  %v4134_v7 = vrot.slane %v4109_v63, %v4017_v30 }
 0x25a   :  { %v4079_v20 = vpop.permute.xlu1 %1132  ;;  %v4081_v24 = vpop.permute.xlu0 %1128  ;;  %vm4125_vm4 = vcmp.lt.f32.partialorder %v465_v56, 0.0004427343  ;;  %v3189_v56 = vld [vmem:[%s5256_s6 + $0x58] sm:$0xff] }
 0x25b   :  { %5294 = vst [vmem:[#allocation21_spill] sm:$0xff] %v4079_v20  ;;  %5295 = vst [vmem:[#allocation22_spill] sm:$0xff] %v4081_v24  ;;  %3472 = vmatprep.subr.mxu1 %v3189_v56 }
 0x25c   :  { %2540 = vbcast.lane.b32.xlu1 %v1093_v61, 280  ;;  %2536 = vbcast.lane.b32.xlu0 %v1093_v61, 272  ;;  %v461_v61 = vmul.f32 0.6931472, %v3533_v47  ;;  %v476_v47 = vsel %vm4145_vm5, %v473_v37, %v470_v10  ;;  %v4181_v10 = vrot.slane %v4109_v63, %v4025_v34  ;;  %v3187_v37 = vld [vmem:[%s5256_s6 + $0x48] sm:$0xff] }
 0x25d   :  { %v496_v58 = vadd.f32 %v476_v47, %v432_v49  ;;  %3473 = vmatpush3.msra.mxu1 %v3189_v56  ;;  %v3186_v49 = vld [vmem:[%s5256_s6 + $0x40] sm:$0xff] }
 0x25e   :  { %v4083_v29 = vpop.permute.xlu1 %1143  ;;  %v4085_v31 = vpop.permute.xlu0 %1139  ;;  %v467_v28 = vsel %vm4125_vm4, %v464_v8, %v461_v61  ;;  %v4177_v8 = vsub.s32 %v621_v54, %v4008_v25  ;;  %3474 = vmatprep.subr.mxu1 %v3188_v12 }
 0x25f   :  { %5296 = vst [vmem:[#allocation23_spill] sm:$0xff] %v4083_v29  ;;  %5297 = vst [vmem:[#allocation24_spill] sm:$0xff] %v4085_v31  ;;  %v495_v48 = vadd.f32 %v467_v28, %v431_v39  ;;  %v4191_v25 = vsel %vm436_vm7, %v4050_v53, %v496_v58  ;;  %v4205_v53 = vrot.slane %v4109_v63, %v4029_v36  ;;  %3475 = vmatpush3.msra.mxu1 %v3188_v12 }
 0x260   :  { %2548 = vbcast.lane.b32.xlu1 %v4058_v0, 280  ;;  %2544 = vbcast.lane.b32.xlu0 %v4058_v0, 272  ;;  %5312 = vst [vmem:[#allocation35_spill] sm:$0xff] %v4177_v8  ;;  %v667_v11 = vcombine.high %v4191_v25, %v4191_v25  ;;  %v674_v47 = vrot.slane %v4191_v25, %v4177_v8  ;;  %v480_v58 = vmul.f32 -0.5, %v4123_v9 }
 0x261   :  { %v4174_v4 = vsel %vm435_vm6, %v4047_v51, %v495_v48  ;;  %v3543_v51 = vpop.eup %3542  ;;  %3476 = vmatprep.subr.mxu1 %v3187_v37 }
 0x262   :  { %v4087_v33 = vpop.permute.xlu1 %1154  ;;  %v4089_v35 = vpop.permute.xlu0 %1150  ;;  %v625_v19 = vrot.slane %v4174_v4, %v4177_v8  ;;  %v4217_v54 = vmul.f32 %v3543_v51, %v3974_v59  ;;  %3477 = vmatpush3.msra.mxu1 %v3187_v37  ;;  %v4234_v59 = vmul.f32 %v3323_v46, %v3992_v17  ;;  %v681_v37 = vrot.slane %v667_v11, %v4177_v8 }
 0x263   :  { %5298 = vst [vmem:[#allocation25_spill] sm:$0xff] %v4087_v33  ;;  %5299 = vst [vmem:[#allocation26_spill] sm:$0xff] %v4089_v35  ;;  %v3545_v39 = vpop.eup %3544  ;;  %3478 = vmatprep.subr.mxu1 %v3186_v49  ;;  %v682_v44 = vcombine.high %v674_v47, %v674_v47  ;;  %v4254_v46 = vrot.slane %v4109_v63, %v4041_v42  ;;  %v4262_v11 = vrot.slane %v4231_v22, %v4011_v26 }
 0x264   :  { %1850 = vbcast.lane.b32.xlu1 %v4113_v62, 264  ;;  %1846 = vbcast.lane.b32.xlu0 %v4113_v62, 256  ;;  %v3547_v45 = vpop.eup %3546  ;;  %5316 = vst [vmem:[#allocation39_spill] sm:$0xff] %v4217_v54  ;;  %v4220_v56 = vrot.slane %v625_v19, %v4177_v8  ;;  %v4227_v12 = vsub.f32 0.0, %v3545_v39  ;;  %5320 = vst [vmem:[#allocation43_spill] sm:$0xff] %v4234_v59  ;;  %v633_v16 = vcombine.high %v625_v19, %v625_v19  ;;  %v3185_v39 = vld [vmem:[%s5256_s6 + $0x38] sm:$0xff] }
 0x265   :  { %v4229_v27 = vsub.f32 0.0, %v3547_v45  ;;  %v3549_v51 = vpop.eup %3548  ;;  %v492_v54 = vand.u32 2147483647, %v4106_v57  ;;  %v4248_v45 = vrot.slane %v4109_v63, %v4037_v40  ;;  %5322 = vst [vmem:[#allocation45_spill] sm:$0xff] %v4254_v46  ;;  %3479 = vmatpush3.msra.mxu1 %v3186_v49  ;;  %v481_v59 = vadd.f32 1.0, %v480_v58  ;;  %v3184_v49 = vld [vmem:[%s5256_s6 + $0x30] sm:$0xff] }
 0x266   :  { %v4100_v50 = vpop.permute.xlu1 %1165  ;;  %v4102_v52 = vpop.permute.xlu0 %1161  ;;  %5318 = vst [vmem:[#allocation41_spill] sm:$0xff] %v4227_v12  ;;  %3480 = vmatprep.subr.mxu1 %v3185_v39 }
 0x267   :  { %5300 = vst [vmem:[#allocation27_spill] sm:$0xff] %v4100_v50  ;;  %5301 = vst [vmem:[#allocation28_spill] sm:$0xff] %v4102_v52  ;;  %v3551_v58 = vpop.eup %3550  ;;  %vm4279_vm8 = vcmp.lt.f32.partialorder %v492_v54, 0.0004427343  ;;  %3481 = vmatpush3.msra.mxu1 %v3185_v39  ;;  %v4296_v54 = vrot.slane %v4231_v22, %v4029_v36 }
 0x268   :  { %1861 = vbcast.lane.b32.xlu1 %v4134_v7, 264  ;;  %1857 = vbcast.lane.b32.xlu0 %v4134_v7, 256  ;;  %5319 = vst [vmem:[#allocation42_spill] sm:$0xff] %v4229_v27  ;;  %v4306_v39 = vmul.f32 0.6931472, %v3551_v58 }
 0x269   :  { %3482 = vmatprep.subr.mxu1 %v3184_v49 }
 0x26a   :  { %v4115_v3 = vpop.permute.xlu1 %1176  ;;  %v4117_v0 = vpop.permute.xlu0 %1172  ;;  %3483 = vmatpush3.msra.mxu1 %v3184_v49 }
 0x26b   :  { %5302 = vst [vmem:[#allocation29_spill] sm:$0xff] %v4115_v3  ;;  %5303 = vst [vmem:[#allocation30_spill] sm:$0xff] %v4117_v0  ;;  %v4285_v0 = vrot.slane %v4231_v22, %v4021_v32  ;;  %v3183_v32 = vld [vmem:[%s5256_s6 + $0x28] sm:$0xff] }
 0x26c   :  { %1872 = vbcast.lane.b32.xlu1 %v4160_v55, 264  ;;  %1868 = vbcast.lane.b32.xlu0 %v4160_v55, 256 }
 0x26d   :  { %3484 = vmatprep.subr.mxu1 %v3183_v32 }
 0x26e   :  { %v4138_v41 = vpop.permute.xlu1 %1187  ;;  %v4140_v43 = vpop.permute.xlu0 %1183  ;;  %3485 = vmatpush3.msra.mxu1 %v3183_v32 }
 0x26f   :  { %5306 = vst [vmem:[#allocation31_spill] sm:$0xff] %v4138_v41  ;;  %5307 = vst [vmem:[#allocation32_spill] sm:$0xff] %v4140_v43  ;;  %v483_v43 = vand.u32 2147483647, %v4123_v9  ;;  %v4277_v41 = vrot.slane %v633_v16, %v4177_v8  ;;  %v4300_v16 = vrot.slane %v4231_v22, %v4033_v38 }
 0x270   :  { %1883 = vbcast.lane.b32.xlu1 %v4181_v10, 264  ;;  %1879 = vbcast.lane.b32.xlu0 %v4181_v10, 256 }
 0x271   :  { %vm4318_vm9 = vcmp.lt.f32.partialorder %v483_v43, 0.0004427343  ;;  %v723_v58 = vrot.slane %v4277_v41, %v4011_v26  ;;  %v4334_v43 = vrot.slane %v4231_v22, %v4037_v40  ;;  %v665_v52 = vcombine.high %v4277_v41, %v4277_v41 }
 0x272   :  { %v4162_v60 = vpop.permute.xlu1 %2556  ;;  %v4171_v61 = vpop.permute.xlu0 %2552 }
 0x273   :  { %5310 = vst [vmem:[#allocation33_spill] sm:$0xff] %v4162_v60  ;;  %5311 = vst [vmem:[#allocation34_spill] sm:$0xff] %v4171_v61 }
 0x274   :  { %1894 = vbcast.lane.b32.xlu1 %v4205_v53, 264  ;;  %1890 = vbcast.lane.b32.xlu0 %v4205_v53, 256  ;;  %5330 = vst [vmem:[#allocation49_spill] sm:$0xff] %v4334_v43 }
 0x276   :  { %v4188_v15 = vpop.permute.xlu1 %2564  ;;  %v4197_v28 = vpop.permute.xlu0 %2560 }
 0x277   :  { %5313 = vst [vmem:[#allocation36_spill] sm:$0xff] %v4188_v15  ;;  %5314 = vst [vmem:[#allocation37_spill] sm:$0xff] %v4197_v28  ;;  %v4266_v15 = vrot.slane %v4231_v22, %v4017_v30  ;;  %v690_v28 = vrot.slane %v674_v47, %v4177_v8  ;;  %v4289_v47 = vrot.slane %v4231_v22, %v4025_v34 }
 0x278   :  { %v697_v34 = vrot.slane %v681_v37, %v4177_v8 }
 0x279   :  { %v751_v49 = vrot.slane %v690_v28, %v4011_v26 }
 0x27a   :  { %v4211_v48 = vpop.permute.xlu1 %2572  ;;  %v4225_v1 = vpop.permute.xlu0 %2568 }
 0x27b   :  { %5315 = vst [vmem:[#allocation38_spill] sm:$0xff] %v4211_v48  ;;  %5317 = vst [vmem:[#allocation40_spill] sm:$0xff] %v4225_v1  ;;  %v4240_v1 = vrot.slane %v4109_v63, %v4033_v38  ;;  %v719_v63 = vrot.slane %v4220_v56, %v4011_v26 }
 0x27d   :  { %1905 = vbcast.lane.b32.xlu1 %v4240_v1, 264  ;;  %1901 = vbcast.lane.b32.xlu0 %v4240_v1, 256  ;;  %v796_v38 = vmul.f32 %v719_v63, %v4227_v12 }
 0x27e   :  { %v4250_v19 = vpop.permute.xlu1 %1198  ;;  %v4258_v48 = vpop.permute.xlu0 %1194 }
 0x27f   :  { %5321 = vst [vmem:[#allocation44_spill] sm:$0xff] %v4250_v19  ;;  %5323 = vst [vmem:[#allocation46_spill] sm:$0xff] %v4258_v48  ;;  %v488_v19 = vmul.f32 0.6931472, %v3549_v51  ;;  %v491_v48 = vmul.f32 %v4106_v57, %v490_v21  ;;  %v683_v21 = vcombine.high %v681_v37, %v681_v37  ;;  %v704_v57 = vrot.slane %v682_v44, %v4177_v8 }
 0x280   :  { %v4309_v44 = vmul.f32 %v4123_v9, %v481_v59  ;;  %v4324_v9 = vmul.f32 %v4191_v25, %v3994_v18  ;;  %v618_v59 = vcombine.high %v4174_v4, %v4174_v4  ;;  %v663_v37 = vcombine.high %v4220_v56, %v4220_v56  ;;  %v3182_v25 = vld [vmem:[%s5256_s6 + $0x20] sm:$0xff] }
 0x281   :  { %1916 = vbcast.lane.b32.xlu1 %v4248_v45, 264  ;;  %1912 = vbcast.lane.b32.xlu0 %v4248_v45, 256  ;;  %v494_v61 = vsel %vm4279_vm8, %v491_v48, %v488_v19  ;;  %v711_v48 = vrot.slane %v683_v21, %v4177_v8  ;;  %v714_v19 = vcombine.high %v704_v57, %v704_v57  ;;  %v828_v21 = vmul.f32 1.442695, %v796_v38 }
 0x282   :  { %v4292_v51 = vpop.permute.xlu1 %2580  ;;  %v4313_v36 = vpop.permute.xlu0 %2576  ;;  %v4345_v56 = vrot.slane %v4231_v22, %v4041_v42  ;;  %v713_v18 = vcombine.high %v697_v34, %v697_v34  ;;  %v4347_v40 = vadd.f32 %v494_v61, %v434_v6  ;;  %v3181_v22 = vld [vmem:[%s5256_s6 + $0x18] sm:$0xff]  ;;  %v755_v6 = vrot.slane %v704_v57, %v4011_v26  ;;  %3486 = vmatprep.subr.mxu1 %v3182_v25 }
 0x283   :  { %5326 = vst [vmem:[#allocation47_spill] sm:$0xff] %v4292_v51  ;;  %5327 = vst [vmem:[#allocation48_spill] sm:$0xff] %v4313_v36  ;;  %v712_v51 = vcombine.high %v690_v28, %v690_v28  ;;  %v4360_v42 = vpop.eup %3552  ;;  %v4366_v32 = vrot.slane %v4324_v9, %v4177_v8  ;;  %v797_v36 = vmul.f32 %v719_v63, %v4229_v27  ;;  %3487 = vmatpush3.msra.mxu1 %v3182_v25  ;;  %v3180_v63 = vld [vmem:[%s5256_s6 + $0x10] sm:$0xff] }
 0x284   :  { %5332 = vst [vmem:[#allocation51_spill] sm:$0xff] %v4345_v56  ;;  %5334 = vst [vmem:[#allocation53_spill] sm:$0xff] %v4360_v42  ;;  %v4371_v38 = vrot.slane %v618_v59, %v4177_v8  ;;  %v798_v42 = vmul.f32 %v723_v58, %v4227_v12  ;;  %v715_v57 = vcombine.high %v711_v48, %v711_v48  ;;  %3488 = vmatprep.subr.mxu1 %v3181_v22 }
 0x285   :  { %2860 = vbcast.lane.b32.xlu1 %v4113_v62, 280  ;;  %2856 = vbcast.lane.b32.xlu0 %v4113_v62, 272  ;;  %v759_v61 = vrot.slane %v712_v51, %v4011_v26  ;;  %v767_v62 = vrot.slane %v697_v34, %v4011_v26  ;;  %v763_v51 = vrot.slane %v714_v19, %v4011_v26  ;;  %3554 = vpow2.f32 %v828_v21 }
 0x286   :  { %v4341_v30 = vpop.permute.xlu1 %2588  ;;  %v4355_v28 = vpop.permute.xlu0 %2584  ;;  %v771_v34 = vrot.slane %v711_v48, %v4011_v26  ;;  %v775_v59 = vrot.slane %v713_v18, %v4011_v26  ;;  %v814_v25 = vmul.f32 %v755_v6, %v4227_v12  ;;  %v815_v41 = vmul.f32 %v755_v6, %v4229_v27  ;;  %3489 = vmatpush3.msra.mxu1 %v3181_v22  ;;  %v3179_v6 = vld [vmem:[%s5256_s6 + $0x8] sm:$0xff] }
 0x287   :  { %5331 = vst [vmem:[#allocation50_spill] sm:$0xff] %v4341_v30  ;;  %5333 = vst [vmem:[#allocation52_spill] sm:$0xff] %v4355_v28  ;;  %v727_v28 = vrot.slane %v663_v37, %v4011_v26  ;;  %v812_v30 = vmul.f32 %v751_v49, %v4227_v12  ;;  %v813_v37 = vmul.f32 %v751_v49, %v4229_v27  ;;  %v830_v48 = vmul.f32 1.442695, %v797_v36 }
 0x288   :  { %v816_v19 = vmul.f32 %v759_v61, %v4227_v12  ;;  %v817_v18 = vmul.f32 %v759_v61, %v4229_v27  ;;  %v832_v21 = vmul.f32 1.442695, %v798_v42  ;;  %3490 = vmatprep.subr.mxu1 %v3180_v63  ;;  %v731_v36 = vrot.slane %v665_v52, %v4011_v26  ;;  %v3178_v52 = vld [vmem:[%s5256_s6] sm:$0xff]  ;;  %s3763_s6 = smov 64  }
 0x289   :  { %2868 = vbcast.lane.b32.xlu1 %v4134_v7, 280  ;;  %2864 = vbcast.lane.b32.xlu0 %v4134_v7, 272  ;;  %v800_v49 = vmul.f32 %v727_v28, %v4227_v12  ;;  %v4398_v7 = vmul.f32 %v4174_v4, %v3992_v17  ;;  %v799_v22 = vmul.f32 %v723_v58, %v4229_v27  ;;  %3556 = vpow2.f32 %v830_v48 }
 0x28a   :  { %v4390_v60 = vpop.permute.xlu1 %2596  ;;  %v4392_v50 = vpop.permute.xlu0 %2592  ;;  %3491 = vmatpush3.msra.mxu1 %v3180_v63  ;;  %v819_v61 = vmul.f32 %v763_v51, %v4229_v27  ;;  %v4409_v17 = vmul.f32 %v767_v62, %v4227_v12  ;;  %v4412_v4 = vmul.f32 %v767_v62, %v4229_v27  ;;  %v4421_v58 = vmul.f32 %v771_v34, %v4227_v12 }
 0x28b   :  { %5335 = vst [vmem:[#allocation54_spill] sm:$0xff] %v4390_v60  ;;  %5336 = vst [vmem:[#allocation55_spill] sm:$0xff] %v4392_v50  ;;  %v779_v60 = vrot.slane %v715_v57, %v4011_v26  ;;  %v818_v50 = vmul.f32 %v763_v51, %v4227_v12  ;;  %v634_v57 = vcombine.high %v4371_v38, %v4371_v38  ;;  %3492 = vmatprep.subr.mxu1 %v3179_v6 }
 0x28c   :  { %v648_v62 = vrot.slane %v4371_v38, %v4177_v8  ;;  %v801_v51 = vmul.f32 %v727_v28, %v4229_v27  ;;  %3558 = vpow2.f32 %v832_v21  ;;  %v836_v63 = vmul.f32 1.442695, %v800_v49  ;;  %3493 = vmatpush3.msra.mxu1 %v3179_v6 }
 0x28d   :  { %2876 = vbcast.lane.b32.xlu1 %v4160_v55, 280  ;;  %2872 = vbcast.lane.b32.xlu0 %v4160_v55, 272  ;;  %v933_v55 = vrot.slane %v4398_v7, %v4177_v8  ;;  %v4431_v42 = vmul.f32 %v771_v34, %v4229_v27  ;;  %v4434_v35 = vmul.f32 %v775_v59, %v4227_v12  ;;  %v834_v38 = vmul.f32 1.442695, %v799_v22 }
 0x28e   :  { %v4436_v33 = vpop.permute.xlu1 %2604  ;;  %v4438_v31 = vpop.permute.xlu0 %2600  ;;  %v802_v48 = vmul.f32 %v731_v36, %v4227_v12  ;;  %3494 = vmatprep.subr.mxu1 %v3178_v52  ;;  %v4442_v28 = vmul.f32 %v775_v59, %v4229_v27  ;;  %v4445_v49 = vmul.f32 %v779_v60, %v4227_v12  ;;  %v4448_v34 = vmul.f32 %v779_v60, %v4229_v27 }
 0x28f   :  { %5337 = vst [vmem:[#allocation56_spill] sm:$0xff] %v4436_v33  ;;  %5338 = vst [vmem:[#allocation57_spill] sm:$0xff] %v4438_v31  ;;  %v860_v21 = vmul.f32 1.442695, %v812_v30  ;;  %v862_v6 = vmul.f32 1.442695, %v813_v37  ;;  %v662_v22 = vrot.slane %v634_v57, %v4177_v8  ;;  %v735_v33 = vrot.slane %v648_v62, %v4011_v26  ;;  %3495 = vmatpush3.msra.mxu1 %v3178_v52 }
 0x290   :  { %v864_v31 = vmul.f32 1.442695, %v814_v25  ;;  %v941_v59 = vcombine.high %v933_v55, %v933_v55  ;;  %v4455_v29 = vrot.slane %v933_v55, %v4177_v8  ;;  %v838_v56 = vmul.f32 1.442695, %v801_v51 }
 0x291   :  { %1927 = vbcast.lane.b32.xlu1 %v4254_v46, 264  ;;  %1923 = vbcast.lane.b32.xlu0 %v4254_v46, 256  ;;  %3560 = vpow2.f32 %v836_v63  ;;  %v866_v60 = vmul.f32 1.442695, %v815_v41  ;;  %v803_v37 = vmul.f32 %v731_v36, %v4229_v27  ;;  %v840_v25 = vmul.f32 1.442695, %v802_v48 }
 0x292   :  { %v4457_v24 = vpop.permute.xlu1 %2612  ;;  %v4459_v30 = vpop.permute.xlu0 %2608  ;;  %3562 = vpow2.f32 %v834_v38  ;;  %v4462_v57 = vmul.f32 1.442695, %v816_v19  ;;  %v4464_v46 = vmul.f32 1.442695, %v817_v18  ;;  %v664_v52 = vcombine.high %v648_v62, %v648_v62 }
 0x293   :  { %5339 = vst [vmem:[#allocation58_spill] sm:$0xff] %v4457_v24  ;;  %5340 = vst [vmem:[#allocation59_spill] sm:$0xff] %v4459_v30  ;;  %3564 = vpow2.f32 %v860_v21  ;;  %v3555_v51 = vpop.eup %3554  ;;  %v4468_v41 = vmul.f32 1.442695, %v818_v50  ;;  %v739_v55 = vrot.slane %v662_v22, %v4011_v26  ;;  %v804_v63 = vmul.f32 %v735_v33, %v4227_v12 }
 0x294   :  { %3566 = vpow2.f32 %v862_v6  ;;  %v4472_v36 = vmul.f32 1.442695, %v819_v61  ;;  %v4475_v19 = vrot.slane %v941_v59, %v4177_v8  ;;  %v1203_v18 = vrot.slane %v4455_v29, %v4011_v26 }
 0x295   :  { %2884 = vbcast.lane.b32.xlu1 %v4181_v10, 280  ;;  %2880 = vbcast.lane.b32.xlu0 %v4181_v10, 272  ;;  %3568 = vpow2.f32 %v838_v56  ;;  %v666_v62 = vcombine.high %v662_v22, %v662_v22  ;;  %v805_v10 = vmul.f32 %v735_v33, %v4229_v27  ;;  %v842_v50 = vmul.f32 1.442695, %v803_v37 }
 0x296   :  { %v1041_v38 = vpop.permute.xlu1 %1040  ;;  %v1030_v48 = vpop.permute.xlu0 %1029  ;;  %3570 = vpow2.f32 %v840_v25  ;;  %v4481_v21 = vmul.f32 1.442695, %v4409_v17  ;;  %v743_v61 = vrot.slane %v664_v52, %v4011_v26  ;;  %v2076_v59 = vmul.f32 0.0, %v3555_v51 }
 0x297   :  { %v1280_v6 = vmul.f32 %v1203_v18, %v1030_v48  ;;  %3572 = vpow2.f32 %v864_v31  ;;  %v4487_v56 = vmul.f32 1.442695, %v4412_v4  ;;  %v844_v33 = vmul.f32 1.442695, %v804_v63  ;;  %v3557_v37 = vpop.eup %3556 }
 0x298   :  { %v806_v22 = vmul.f32 %v739_v55, %v4227_v12  ;;  %v1207_v17 = vrot.slane %v4475_v19, %v4011_v26  ;;  %v971_v25 = vcombine.high %v4455_v29, %v4455_v29  ;;  %v926_v52 = vcombine.high %v4398_v7, %v4398_v7 }
 0x299   :  { %2892 = vbcast.lane.b32.xlu1 %v4205_v53, 280  ;;  %2888 = vbcast.lane.b32.xlu0 %v4205_v53, 272  ;;  %v4496_v53 = vadd.f32 %v2076_v59, %v1280_v6  ;;  %v3559_v51 = vpop.eup %3558  ;;  %v747_v31 = vrot.slane %v666_v62, %v4011_v26  ;;  %3574 = vpow2.f32 %v842_v50  ;;  %v846_v63 = vmul.f32 1.442695, %v805_v10 }
 0x29a   :  { %v1045_v4 = vpop.permute.xlu1 %1044  ;;  %v807_v48 = vmul.f32 %v739_v55, %v4229_v27  ;;  %v4501_v24 = vmul.f32 1.442695, %v4421_v58  ;;  %v1282_v30 = vmul.f32 %v1207_v17, %v1041_v38  ;;  %v1034_v29 = vpop.permute.xlu0 %1033  ;;  %v808_v6 = vmul.f32 %v743_v61, %v4227_v12 }
 0x29b   :  { %v2097_v7 = vmul.f32 %v3559_v51, %v4496_v53  ;;  %v1281_v62 = vmul.f32 %v1203_v18, %v1034_v29  ;;  %v2077_v10 = vmul.f32 0.0, %v3557_v37  ;;  %3576 = vpow2.f32 %v844_v33 }
 0x29c   :  { %v848_v55 = vmul.f32 1.442695, %v806_v22  ;;  %3578 = vpow2.f32 %v866_v60  ;;  %v1211_v58 = vrot.slane %v971_v25, %v4011_v26  ;;  %v940_v38 = vrot.slane %v926_v52, %v4177_v8 }
 0x29d   :  { %2900 = vbcast.lane.b32.xlu1 %v4240_v1, 280  ;;  %2896 = vbcast.lane.b32.xlu0 %v4240_v1, 272  ;;  %v4511_v50 = vadd.f32 %v2097_v7, %v1282_v30  ;;  %v4513_v59 = vadd.f32 %v2077_v10, %v1281_v62  ;;  %3580 = vpow2.f32 %v846_v63  ;;  %v850_v51 = vmul.f32 1.442695, %v807_v48 }
 0x29e   :  { %v3561_v1 = vpop.eup %3560  ;;  %v809_v20 = vmul.f32 %v743_v61, %v4229_v27  ;;  %v1056_v18 = vpop.permute.xlu1 %1055  ;;  %v973_v33 = vcombine.high %v4475_v19, %v4475_v19  ;;  %v852_v22 = vmul.f32 1.442695, %v808_v6  ;;  %v810_v37 = vmul.f32 %v747_v31, %v4227_v12 }
 0x29f   :  { %v3563_v43 = vpop.eup %3562  ;;  %v1052_v60 = vpop.permute.xlu0 %1051  ;;  %v2121_v30 = vmul.f32 %v3561_v1, %v4511_v50  ;;  %v1283_v52 = vmul.f32 %v1207_v17, %v1045_v4  ;;  %3582 = vpow2.f32 %v848_v55  ;;  %v4532_v19 = vmul.f32 1.442695, %v4434_v35 }
 0x2a0   :  { %v4522_v25 = vpop.eup %3564  ;;  %v1284_v63 = vmul.f32 %v1211_v58, %v1052_v60  ;;  %v2098_v61 = vmul.f32 %v3563_v43, %v4513_v59  ;;  %3584 = vpow2.f32 %v4462_v57  ;;  %v811_v29 = vmul.f32 %v747_v31, %v4229_v27 }
 0x2a1   :  { %2908 = vbcast.lane.b32.xlu1 %v4248_v45, 280  ;;  %2904 = vbcast.lane.b32.xlu0 %v4248_v45, 272  ;;  %v4525_v48 = vpop.eup %3566  ;;  %v4529_v45 = vmul.f32 1.442695, %v4431_v42  ;;  %3586 = vpow2.f32 %v850_v51  ;;  %v854_v43 = vmul.f32 1.442695, %v809_v20  ;;  %v1215_v42 = vrot.slane %v973_v33, %v4011_v26 }
 0x2a2   :  { %v3569_v7 = vpop.eup %3568  ;;  %v4535_v6 = vadd.f32 %v2098_v61, %v1283_v52  ;;  %v4537_v17 = vadd.f32 %v2121_v30, %v1284_v63  ;;  %v4543_v57 = vrot.slane %v940_v38, %v4177_v8  ;;  %v942_v35 = vcombine.high %v940_v38, %v940_v38  ;;  %v1067_v60 = vpop.permute.xlu1 %1066 }
 0x2a3   :  { %v3571_v4 = vpop.eup %3570  ;;  %v856_v62 = vmul.f32 1.442695, %v810_v37  ;;  %v1285_v31 = vmul.f32 %v1211_v58, %v1056_v18  ;;  %3588 = vpow2.f32 %v852_v22  ;;  %v4551_v20 = vmul.f32 1.442695, %v4442_v28  ;;  %v1063_v58 = vpop.permute.xlu0 %1062 }
 0x2a4   :  { %v2122_v10 = vmul.f32 %v3569_v7, %v4535_v6  ;;  %v2145_v55 = vmul.f32 %v3571_v4, %v4537_v17  ;;  %v4547_v1 = vpop.eup %3572  ;;  %3590 = vpow2.f32 %v4464_v46  ;;  %v4554_v51 = vmul.f32 1.442695, %v4445_v49 }
 0x2a5   :  { %1762 = vbcast.lane.b32.xlu1 %v4262_v11, 264  ;;  %1758 = vbcast.lane.b32.xlu0 %v4262_v11, 256  ;;  %v975_v38 = vcombine.high %v4324_v9, %v4324_v9  ;;  %v1286_v18 = vmul.f32 %v1215_v42, %v1063_v58  ;;  %3592 = vpow2.f32 %v854_v43  ;;  %v858_v30 = vmul.f32 1.442695, %v811_v29 }
 0x2a6   :  { %v4558_v33 = vadd.f32 %v2122_v10, %v1285_v31  ;;  %v3575_v22 = vpop.eup %3574  ;;  %3594 = vpow2.f32 %v4468_v41  ;;  %v4566_v46 = vsel %vm438_vm10, %v4062_v2, %v4347_v40  ;;  %v1219_v9 = vrot.slane %v4543_v57, %v4011_v26  ;;  %v1078_v61 = vpop.permute.xlu1 %1077 }
 0x2a7   :  { %5341 = vst [vmem:[#allocation60_spill] sm:$0xff] %v4566_v46  ;;  %v4573_v28 = vrot.slane %v942_v35, %v4177_v8  ;;  %v1287_v49 = vmul.f32 %v1215_v42, %v1067_v60  ;;  %v4576_v37 = vadd.f32 %v2145_v55, %v1286_v18  ;;  %3596 = vpow2.f32 %v856_v62  ;;  %v1074_v29 = vpop.permute.xlu0 %1073 }
 0x2a8   :  { %v2146_v41 = vmul.f32 %v3575_v22, %v4558_v33  ;;  %v3577_v52 = vpop.eup %3576  ;;  %3598 = vpow2.f32 %v4472_v36  ;;  %v4580_v2 = vmul.f32 1.442695, %v4448_v34  ;;  %v990_v40 = vcombine.high %v4366_v32, %v4366_v32 }
 0x2a9   :  { %1773 = vbcast.lane.b32.xlu1 %v4266_v15, 264  ;;  %1769 = vbcast.lane.b32.xlu0 %v4266_v15, 256  ;;  %v989_v63 = vrot.slane %v975_v38, %v4177_v8  ;;  %v4585_v7 = vpop.eup %3578  ;;  %v1288_v43 = vmul.f32 %v1219_v9, %v1074_v29  ;;  %v2169_v42 = vmul.f32 %v3577_v52, %v4576_v37  ;;  %3600 = vpow2.f32 %v858_v30 }
 0x2aa   :  { %v4587_v4 = vadd.f32 %v2146_v41, %v1287_v49  ;;  %v3581_v35 = vpop.eup %3580  ;;  %3602 = vpow2.f32 %v4481_v21  ;;  %v5342_v34 = vmax.f32 %v4065_v5, 0.0  ;;  %v5343_v36 = vsel %vm4318_vm9, %v4309_v44, %v4306_v39  ;;  %v1089_v58 = vpop.permute.xlu1 %1088 }
 0x2ab   :  { %v972_v31 = vcombine.high %v4543_v57, %v4543_v57  ;;  %v615_v10 = vmul.f32 %v4566_v46, %v4002_v23  ;;  %v1289_v21 = vmul.f32 %v1219_v9, %v1078_v61  ;;  %v1223_v55 = vrot.slane %v4573_v28, %v4011_v26  ;;  %v1085_v18 = vpop.permute.xlu0 %1084 }
 0x2ac   :  { %v4598_v62 = vadd.f32 %v5343_v36, %v5342_v34  ;;  %v2170_v3 = vmul.f32 %v3581_v35, %v4587_v4  ;;  %v4609_v38 = vadd.f32 %v2169_v42, %v1288_v43  ;;  %v3583_v39 = vpop.eup %3582  ;;  %3604 = vpow2.f32 %v4487_v56 }
 0x2ad   :  { %1784 = vbcast.lane.b32.xlu1 %v4285_v0, 264  ;;  %1780 = vbcast.lane.b32.xlu0 %v4285_v0, 256  ;;  %v998_v44 = vrot.slane %v4366_v32, %v4177_v8  ;;  %v1012_v60 = vrot.slane %v990_v40, %v4177_v8  ;;  %v991_v57 = vcombine.high %v989_v63, %v989_v63  ;;  %v4615_v30 = vpop.eup %3584  ;;  %3606 = vpow2.f32 %v4501_v24 }
 0x2ae   :  { %5344 = vst [vmem:[#allocation61_spill] sm:$0xff] %v4598_v62  ;;  %v1005_v22 = vrot.slane %v989_v63, %v4177_v8  ;;  %v1290_v9 = vmul.f32 %v1223_v55, %v1085_v18  ;;  %v4618_v49 = vadd.f32 %v2170_v3, %v1289_v21  ;;  %v2193_v41 = vmul.f32 %v3583_v39, %v4609_v38  ;;  %v3587_v52 = vpop.eup %3586  ;;  %v1100_v21 = vpop.permute.xlu1 %1099 }
 0x2af   :  { %v1227_v32 = vrot.slane %v972_v31, %v4011_v26  ;;  %v974_v56 = vcombine.high %v4573_v28, %v4573_v28  ;;  %v1711_v40 = vrot.slane %v615_v10, %v4177_v8  ;;  %v1291_v63 = vmul.f32 %v1223_v55, %v1089_v58  ;;  %v1096_v31 = vpop.permute.xlu0 %1095 }
 0x2b0   :  { %v2194_v61 = vmul.f32 %v3587_v52, %v4618_v49  ;;  %v4629_v29 = vadd.f32 %v2193_v41, %v1290_v9  ;;  %v1704_v43 = vcombine.high %v615_v10, %v615_v10  ;;  %v3589_v42 = vpop.eup %3588  ;;  %v1235_v24 = vrot.slane %v998_v44, %v4011_v26 }
 0x2b1   :  { %1795 = vbcast.lane.b32.xlu1 %v4289_v47, 264  ;;  %1791 = vbcast.lane.b32.xlu0 %v4289_v47, 256  ;;  %v1020_v35 = vcombine.high %v998_v44, %v998_v44  ;;  %v1022_v34 = vcombine.high %v1012_v60, %v1012_v60  ;;  %v1019_v36 = vrot.slane %v991_v57, %v4177_v8  ;;  %v4633_v3 = vpop.eup %3590  ;;  %3608 = vpow2.f32 %v4529_v45 }
 0x2b2   :  { %v4636_v28 = vrot.slane %v1012_v60, %v4011_v26  ;;  %v1292_v55 = vmul.f32 %v1227_v32, %v1096_v31  ;;  %v4638_v39 = vadd.f32 %v2194_v61, %v1291_v63  ;;  %v2217_v58 = vmul.f32 %v3589_v42, %v4629_v29  ;;  %v3593_v10 = vpop.eup %3592  ;;  %v1111_v23 = vpop.permute.xlu1 %1110 }
 0x2b3   :  { %v1021_v18 = vcombine.high %v1005_v22, %v1005_v22  ;;  %v1231_v44 = vrot.slane %v974_v56, %v4011_v26  ;;  %v1719_v57 = vcombine.high %v1711_v40, %v1711_v40  ;;  %v4645_v9 = vpop.eup %3594  ;;  %v1293_v60 = vmul.f32 %v1227_v32, %v1100_v21  ;;  %v1107_v56 = vpop.permute.xlu0 %1106 }
 0x2b4   :  { %v2218_v41 = vmul.f32 %v3593_v10, %v4638_v39  ;;  %v4648_v52 = vadd.f32 %v2217_v58, %v1292_v55  ;;  %v1718_v63 = vrot.slane %v1704_v43, %v4177_v8  ;;  %v3597_v61 = vpop.eup %3596  ;;  %v4652_v45 = vrot.slane %v1020_v35, %v4011_v26 }
 0x2b5   :  { %1806 = vbcast.lane.b32.xlu1 %v4296_v54, 264  ;;  %1802 = vbcast.lane.b32.xlu0 %v4296_v54, 256  ;;  %v4655_v42 = vrot.slane %v1022_v34, %v4011_v26  ;;  %v1023_v31 = vcombine.high %v1019_v36, %v1019_v36  ;;  %v1727_v46 = vrot.slane %v1711_v40, %v4177_v8  ;;  %v4658_v12 = vpop.eup %3598  ;;  %3610 = vpow2.f32 %v4532_v19 }
 0x2b6   :  { %v4661_v32 = vrot.slane %v1005_v22, %v4011_v26  ;;  %v1294_v21 = vmul.f32 %v1231_v44, %v1107_v56  ;;  %v4663_v55 = vadd.f32 %v2218_v41, %v1293_v60  ;;  %v2241_v43 = vmul.f32 %v3597_v61, %v4648_v52  ;;  %v3601_v35 = vpop.eup %3600  ;;  %v2493_v56 = vpop.permute.xlu1 %2492 }
 0x2b7   :  { %v4668_v34 = vrot.slane %v1019_v36, %v4011_v26  ;;  %v4671_v58 = vrot.slane %v1021_v18, %v4011_v26  ;;  %v1741_v22 = vrot.slane %v1719_v57, %v4177_v8  ;;  %v4676_v40 = vpop.eup %3602  ;;  %v1295_v10 = vmul.f32 %v1231_v44, %v1111_v23  ;;  %v2489_v27 = vpop.permute.xlu0 %2488 }
 0x2b8   :  { %v2242_v60 = vmul.f32 %v3601_v35, %v4663_v55  ;;  %v4679_v41 = vadd.f32 %v2241_v43, %v1294_v21  ;;  %v1720_v19 = vcombine.high %v1718_v63, %v1718_v63  ;;  %v1297_v36 = vmul.f32 %v1235_v24, %v4074_v13  ;;  %v5345_v13 = vld [vmem:[#allocation49_spill] sm:$0xff] }
 0x2b9   :  { %1817 = vbcast.lane.b32.xlu1 %v4300_v16, 264  ;;  %1813 = vbcast.lane.b32.xlu0 %v4300_v16, 256  ;;  %v1296_v61 = vmul.f32 %v1235_v24, %v4076_v14  ;;  %v4684_v18 = vrot.slane %v1023_v31, %v4011_v26  ;;  %v1749_v62 = vcombine.high %v1727_v46, %v1727_v46  ;;  %v4686_v5 = vpop.eup %3604  ;;  %3612 = vpow2.f32 %v4551_v20  ;;  %v5348_v43 = vld [vmem:[#allocation21_spill] sm:$0xff] }
 0x2ba   :  { %v2615_v57 = vmul.f32 %v2493_v56, %v4513_v59  ;;  %v2614_v23 = vmul.f32 %v2489_v27, %v4496_v53  ;;  %v4690_v44 = vadd.f32 %v2242_v60, %v1295_v10  ;;  %v2265_v21 = vmul.f32 %v4522_v25, %v4679_v41  ;;  %v4703_v59 = vpop.eup %3606  ;;  %v5349_v10 = vld [vmem:[#allocation22_spill] sm:$0xff]  ;;  %v2501_v60 = vpop.permute.xlu1 %2500 }
 0x2bb   :  { %v4698_v14 = vrot.slane %v1727_v46, %v4011_v26  ;;  %v1751_v24 = vcombine.high %v1741_v22, %v1741_v22  ;;  %v4701_v31 = vrot.slane %v1718_v63, %v4177_v8  ;;  %v4708_v20 = vrot.slane %v1720_v19, %v4177_v8  ;;  %v2497_v56 = vpop.permute.xlu0 %2496 }
 0x2bc   :  { %v2646_v27 = vadd.f32 %v2615_v57, %v2614_v23  ;;  %v2266_v53 = vmul.f32 %v4525_v48, %v4690_v44  ;;  %v2270_v25 = vadd.f32 %v2265_v21, %v1296_v61  ;;  %v1299_v35 = vmul.f32 %v4636_v28, %v5348_v43  ;;  %v5350_v21 = vld [vmem:[#allocation51_spill] sm:$0xff] }
 0x2bd   :  { %1828 = vbcast.lane.b32.xlu1 %v5345_v13, 264  ;;  %1824 = vbcast.lane.b32.xlu0 %v5345_v13, 256  ;;  %5346 = vst [vmem:[#allocation49_spill] sm:$0xff] %v4701_v31  ;;  %5347 = vst [vmem:[#allocation62_spill] sm:$0xff] %v4708_v20  ;;  %v1298_v46 = vmul.f32 %v4636_v28, %v5349_v10  ;;  %v4715_v63 = vrot.slane %v1741_v22, %v4011_v26  ;;  %3614 = vpow2.f32 %v4554_v51  ;;  %v5352_v10 = vld [vmem:[#allocation24_spill] sm:$0xff] }
 0x2be   :  { %v4718_v57 = vrot.slane %v1749_v62, %v4011_v26  ;;  %v2647_v23 = vrot.slane %v2646_v27, 4  ;;  %v2617_v48 = vmul.f32 %v2501_v60, %v4535_v6  ;;  %v2616_v19 = vmul.f32 %v2497_v56, %v4511_v50  ;;  %v4732_v43 = vpop.eup %3608  ;;  %v2509_v62 = vpop.permute.xlu1 %2508 }
 0x2bf   :  { %v2271_v61 = vadd.f32 %v2266_v53, %v1297_v36  ;;  %v2289_v28 = vmul.f32 %v4547_v1, %v2270_v25  ;;  %v4728_v22 = vrot.slane %v4701_v31, %v4011_v26  ;;  %v4736_v51 = vrot.slane %v1751_v24, %v4011_v26  ;;  %v5351_v1 = vld [vmem:[#allocation23_spill] sm:$0xff]  ;;  %v2505_v8 = vpop.permute.xlu0 %2504 }
 0x2c0   :  { %v2653_v6 = vadd.f32 %v2617_v48, %v2616_v19  ;;  %v4740_v36 = vrot.slane %v4708_v20, %v4011_v26  ;;  %v1301_v53 = vmul.f32 %v4652_v45, %v5351_v1  ;;  %v1300_v60 = vmul.f32 %v4652_v45, %v5352_v10  ;;  %v5353_v48 = vld [vmem:[#allocation25_spill] sm:$0xff]  ;;  %v5354_v26 = vld [vmem:[#allocation26_spill] sm:$0xff] }
 0x2c1   :  { %1839 = vbcast.lane.b32.xlu1 %v5350_v21, 264  ;;  %1835 = vbcast.lane.b32.xlu0 %v5350_v21, 256  ;;  %v2290_v50 = vmul.f32 %v4585_v7, %v2271_v61  ;;  %v2648_v56 = vadd.f32 %v2647_v23, %v2646_v27  ;;  %v4746_v31 = vadd.f32 %v2289_v28, %v1298_v46  ;;  %3616 = vpow2.f32 %v4580_v2  ;;  %v5355_v23 = vld [vmem:[#allocation27_spill] sm:$0xff]  ;;  %v5356_v2 = vld [vmem:[#allocation33_spill] sm:$0xff] }
 0x2c2   :  { %v1303_v7 = vmul.f32 %v4655_v42, %v5353_v48  ;;  %v2654_v24 = vrot.slane %v2653_v6, 4  ;;  %v2619_v19 = vmul.f32 %v2509_v62, %v4558_v33  ;;  %v2618_v20 = vmul.f32 %v2505_v8, %v4537_v17  ;;  %v4761_v46 = vpop.eup %3610  ;;  %v5358_v10 = vld [vmem:[#allocation29_spill] sm:$0xff] }
 0x2c3   :  { %v1302_v1 = vmul.f32 %v4655_v42, %v5354_v26  ;;  %v4757_v45 = vadd.f32 %v2290_v50, %v1299_v35  ;;  %v2313_v27 = vmul.f32 %v4615_v30, %v4746_v31  ;;  %v4765_v33 = vmul.f32 %v4661_v32, %v5355_v23  ;;  %v5357_v26 = vld [vmem:[#allocation28_spill] sm:$0xff]  ;;  %v2513_v35 = vpop.permute.xlu0 %2512 }
 0x2c4   :  { %v2655_v8 = vadd.f32 %v2654_v24, %v2653_v6  ;;  %v2660_v17 = vadd.f32 %v2619_v19, %v2618_v20  ;;  %v2631_v28 = vmul.f32 %v5356_v2, %v2271_v61  ;;  %v1304_v42 = vmul.f32 %v4661_v32, %v5357_v26  ;;  %v5359_v6 = vld [vmem:[#allocation34_spill] sm:$0xff] }
 0x2c5   :  { %2796 = vbcast.lane.b32.xlu1 %v4262_v11, 280  ;;  %2792 = vbcast.lane.b32.xlu0 %v4262_v11, 272  ;;  %v2649_v62 = vrot.slane %v2648_v56, 2  ;;  %v2517_v11 = vpop.permute.xlu1 %2516  ;;  %v2314_v50 = vmul.f32 %v4633_v3, %v4757_v45  ;;  %v4772_v30 = vadd.f32 %v2313_v27, %v1300_v60  ;;  %v4776_v48 = vmul.f32 %v4668_v34, %v5358_v10  ;;  %v5360_v27 = vld [vmem:[#allocation30_spill] sm:$0xff]  ;;  %v5362_v10 = vld [vmem:[#allocation32_spill] sm:$0xff] }
 0x2c6   :  { %v2661_v23 = vrot.slane %v2660_v17, 4  ;;  %v2621_v20 = vmul.f32 %v2517_v11, %v4587_v4  ;;  %v2630_v61 = vmul.f32 %v5359_v6, %v2270_v25  ;;  %v2656_v24 = vrot.slane %v2655_v8, 2  ;;  %v4787_v60 = vpop.eup %3612  ;;  %v5361_v4 = vld [vmem:[#allocation31_spill] sm:$0xff] }
 0x2c7   :  { %v2620_v32 = vmul.f32 %v2513_v35, %v4576_v37  ;;  %v4783_v19 = vadd.f32 %v2314_v50, %v1301_v53  ;;  %v2337_v3 = vmul.f32 %v4645_v9, %v4772_v30  ;;  %v4791_v2 = vmul.f32 %v4668_v34, %v5360_v27  ;;  %v2521_v53 = vpop.permute.xlu0 %2520 }
 0x2c8   :  { %v4795_v25 = vmul.f32 %v4671_v58, %v5361_v4  ;;  %v2662_v37 = vadd.f32 %v2661_v23, %v2660_v17  ;;  %v2702_v26 = vadd.f32 %v2631_v28, %v2630_v61  ;;  %v2650_v11 = vadd.f32 %v2649_v62, %v2648_v56  ;;  %v5363_v62 = vld [vmem:[#allocation44_spill] sm:$0xff] }
 0x2c9   :  { %2804 = vbcast.lane.b32.xlu1 %v4266_v15, 280  ;;  %2800 = vbcast.lane.b32.xlu0 %v4266_v15, 272  ;;  %v2667_v35 = vadd.f32 %v2621_v20, %v2620_v32  ;;  %v2525_v15 = vpop.permute.xlu1 %2524  ;;  %v2338_v50 = vmul.f32 %v4658_v12, %v4783_v19  ;;  %v4799_v9 = vadd.f32 %v2337_v3, %v1302_v1  ;;  %v5364_v32 = vld [vmem:[#allocation46_spill] sm:$0xff] }
 0x2ca   :  { %v4803_v6 = vmul.f32 %v4671_v58, %v5362_v10  ;;  %v2663_v34 = vrot.slane %v2662_v37, 2  ;;  %v2623_v27 = vmul.f32 %v2525_v15, %v4618_v49  ;;  %v2622_v4 = vmul.f32 %v2521_v53, %v4609_v38  ;;  %v4811_v1 = vpop.eup %3614  ;;  %v5365_v53 = vld [vmem:[#allocation37_spill] sm:$0xff] }
 0x2cb   :  { %v2657_v17 = vadd.f32 %v2656_v24, %v2655_v8  ;;  %v2668_v28 = vrot.slane %v2667_v35, 4  ;;  %v2343_v56 = vadd.f32 %v2338_v50, %v1303_v7  ;;  %v2361_v12 = vmul.f32 %v4676_v40, %v4799_v9  ;;  %v2529_v24 = vpop.permute.xlu0 %2528 }
 0x2cc   :  { %v4815_v58 = vmul.f32 %v4684_v18, %v5363_v62  ;;  %v2664_v49 = vadd.f32 %v2663_v34, %v2662_v37  ;;  %v2674_v23 = vadd.f32 %v2623_v27, %v2622_v4  ;;  %v2703_v38 = vrot.slane %v2702_v26, 4  ;;  %v5366_v27 = vld [vmem:[#allocation36_spill] sm:$0xff] }
 0x2cd   :  { %2812 = vbcast.lane.b32.xlu1 %v4285_v0, 280  ;;  %2808 = vbcast.lane.b32.xlu0 %v4285_v0, 272  ;;  %v2651_v8 = vrot.slane %v2650_v11, 1  ;;  %v2669_v20 = vadd.f32 %v2668_v28, %v2667_v35  ;;  %v2533_v61 = vpop.permute.xlu1 %2532  ;;  %v2362_v0 = vmul.f32 %v4686_v5, %v2343_v56  ;;  %v2366_v7 = vadd.f32 %v2361_v12, %v1304_v42 }
 0x2ce   :  { %v4820_v40 = vmul.f32 %v4684_v18, %v5364_v32  ;;  %v2675_v3 = vrot.slane %v2674_v23, 4  ;;  %v2625_v15 = vmul.f32 %v2533_v61, %v4638_v39  ;;  %v2632_v37 = vmul.f32 %v5365_v53, %v4746_v31  ;;  %v4829_v42 = vpop.eup %3616 }
 0x2cf   :  { %v2658_v50 = vrot.slane %v2657_v17, 1  ;;  %v2670_v10 = vrot.slane %v2669_v20, 2  ;;  %v2624_v34 = vmul.f32 %v2529_v24, %v4629_v29  ;;  %v2367_v5 = vadd.f32 %v2362_v0, %v4765_v33  ;;  %v2537_v61 = vpop.permute.xlu0 %2536 }
 0x2d0   :  { %v2665_v18 = vrot.slane %v2664_v49, 1  ;;  %v2676_v35 = vadd.f32 %v2675_v3, %v2674_v23  ;;  %v2633_v39 = vmul.f32 %v5366_v27, %v4757_v45  ;;  %v2704_v4 = vadd.f32 %v2703_v38, %v2702_v26  ;;  %v5367_v45 = vld [vmem:[#allocation38_spill] sm:$0xff] }
 0x2d1   :  { %2820 = vbcast.lane.b32.xlu1 %v4289_v47, 280  ;;  %2816 = vbcast.lane.b32.xlu0 %v4289_v47, 272  ;;  %v2652_v28 = vadd.f32 %v2651_v8, %v2650_v11  ;;  %v2671_v31 = vadd.f32 %v2670_v10, %v2669_v20  ;;  %v2681_v12 = vadd.f32 %v2625_v15, %v2624_v34  ;;  %v2541_v62 = vpop.permute.xlu1 %2540  ;;  %v5368_v11 = vld [vmem:[#allocation40_spill] sm:$0xff] }
 0x2d2   :  { %v2385_v29 = vmul.f32 %v4703_v59, %v2366_v7  ;;  %v2677_v24 = vrot.slane %v2676_v35, 2  ;;  %v2627_v47 = vmul.f32 %v2541_v62, %v4663_v55  ;;  %v2626_v33 = vmul.f32 %v2537_v61, %v4648_v52  ;;  %v5372_v62 = vld [vmem:[#allocation52_spill] sm:$0xff] }
 0x2d3   :  { %v2386_v0 = vmul.f32 %v4732_v43, %v2367_v5  ;;  %v2659_v32 = vadd.f32 %v2658_v50, %v2657_v17  ;;  %v2682_v23 = vrot.slane %v2681_v12, 4  ;;  %v2635_v26 = vmul.f32 %v5367_v45, %v4783_v19  ;;  %v5369_v43 = vld [vmem:[#allocation47_spill] sm:$0xff]  ;;  %v2545_v50 = vpop.permute.xlu0 %2544  ;;  %v5370_v19 = vld [vmem:[#allocation48_spill] sm:$0xff] }
 0x2d4   :  { %v2634_v59 = vmul.f32 %v5368_v11, %v4772_v30  ;;  %v2666_v38 = vadd.f32 %v2665_v18, %v2664_v49  ;;  %v2672_v8 = vrot.slane %v2671_v31, 1  ;;  %v2688_v55 = vadd.f32 %v2627_v47, %v2626_v33  ;;  %v5371_v18 = vld [vmem:[#allocation50_spill] sm:$0xff] }
 0x2d5   :  { %2828 = vbcast.lane.b32.xlu1 %v4296_v54, 280  ;;  %2824 = vbcast.lane.b32.xlu0 %v4296_v54, 272  ;;  %v2705_v20 = vrot.slane %v2704_v4, 2  ;;  %v2683_v52 = vadd.f32 %v2682_v23, %v2681_v12  ;;  %v2549_v3 = vpop.permute.xlu1 %2548  ;;  %v2637_v17 = vmul.f32 %v5369_v43, %v2343_v56  ;;  %v2390_v15 = vadd.f32 %v2385_v29, %v4791_v2 }
 0x2d6   :  { %v2709_v53 = vadd.f32 %v2633_v39, %v2632_v37  ;;  %v2678_v10 = vadd.f32 %v2677_v24, %v2676_v35  ;;  %v2689_v54 = vrot.slane %v2688_v55, 4  ;;  %v2391_v34 = vadd.f32 %v2386_v0, %v4776_v48 }
 0x2d7   :  { %v2636_v27 = vmul.f32 %v5370_v19, %v4799_v9  ;;  %v3079_v30 = vsel %vm3078_vm11, %v2659_v32, %v2652_v28  ;;  %v2684_v49 = vrot.slane %v2683_v52, 2  ;;  %v2639_v12 = vmul.f32 %v5371_v18, %v2367_v5  ;;  %v1847_v24 = vpop.permute.xlu0 %1846 }
 0x2d8   :  { %v2638_v61 = vmul.f32 %v5372_v62, %v2366_v7  ;;  %v3081_v2 = vsel %vm3080_vm12, %v2666_v38, %v3079_v30  ;;  %v2673_v56 = vadd.f32 %v2672_v8, %v2671_v31  ;;  %v2690_v37 = vadd.f32 %v2689_v54, %v2688_v55 }
 0x2d9   :  { %2836 = vbcast.lane.b32.xlu1 %v4300_v16, 280  ;;  %2832 = vbcast.lane.b32.xlu0 %v4300_v16, 272  ;;  %v4854_v48 = vadd.f32 %v2705_v20, %v2704_v4  ;;  %v2409_v9 = vmul.f32 %v4761_v46, %v2390_v15  ;;  %v2710_v35 = vrot.slane %v2709_v53, 4  ;;  %v2716_v39 = vadd.f32 %v2635_v26, %v2634_v59  ;;  %v1851_v29 = vpop.permute.xlu1 %1850  ;;  %v5373_v46 = vld [vmem:[#allocation54_spill] sm:$0xff] }
 0x2da   :  { %v2723_v28 = vadd.f32 %v2637_v17, %v2636_v27  ;;  %v2679_v5 = vrot.slane %v2678_v10, 1  ;;  %v2691_v47 = vrot.slane %v2690_v37, 2  ;;  %v2410_v7 = vmul.f32 %v4787_v60, %v2391_v34 }
 0x2db   :  { %v2629_v33 = vmul.f32 %v2549_v3, %v4690_v44  ;;  %v2685_v16 = vadd.f32 %v2684_v49, %v2683_v52  ;;  %v2717_v0 = vrot.slane %v2716_v39, 4  ;;  %v2730_v31 = vadd.f32 %v2639_v12, %v2638_v61  ;;  %v1858_v8 = vpop.permute.xlu0 %1857  ;;  %v5375_v61 = vld [vmem:[#allocation45_spill] sm:$0xff] }
 0x2dc   :  { %v2724_v32 = vrot.slane %v2723_v28, 4  ;;  %v2641_v4 = vmul.f32 %v5373_v46, %v2391_v34  ;;  %v2711_v23 = vadd.f32 %v2710_v35, %v2709_v53  ;;  %v2628_v45 = vmul.f32 %v2545_v50, %v4679_v41 }
 0x2dd   :  { %2844 = vbcast.lane.b32.xlu1 %v5345_v13, 280  ;;  %2840 = vbcast.lane.b32.xlu0 %v5345_v13, 272  ;;  %v4864_v26 = vmul.f32 %v4698_v14, %v1851_v29  ;;  %v2692_v11 = vadd.f32 %v2691_v47, %v2690_v37  ;;  %v2414_v60 = vadd.f32 %v2409_v9, %v4803_v6  ;;  %v1862_v38 = vpop.permute.xlu1 %1861  ;;  %v2686_v3 = vrot.slane %v2685_v16, 1  ;;  %v5374_v6 = vld [vmem:[#allocation55_spill] sm:$0xff]  ;;  %v5376_v9 = vld [vmem:[#allocation56_spill] sm:$0xff] }
 0x2de   :  { %v2718_v44 = vadd.f32 %v2717_v0, %v2716_v39  ;;  %v2725_v59 = vadd.f32 %v2724_v32, %v2723_v28  ;;  %v3083_v55 = vsel %vm3082_vm13, %v2673_v56, %v3081_v2  ;;  %v2680_v20 = vadd.f32 %v2679_v5, %v2678_v10  ;;  %v5377_v39 = vld [vmem:[#allocation20_spill] sm:$0xff]  ;;  %v5379_v0 = vld [vmem:[#allocation59_spill] sm:$0xff] }
 0x2df   :  { %v2695_v13 = vadd.f32 %v2629_v33, %v2628_v45  ;;  %v4869_v52 = vmul.f32 %v4698_v14, %v1847_v24  ;;  %v2415_v41 = vadd.f32 %v2410_v7, %v4795_v25  ;;  %v2731_v43 = vrot.slane %v2730_v31, 4  ;;  %v1869_v27 = vpop.permute.xlu0 %1868 }
 0x2e0   :  { %v4873_v17 = vmul.f32 %v4715_v63, %v1862_v38  ;;  %v2640_v53 = vmul.f32 %v5374_v6, %v2390_v15  ;;  %v2712_v50 = vrot.slane %v2711_v23, 2  ;;  %v4879_v10 = vmul.f32 %v4715_v63, %v1858_v8 }
 0x2e1   :  { %2852 = vbcast.lane.b32.xlu1 %v5350_v21, 280  ;;  %2848 = vbcast.lane.b32.xlu0 %v5350_v21, 272  ;;  %v2696_v54 = vrot.slane %v2695_v13, 4  ;;  %v2693_v14 = vrot.slane %v2692_v11, 1  ;;  %v2719_v34 = vrot.slane %v2718_v44, 2  ;;  %v2726_v19 = vrot.slane %v2725_v59, 2  ;;  %v1873_v25 = vpop.permute.xlu1 %1872 }
 0x2e2   :  { %v2433_v30 = vmul.f32 %v4811_v1, %v2414_v60  ;;  %v3085_v49 = vsel %vm3084_vm14, %v2680_v20, %v3083_v55  ;;  %v4884_v21 = vmul.f32 %v4718_v57, %v1873_v25  ;;  %v4887_v15 = vmul.f32 %v4718_v57, %v1869_v27  ;;  %v5382_v27 = vld [vmem:[#allocation43_spill] sm:$0xff] }
 0x2e3   :  { %v2697_v18 = vadd.f32 %v2696_v54, %v2695_v13  ;;  %v2687_v63 = vadd.f32 %v2686_v3, %v2685_v16  ;;  %v2707_v12 = vrot.slane %v4854_v48, 1  ;;  %v2732_v62 = vadd.f32 %v2731_v43, %v2730_v31  ;;  %v1880_v5 = vpop.permute.xlu0 %1879  ;;  %v5380_v31 = vld [vmem:[#allocation58_spill] sm:$0xff] }
 0x2e4   :  { %v2434_v2 = vmul.f32 %v4829_v42, %v2415_v41  ;;  %v2713_v1 = vadd.f32 %v2712_v50, %v2711_v23  ;;  %v2438_v37 = vadd.f32 %v2433_v30, %v4820_v40  ;;  %v2643_v35 = vmul.f32 %v5376_v9, %v2415_v41  ;;  %v5378_v40 = vld [vmem:[#allocation57_spill] sm:$0xff] }
 0x2e5   :  { %2916 = vbcast.lane.b32.xlu1 %v5375_v61, 280  ;;  %2912 = vbcast.lane.b32.xlu0 %v5375_v61, 272  ;;  %v2698_v56 = vrot.slane %v2697_v18, 2  ;;  %vm437_vm3 = vcmp.ne.f32.partialorder %v5377_v39, %v5377_v39  ;;  %v2694_v57 = vadd.f32 %v2693_v14, %v2692_v11  ;;  %v2720_v28 = vadd.f32 %v2719_v34, %v2718_v44  ;;  %v1884_v24 = vpop.permute.xlu1 %1883 }
 0x2e6   :  { %v2727_v29 = vadd.f32 %v2726_v19, %v2725_v59  ;;  %v2439_v47 = vadd.f32 %v2434_v2, %v4815_v58  ;;  %v4899_v33 = vmul.f32 %v4736_v51, %v1884_v24  ;;  %v4902_v42 = vmul.f32 %v4736_v51, %v1880_v5  ;;  %v5387_v24 = vld [vmem:[#allocation49_spill] sm:$0xff] }
 0x2e7   :  { %v2699_v7 = vadd.f32 %v2698_v56, %v2697_v18  ;;  %v2642_v16 = vmul.f32 %v5378_v40, %v2414_v60  ;;  %v2644_v32 = vmul.f32 %v5379_v0, %v2438_v37  ;;  %v2733_v23 = vrot.slane %v2732_v62, 2  ;;  %v1891_v55 = vpop.permute.xlu0 %1890  ;;  %v5389_v40 = vld [vmem:[#allocation35_spill] sm:$0xff] }
 0x2e8   :  { %v2645_v46 = vmul.f32 %v5380_v31, %v2439_v47  ;;  %v2737_v45 = vadd.f32 %v2641_v4, %v2640_v53  ;;  %v2714_v11 = vrot.slane %v2713_v1, 1  ;;  %v3087_v59 = vsel %vm3086_vm15, %v2687_v63, %v3085_v49 }
 0x2e9   :  { %v2700_v44 = vrot.slane %v2699_v7, 1  ;;  %v2744_v58 = vadd.f32 %v2643_v35, %v2642_v16  ;;  %v2721_v38 = vrot.slane %v2720_v28, 1  ;;  %v1895_v8 = vpop.permute.xlu1 %1894  ;;  %v2734_v20 = vadd.f32 %v2733_v23, %v2732_v62 }
 0x2ea   :  { %v2738_v13 = vrot.slane %v2737_v45, 4  ;;  %v2751_v51 = vadd.f32 %v2645_v46, %v2644_v32  ;;  %v4909_v60 = vmul.f32 %v4728_v22, %v1895_v8  ;;  %v4912_v41 = vmul.f32 %v4728_v22, %v1891_v55 }
 0x2eb   :  { %v2701_v3 = vadd.f32 %v2700_v44, %v2699_v7  ;;  %v2745_v43 = vrot.slane %v2744_v58, 4  ;;  %v2728_v4 = vrot.slane %v2727_v29, 1  ;;  %v3089_v6 = vsel %vm3088_vm1, %v2694_v57, %v3087_v59 }
 0x2ec   :  { %5381 = vst [vmem:[#allocation21_spill] sm:$0xff] %v4912_v41  ;;  %v2739_v53 = vadd.f32 %v2738_v13, %v2737_v45  ;;  %v2752_v50 = vrot.slane %v2751_v51, 4  ;;  %v2708_v54 = vadd.f32 %v2707_v12, %v4854_v48  ;;  %v2735_v34 = vrot.slane %v2734_v20, 1  ;;  %v5384_v48 = vld [vmem:[#allocation39_spill] sm:$0xff] }
 0x2ed   :  { %v3091_v14 = vsel %vm3090_vm2, %v2701_v3, %v3089_v6  ;;  %v2746_v19 = vadd.f32 %v2745_v43, %v2744_v58  ;;  %v2715_v25 = vadd.f32 %v2714_v11, %v2713_v1  ;;  %v2722_v62 = vadd.f32 %v2721_v38, %v2720_v28  ;;  %v5385_v1 = vld [vmem:[#allocation61_spill] sm:$0xff]  ;;  %v5386_v28 = vld [vmem:[#allocation18_spill] sm:$0xff]  ;;  %v5392_v6 = vld [vmem:[#allocation15_spill] sm:$0xff] }
 0x2ee   :  { %v3142_v30 = vadd.f32 %v5382_v27, %v3091_v14  ;;  %v2740_v63 = vrot.slane %v2739_v53, 2  ;;  %v2753_v22 = vadd.f32 %v2752_v50, %v2751_v51  ;;  %v2729_v37 = vadd.f32 %v2728_v4, %v2727_v29  ;;  %v4953_v4 = vld [vmem:[#allocation4 + $0x6] ss:$0 sm:$0xff]  ;;  %v5393_v14 = vld [vmem:[#allocation13_spill] sm:$0xff] }
 0x2ef   :  { %v1906_v49 = vpop.permute.xlu1 %1905  ;;  %v1902_v18 = vpop.permute.xlu0 %1901  ;;  %v2747_v56 = vrot.slane %v2746_v19, 2  ;;  %v4930_v57 = vsel %vm437_vm3, %v5377_v39, %v5385_v1  ;;  %v5388_v5 = vcombine.high %v5387_v24, %v5387_v24  ;;  %v3092_v29 = vsel %vm3078_vm11, %v2715_v25, %v2708_v54  ;;  %5391 = vst [vmem:[#allocation23_spill] sm:$0xff] %v4953_v4  ;;  %v5398_v24 = vld [vmem:[#allocation41_spill] sm:$0xff] }
 0x2f0   :  { %v4919_v61 = vmul.f32 %v4740_v36, %v1906_v49  ;;  %v4922_v2 = vmul.f32 %v4740_v36, %v1902_v18  ;;  %v3174_v12 = vmul.f32 %v5384_v48, %v3142_v30  ;;  %v2741_v9 = vadd.f32 %v2740_v63, %v2739_v53 }
 0x2f1   :  { %v2754_v35 = vrot.slane %v2753_v22, 2  ;;  %v1988_v47 = vrot.slane %v5388_v5, %v5386_v28  ;;  %v2736_v36 = vadd.f32 %v2735_v34, %v2734_v20  ;;  %v2748_v7 = vadd.f32 %v2747_v56, %v2746_v19  ;;  %v5394_v34 = vld [vmem:[#allocation53_spill] sm:$0xff] }
 0x2f2   :  { %5383 = vst [vmem:[#allocation22_spill] sm:$0xff] %v4922_v2  ;;  %v1353_v16 = vrot.slane %v4930_v57, %v5389_v40  ;;  %3496 = vmatprep.mubr.f32.mxu1 %v3174_v12  ;;  %v2742_v31 = vrot.slane %v2741_v9, 1  ;;  %v3093_v39 = vsel %vm3080_vm12, %v2722_v62, %v3092_v29  ;;  %v3139_v53 = vmul.f32 %v4953_v4, %v5392_v6  ;;  %v5401_v6 = vld [vmem:[#allocation16_spill] sm:$0xff] }
 0x2f3   :  { %v1917_v0 = vpop.permute.xlu1 %1916  ;;  %v1913_v32 = vpop.permute.xlu0 %1912  ;;  %v2755_v46 = vadd.f32 %v2754_v35, %v2753_v22  ;;  %v2749_v11 = vrot.slane %v2748_v7, 1  ;;  %v3094_v58 = vsel %vm3082_vm13, %v2729_v37, %v3093_v39  ;;  %v3171_v19 = vmul.f32 %v5394_v34, %v5393_v14  ;;  %v5395_v22 = vld [vmem:[#allocation62_spill] sm:$0xff] }
 0x2f4   :  { %v4940_v23 = vmul.f32 %v1988_v47, %v1917_v0  ;;  %v4942_v45 = vmul.f32 %v1988_v47, %v1913_v32  ;;  %v2743_v44 = vadd.f32 %v2742_v31, %v2741_v9  ;;  %v3095_v8 = vsel %vm3084_vm14, %v2736_v36, %v3094_v58  ;;  %v5396_v37 = vld [vmem:[#allocation42_spill] sm:$0xff] }
 0x2f5   :  { %v2756_v59 = vrot.slane %v2755_v46, 1  ;;  %v2750_v38 = vadd.f32 %v2749_v11, %v2748_v7  ;;  %v1369_v55 = vrot.slane %v1353_v16, %v5389_v40  ;;  %v1361_v50 = vcombine.high %v1353_v16, %v1353_v16  ;;  %v5397_v35 = vld [vmem:[#allocation14_spill] sm:$0xff] }
 0x2f6   :  { %5390 = vst [vmem:[#allocation51_spill] sm:$0xff] %v4942_v45  ;;  %v3096_v13 = vsel %vm3086_vm15, %v2743_v44, %v3095_v8  ;;  %v1752_v62 = vcombine.high %v5395_v22, %v5395_v22  ;;  %v1346_v56 = vcombine.high %v4930_v57, %v4930_v57  ;;  %v3326_v1 = vmul.f32 -1.442695, %v5397_v35 }
 0x2f7   :  { %v2757_v20 = vadd.f32 %v2756_v59, %v2755_v46  ;;  %v4948_v51 = vpop.permute.xlu1 %2860  ;;  %v4950_v3 = vpop.permute.xlu0 %2856  ;;  %v3097_v43 = vsel %vm3088_vm1, %v2750_v38, %v3096_v13  ;;  %v1447_v49 = vrot.slane %v1369_v55, %v5386_v28  ;;  %v1383_v63 = vrot.slane %v1361_v50, %v5389_v40 }
 0x2f8   :  { %v1391_v47 = vcombine.high %v1369_v55, %v1369_v55  ;;  %v1992_v7 = vrot.slane %v1752_v62, %v5386_v28  ;;  %v1360_v16 = vrot.slane %v1346_v56, %v5389_v40  ;;  %3618 = vpow2.f32 %v3326_v1  ;;  %v5404_v1 = vld [vmem:[#allocation19_spill] sm:$0xff] }
 0x2f9   :  { %v3098_v54 = vsel %vm3090_vm2, %v2757_v20, %v3097_v43  ;;  %v1525_v9 = vmul.f32 %v1447_v49, %v5396_v37  ;;  %v1524_v5 = vmul.f32 %v1447_v49, %v5398_v24  ;;  %v1451_v36 = vrot.slane %v1383_v63, %v5386_v28  ;;  %v5403_v49 = vld [vmem:[#allocation60_spill] sm:$0xff] }
 0x2fa   :  { %v3143_v25 = vadd.f32 %v3139_v53, %v3098_v54  ;;  %v1393_v11 = vcombine.high %v1383_v63, %v1383_v63  ;;  %v1455_v44 = vrot.slane %v1391_v47, %v5386_v28  ;;  %v1376_v38 = vrot.slane %v1360_v16, %v5389_v40 }
 0x2fb   :  { %v4960_v27 = vpop.permute.xlu1 %2868  ;;  %v4962_v30 = vpop.permute.xlu0 %2864  ;;  %v1558_v32 = vmul.f32 1.442695, %v1525_v9  ;;  %v1556_v39 = vmul.f32 1.442695, %v1524_v5  ;;  %v1527_v59 = vmul.f32 %v1451_v36, %v5396_v37  ;;  %v1526_v58 = vmul.f32 %v1451_v36, %v5398_v24 }
 0x2fc   :  { %v3175_v18 = vmul.f32 %v3171_v19, %v3143_v25  ;;  %v1362_v20 = vcombine.high %v1360_v16, %v1360_v16  ;;  %v1459_v13 = vrot.slane %v1393_v11, %v5386_v28  ;;  %v1529_v43 = vmul.f32 %v1455_v44, %v5396_v37 }
 0x2fd   :  { %3620 = vpow2.f32 %v1558_v32  ;;  %v4996_v53 = vmul.f32 %v4930_v57, %v5401_v6  ;;  %v1562_v50 = vmul.f32 1.442695, %v1527_v59  ;;  %v1528_v54 = vmul.f32 %v1455_v44, %v5398_v24 }
 0x2fe   :  { %3497 = vmatmul.mubr.f32.vlgmr.msra.gmra.mxu1 %v3175_v18  ;;  %3622 = vpow2.f32 %v1556_v39  ;;  %v1560_v14 = vmul.f32 1.442695, %v1526_v58  ;;  %v1463_v34 = vrot.slane %v1376_v38, %v5386_v28  ;;  %v1402_v18 = vrot.slane %v5403_v49, %v5389_v40 }
 0x2ff   :  { %v4970_v48 = vpop.permute.xlu1 %2876  ;;  %v4972_v12 = vpop.permute.xlu0 %2872  ;;  %v1390_v63 = vrot.slane %v1362_v20, %v5389_v40  ;;  %v1662_v22 = vrot.slane %v4996_v53, %v5389_v40  ;;  %3624 = vpow2.f32 %v1562_v50  ;;  %v1566_v57 = vmul.f32 1.442695, %v1529_v43 }
 0x300   :  { %v1531_v62 = vmul.f32 %v1459_v13, %v5396_v37  ;;  %3626 = vpow2.f32 %v1560_v14  ;;  %v1564_v56 = vmul.f32 1.442695, %v1528_v54  ;;  %v1530_v9 = vmul.f32 %v1459_v13, %v5398_v24 }
 0x301   :  { %v3327_v5 = vmul.f32 -1.442695, %v5404_v1  ;;  %v1533_v47 = vmul.f32 %v1463_v34, %v5396_v37  ;;  %v1410_v16 = vcombine.high %v1402_v18, %v1402_v18  ;;  %v1532_v39 = vmul.f32 %v1463_v34, %v5398_v24 }
 0x302   :  { %v1670_v11 = vcombine.high %v1662_v22, %v1662_v22  ;;  %3628 = vpow2.f32 %v1566_v57  ;;  %v1570_v44 = vmul.f32 1.442695, %v1531_v62  ;;  %v5020_v59 = vrot.slane %v1402_v18, %v5389_v40 }
 0x303   :  { %v1928_v29 = vpop.permute.xlu1 %1927  ;;  %v1924_v0 = vpop.permute.xlu0 %1923  ;;  %v1678_v58 = vrot.slane %v1662_v22, %v5389_v40  ;;  %3630 = vpow2.f32 %v1564_v56  ;;  %v1568_v20 = vmul.f32 1.442695, %v1530_v9  ;;  %v1394_v13 = vcombine.high %v1390_v63, %v1390_v63 }
 0x304   :  { %v4980_v31 = vmul.f32 %v1992_v7, %v1928_v29  ;;  %v4982_v46 = vmul.f32 %v1992_v7, %v1924_v0  ;;  %v1392_v29 = vcombine.high %v1376_v38, %v1376_v38  ;;  %v1467_v0 = vrot.slane %v1390_v63, %v5386_v28 }
 0x305   :  { %v3619_v32 = vpop.eup %3618  ;;  %3632 = vpow2.f32 %v3327_v5  ;;  %v1574_v50 = vmul.f32 1.442695, %v1533_v47  ;;  %v5032_v18 = vrot.slane %v1410_v16, %v5389_v40  ;;  %v1692_v62 = vrot.slane %v1670_v11, %v5389_v40 }
 0x306   :  { %5399 = vst [vmem:[#allocation24_spill] sm:$0xff] %v4980_v31  ;;  %5400 = vst [vmem:[#allocation25_spill] sm:$0xff] %v4982_v46  ;;  %v5027_v14 = vadd.f32 1.0, %v3619_v32  ;;  %v1471_v22 = vrot.slane %v1392_v29, %v5386_v28  ;;  %3634 = vpow2.f32 %v1570_v44  ;;  %v1572_v63 = vmul.f32 1.442695, %v1532_v39 }
 0x307   :  { %v4988_v8 = vpop.permute.xlu1 %2884  ;;  %v4990_v55 = vpop.permute.xlu0 %2880  ;;  %v1535_v56 = vmul.f32 %v1467_v0, %v5396_v37  ;;  %v1932_v5 = vrot.slane %v1678_v58, %v5386_v28  ;;  %3636 = vpow2.f32 %v1568_v20  ;;  %v1534_v47 = vmul.f32 %v1467_v0, %v5398_v24 }
 0x308   :  { %v1475_v16 = vrot.slane %v1394_v13, %v5386_v28  ;;  %v1700_v29 = vcombine.high %v1678_v58, %v1678_v58  ;;  %v1655_v11 = vcombine.high %v4996_v53, %v4996_v53  ;;  %3638 = vpow2.f32 %v1574_v50 }
 0x309   :  { %v1936_v9 = vrot.slane %v1692_v62, %v5386_v28  ;;  %3640 = vpow2.f32 %v1572_v63  ;;  %v1578_v35 = vmul.f32 1.442695, %v1535_v56  ;;  %v1537_v20 = vmul.f32 %v1471_v22, %v5396_v37 }
 0x30a   :  { %v3621_v54 = vpop.eup %3620  ;;  %v1576_v58 = vmul.f32 1.442695, %v1534_v47  ;;  %v1536_v4 = vmul.f32 %v1471_v22, %v5398_v24  ;;  %v1479_v50 = vrot.slane %v5020_v59, %v5386_v28  ;;  %v1702_v63 = vcombine.high %v1692_v62, %v1692_v62 }
 0x30b   :  { %v5000_v19 = vpop.permute.xlu1 %2892  ;;  %v5002_v25 = vpop.permute.xlu0 %2888  ;;  %v2087_v1 = vmul.f32 0.0, %v3621_v54  ;;  %v1669_v56 = vrot.slane %v1655_v11, %v5389_v40  ;;  %3642 = vpow2.f32 %v1578_v35  ;;  %v1582_v47 = vmul.f32 1.442695, %v1537_v20 }
 0x30c   :  { %5402 = vst [vmem:[#allocation26_spill] sm:$0xff] %v5002_v25  ;;  %v3623_v57 = vpop.eup %3622  ;;  %v1539_v22 = vmul.f32 %v1475_v16, %v5396_v37  ;;  %3644 = vpow2.f32 %v1576_v58  ;;  %v1580_v62 = vmul.f32 1.442695, %v1536_v4  ;;  %v1540_v11 = vmul.f32 %v1479_v50, %v5398_v24 }
 0x30d   :  { %v2086_v46 = vmul.f32 0.0, %v3623_v57  ;;  %v3625_v0 = vpop.eup %3624  ;;  %v1940_v57 = vrot.slane %v1700_v29, %v5386_v28  ;;  %v1541_v35 = vmul.f32 %v1479_v50, %v5396_v37  ;;  %3646 = vpow2.f32 %v1582_v47 }
 0x30e   :  { %v3627_v53 = vpop.eup %3626  ;;  %3648 = vpow2.f32 %v1580_v62  ;;  %v1588_v47 = vmul.f32 1.442695, %v1540_v11 }
 0x30f   :  { %v5013_v36 = vpop.permute.xlu1 %2900  ;;  %v5015_v7 = vpop.permute.xlu0 %2896 }
 0x310   :  { %5405 = vst [vmem:[#allocation27_spill] sm:$0xff] %v5013_v36  ;;  %5406 = vst [vmem:[#allocation33_spill] sm:$0xff] %v5015_v7 }
 0x313   :  { %v5023_v43 = vpop.permute.xlu1 %2908  ;;  %v5025_v38 = vpop.permute.xlu0 %2904 }
 0x314   :  { %5407 = vst [vmem:[#allocation28_spill] sm:$0xff] %v5023_v43  ;;  %5408 = vst [vmem:[#allocation29_spill] sm:$0xff] %v5025_v38 }
 0x317   :  { %v1763_v32 = vpop.permute.xlu1 %1762  ;;  %v1759_v34 = vpop.permute.xlu0 %1758 }
 0x318   :  { %v2010_v39 = vmul.f32 %v1932_v5, %v1763_v32  ;;  %v2009_v44 = vmul.f32 %v1932_v5, %v1759_v34 }
 0x31a   :  { %v5046_v38 = vadd.f32 %v2087_v1, %v2010_v39  ;;  %v5048_v13 = vadd.f32 %v2086_v46, %v2009_v44  ;;  %v1538_v39 = vmul.f32 %v1475_v16, %v5398_v24  ;;  %v3629_v44 = vpop.eup %3628 }
 0x31b   :  { %v1774_v54 = vpop.permute.xlu1 %1773  ;;  %v1770_v34 = vpop.permute.xlu0 %1769 }
 0x31c   :  { %v2012_v5 = vmul.f32 %v1936_v9, %v1774_v54  ;;  %v2011_v32 = vmul.f32 %v1936_v9, %v1770_v34  ;;  %v2110_v1 = vmul.f32 %v3625_v0, %v5046_v38  ;;  %v2109_v46 = vmul.f32 %v3627_v53, %v5048_v13  ;;  %v3631_v29 = vpop.eup %3630 }
 0x31d   :  { %v1483_v9 = vrot.slane %v5032_v18, %v5386_v28  ;;  %v5068_v53 = vrot.slane %v1669_v56, %v5389_v40  ;;  %v5070_v16 = vpop.eup %3632  ;;  %v1584_v7 = vmul.f32 1.442695, %v1538_v39 }
 0x31e   :  { %v5059_v6 = vadd.f32 %v2110_v1, %v2012_v5  ;;  %v5061_v45 = vadd.f32 %v2109_v46, %v2011_v32  ;;  %5409 = vst [vmem:[#allocation34_spill] sm:$0xff] %v5070_v16  ;;  %v1944_v5 = vrot.slane %v1702_v63, %v5386_v28  ;;  %v1671_v32 = vcombine.high %v1669_v56, %v1669_v56  ;;  %v3635_v46 = vpop.eup %3634 }
 0x31f   :  { %v1785_v20 = vpop.permute.xlu1 %1784  ;;  %v1781_v0 = vpop.permute.xlu0 %1780  ;;  %v1586_v1 = vmul.f32 1.442695, %v1539_v22  ;;  %v5411_v63 = vcombine.high %v5020_v59, %v5020_v59 }
 0x320   :  { %v2014_v54 = vmul.f32 %v1940_v57, %v1785_v20  ;;  %v2013_v34 = vmul.f32 %v1940_v57, %v1781_v0  ;;  %v2134_v58 = vmul.f32 %v3629_v44, %v5059_v6  ;;  %v2133_v4 = vmul.f32 %v3631_v29, %v5061_v45  ;;  %v3637_v2 = vpop.eup %3636 }
 0x321   :  { %v5410_v57 = vcombine.high %v5403_v49, %v5403_v49  ;;  %v1442_v29 = vcombine.high %v5032_v18, %v5032_v18  ;;  %v1487_v56 = vrot.slane %v5411_v63, %v5386_v28  ;;  %v3639_v0 = vpop.eup %3638  ;;  %v1543_v49 = vmul.f32 %v1483_v9, %v5396_v37 }
 0x322   :  { %v5075_v50 = vadd.f32 %v2134_v58, %v2014_v54  ;;  %v5077_v43 = vadd.f32 %v2133_v4, %v2013_v34  ;;  %v1590_v58 = vmul.f32 1.442695, %v1541_v35  ;;  %v1948_v18 = vrot.slane %v5068_v53, %v5386_v28  ;;  %v3641_v4 = vpop.eup %3640 }
 0x323   :  { %v1409_v44 = vrot.slane %v5410_v57, %v5389_v40  ;;  %v1796_v22 = vpop.permute.xlu1 %1795  ;;  %v1792_v20 = vpop.permute.xlu0 %1791  ;;  %3650 = vpow2.f32 %v1586_v1  ;;  %v1699_v59 = vrot.slane %v1671_v32, %v5389_v40  ;;  %v1491_v32 = vrot.slane %v1442_v29, %v5386_v28 }
 0x324   :  { %v2016_v62 = vmul.f32 %v1944_v5, %v1796_v22  ;;  %v2015_v39 = vmul.f32 %v1944_v5, %v1792_v20  ;;  %v2158_v54 = vmul.f32 %v3635_v46, %v5075_v50  ;;  %v2157_v34 = vmul.f32 %v3637_v2, %v5077_v43 }
 0x325   :  { %3652 = vpow2.f32 %v1584_v7  ;;  %v1411_v5 = vcombine.high %v1409_v44, %v1409_v44  ;;  %v1425_v46 = vrot.slane %v1409_v44, %v5389_v40  ;;  %v1542_v2 = vmul.f32 %v1483_v9, %v5398_v24 }
 0x326   :  { %v5095_v11 = vadd.f32 %v2158_v54, %v2016_v62  ;;  %v5097_v57 = vadd.f32 %v2157_v34, %v2015_v39  ;;  %3654 = vpow2.f32 %v1588_v47  ;;  %v1544_v62 = vmul.f32 %v1487_v56, %v5398_v24  ;;  %v3643_v39 = vpop.eup %3642 }
 0x327   :  { %v1807_v63 = vpop.permute.xlu1 %1806  ;;  %v1803_v35 = vpop.permute.xlu0 %1802  ;;  %3656 = vpow2.f32 %v1590_v58  ;;  %v1594_v7 = vmul.f32 1.442695, %v1543_v49  ;;  %v1952_v44 = vrot.slane %v1699_v59, %v5386_v28  ;;  %v1701_v9 = vcombine.high %v5068_v53, %v5068_v53 }
 0x328   :  { %v2018_v22 = vmul.f32 %v1948_v18, %v1807_v63  ;;  %v2017_v20 = vmul.f32 %v1948_v18, %v1803_v35  ;;  %v2182_v1 = vmul.f32 %v3639_v0, %v5095_v11  ;;  %v2181_v16 = vmul.f32 %v3641_v4, %v5097_v57  ;;  %v3645_v34 = vpop.eup %3644 }
 0x329   :  { %v5113_v0 = vrot.slane %v1411_v5, %v5389_v40  ;;  %v1441_v18 = vcombine.high %v1425_v46, %v1425_v46  ;;  %v1545_v29 = vmul.f32 %v1487_v56, %v5396_v37  ;;  %v1592_v4 = vmul.f32 1.442695, %v1542_v2  ;;  %v3647_v40 = vpop.eup %3646 }
 0x32a   :  { %v5108_v47 = vadd.f32 %v2182_v1, %v2018_v22  ;;  %v5110_v54 = vadd.f32 %v2181_v16, %v2017_v20  ;;  %v1495_v22 = vrot.slane %v1425_v46, %v5386_v28  ;;  %v1546_v16 = vmul.f32 %v1491_v32, %v5398_v24 }
 0x32b   :  { %v1818_v58 = vpop.permute.xlu1 %1817  ;;  %v1814_v49 = vpop.permute.xlu0 %1813  ;;  %3658 = vpow2.f32 %v1594_v7  ;;  %v1596_v20 = vmul.f32 1.442695, %v1544_v62  ;;  %v1956_v5 = vrot.slane %v1701_v9, %v5386_v28  ;;  %v1703_v1 = vcombine.high %v1699_v59, %v1699_v59 }
 0x32c   :  { %v2020_v63 = vmul.f32 %v1952_v44, %v1818_v58  ;;  %v2019_v35 = vmul.f32 %v1952_v44, %v1814_v49  ;;  %v2206_v36 = vmul.f32 %v3643_v39, %v5108_v47  ;;  %v2205_v53 = vmul.f32 %v3645_v34, %v5110_v54  ;;  %v3649_v58 = vpop.eup %3648 }
 0x32d   :  { %v1499_v39 = vrot.slane %v5113_v0, %v5386_v28  ;;  %v1547_v44 = vmul.f32 %v1491_v32, %v5396_v37  ;;  %3660 = vpow2.f32 %v1592_v4  ;;  %v1598_v46 = vmul.f32 1.442695, %v1545_v29 }
 0x32e   :  { %v5121_v56 = vadd.f32 %v2206_v36, %v2020_v63  ;;  %v5123_v2 = vadd.f32 %v2205_v53, %v2019_v35  ;;  %v1503_v36 = vrot.slane %v1441_v18, %v5386_v28  ;;  %v1548_v9 = vmul.f32 %v1495_v22, %v5398_v24 }
 0x32f   :  { %v1829_v34 = vpop.permute.xlu1 %1828  ;;  %v1825_v49 = vpop.permute.xlu0 %1824  ;;  %v1549_v63 = vmul.f32 %v1495_v22, %v5396_v37  ;;  %v1600_v35 = vmul.f32 1.442695, %v1546_v16  ;;  %3662 = vpow2.f32 %v1596_v20  ;;  %v1960_v32 = vrot.slane %v1703_v1, %v5386_v28 }
 0x330   :  { %v2022_v7 = vmul.f32 %v1956_v5, %v1829_v34  ;;  %v2021_v62 = vmul.f32 %v1956_v5, %v1825_v49  ;;  %v2230_v31 = vmul.f32 %v3647_v40, %v5121_v56  ;;  %v2229_v59 = vmul.f32 %v3649_v58, %v5123_v2  ;;  %v3651_v53 = vpop.eup %3650 }
 0x331   :  { %v1550_v40 = vmul.f32 %v1499_v39, %v5398_v24  ;;  %3664 = vpow2.f32 %v1598_v46  ;;  %v1602_v58 = vmul.f32 1.442695, %v1547_v44  ;;  %v1552_v20 = vmul.f32 %v1503_v36, %v5398_v24 }
 0x332   :  { %v5134_v29 = vadd.f32 %v2230_v31, %v2022_v7  ;;  %v5136_v4 = vadd.f32 %v2229_v59, %v2021_v62  ;;  %v3653_v5 = vpop.eup %3652  ;;  %3666 = vrcp.f32 %v5027_v14  ;;  %v1551_v31 = vmul.f32 %v1499_v39, %v5396_v37 }
 0x333   :  { %v1840_v34 = vpop.permute.xlu1 %1839  ;;  %v1836_v18 = vpop.permute.xlu0 %1835  ;;  %v1604_v1 = vmul.f32 1.442695, %v1548_v9  ;;  %3668 = vpow2.f32 %v1600_v35  ;;  %v1606_v46 = vmul.f32 1.442695, %v1549_v63  ;;  %v1443_v59 = vcombine.high %v5113_v0, %v5113_v0 }
 0x334   :  { %v3655_v49 = vpop.eup %3654  ;;  %v2024_v25 = vmul.f32 %v1960_v32, %v1840_v34  ;;  %v2023_v41 = vmul.f32 %v1960_v32, %v1836_v18  ;;  %v2254_v22 = vmul.f32 %v3651_v53, %v5134_v29  ;;  %v2253_v16 = vmul.f32 %v3653_v5, %v5136_v4 }
 0x335   :  { %v3657_v7 = vpop.eup %3656  ;;  %v1553_v53 = vmul.f32 %v1503_v36, %v5396_v37  ;;  %3670 = vpow2.f32 %v1602_v58  ;;  %v1608_v32 = vmul.f32 1.442695, %v1550_v40  ;;  %v1612_v63 = vmul.f32 1.442695, %v1552_v20 }
 0x336   :  { %v5144_v44 = vadd.f32 %v2254_v22, %v2024_v25  ;;  %v5146_v62 = vadd.f32 %v2253_v16, %v2023_v41  ;;  %3672 = vpow2.f32 %v1604_v1  ;;  %v1610_v41 = vmul.f32 1.442695, %v1551_v31 }
 0x337   :  { %v2797_v14 = vpop.permute.xlu1 %2796  ;;  %v2793_v5 = vpop.permute.xlu0 %2792  ;;  %3674 = vpow2.f32 %v1606_v46  ;;  %v1507_v58 = vrot.slane %v1443_v59, %v5386_v28 }
 0x338   :  { %v2919_v39 = vmul.f32 %v2797_v14, %v5046_v38  ;;  %v2918_v9 = vmul.f32 %v2793_v5, %v5048_v13  ;;  %v2278_v35 = vmul.f32 %v3657_v7, %v5144_v44  ;;  %v2277_v25 = vmul.f32 %v3655_v49, %v5146_v62  ;;  %v3659_v34 = vpop.eup %3658 }
 0x339   :  { %3676 = vpow2.f32 %v1608_v32  ;;  %v1614_v38 = vmul.f32 1.442695, %v1553_v53 }
 0x33a   :  { %v2950_v0 = vadd.f32 %v2919_v39, %v2918_v9  ;;  %v2283_v36 = vadd.f32 %v2278_v35, %v4864_v26  ;;  %v2282_v40 = vadd.f32 %v2277_v25, %v4869_v52  ;;  %v3661_v22 = vpop.eup %3660  ;;  %3678 = vpow2.f32 %v1610_v41 }
 0x33b   :  { %v2805_v18 = vpop.permute.xlu1 %2804  ;;  %v2801_v13 = vpop.permute.xlu0 %2800  ;;  %3680 = vpow2.f32 %v1612_v63 }
 0x33c   :  { %v2951_v16 = vrot.slane %v2950_v0, 4  ;;  %v2921_v49 = vmul.f32 %v2805_v18, %v5059_v6  ;;  %v2920_v31 = vmul.f32 %v2801_v13, %v5061_v45  ;;  %v2302_v20 = vmul.f32 %v3659_v34, %v2283_v36  ;;  %v3663_v59 = vpop.eup %3662 }
 0x33d   :  { %v2935_v1 = vmul.f32 %v4948_v51, %v2283_v36  ;;  %v2301_v7 = vmul.f32 %v3661_v22, %v2282_v40  ;;  %v2934_v26 = vmul.f32 %v4950_v3, %v2282_v40  ;;  %3682 = vpow2.f32 %v1614_v38 }
 0x33e   :  { %v2952_v52 = vadd.f32 %v2951_v16, %v2950_v0  ;;  %v2957_v28 = vadd.f32 %v2921_v49, %v2920_v31  ;;  %v2307_v46 = vadd.f32 %v2302_v20, %v4873_v17  ;;  %v3665_v45 = vpop.eup %3664  ;;  %v1555_v3 = vmul.f32 %v1507_v58, %v5396_v37 }
 0x33f   :  { %v2813_v53 = vpop.permute.xlu1 %2812  ;;  %v2809_v32 = vpop.permute.xlu0 %2808  ;;  %v2306_v6 = vadd.f32 %v2301_v7, %v4879_v10  ;;  %v3006_v14 = vadd.f32 %v2935_v1, %v2934_v26  ;;  %v1554_v0 = vmul.f32 %v1507_v58, %v5398_v24 }
 0x340   :  { %v2958_v5 = vrot.slane %v2957_v28, 4  ;;  %v2923_v39 = vmul.f32 %v2813_v53, %v5075_v50  ;;  %v2922_v51 = vmul.f32 %v2809_v32, %v5077_v43  ;;  %v2326_v9 = vmul.f32 %v3665_v45, %v2307_v46  ;;  %v5169_v41 = vpop.eup %3666 }
 0x341   :  { %v2937_v35 = vmul.f32 %v4960_v27, %v2307_v46  ;;  %v2325_v25 = vmul.f32 %v3663_v59, %v2306_v6  ;;  %v2936_v17 = vmul.f32 %v4962_v30, %v2306_v6  ;;  %v2953_v63 = vrot.slane %v2952_v52, 2  ;;  %v3669_v36 = vpop.eup %3668 }
 0x342   :  { %v2959_v34 = vadd.f32 %v2958_v5, %v2957_v28  ;;  %v2964_v10 = vadd.f32 %v2923_v39, %v2922_v51  ;;  %v2331_v43 = vadd.f32 %v2326_v9, %v4884_v21  ;;  %v3007_v38 = vrot.slane %v3006_v14, 4  ;;  %v3671_v27 = vpop.eup %3670 }
 0x343   :  { %v2821_v40 = vpop.permute.xlu1 %2820  ;;  %v2817_v50 = vpop.permute.xlu0 %2816  ;;  %v2330_v37 = vadd.f32 %v2325_v25, %v4887_v15  ;;  %v3013_v18 = vadd.f32 %v2937_v35, %v2936_v17  ;;  %v1618_v16 = vmul.f32 1.442695, %v1555_v3  ;;  %v2954_v21 = vadd.f32 %v2953_v63, %v2952_v52 }
 0x344   :  { %v2960_v13 = vrot.slane %v2959_v34, 2  ;;  %v2965_v22 = vrot.slane %v2964_v10, 4  ;;  %v2925_v30 = vmul.f32 %v2821_v40, %v5095_v11  ;;  %v2924_v49 = vmul.f32 %v2817_v50, %v5097_v57  ;;  %v5179_v20 = vpop.eup %3672 }
 0x345   :  { %v2350_v31 = vmul.f32 %v3671_v27, %v2331_v43  ;;  %v2939_v24 = vmul.f32 %v4970_v48, %v2331_v43  ;;  %v5177_v58 = vmul.f32 %v3669_v36, %v2330_v37  ;;  %v2938_v7 = vmul.f32 %v4972_v12, %v2330_v37  ;;  %v3675_v26 = vpop.eup %3674 }
 0x346   :  { %v2961_v1 = vadd.f32 %v2960_v13, %v2959_v34  ;;  %v2966_v15 = vadd.f32 %v2965_v22, %v2964_v10  ;;  %v2971_v28 = vadd.f32 %v2925_v30, %v2924_v49  ;;  %v3008_v11 = vadd.f32 %v3007_v38, %v3006_v14  ;;  %v5185_v32 = vpop.eup %3676 }
 0x347   :  { %v2829_v46 = vpop.permute.xlu1 %2828  ;;  %v2825_v59 = vpop.permute.xlu0 %2824  ;;  %v3014_v53 = vrot.slane %v3013_v18, 4  ;;  %v5183_v57 = vadd.f32 %v2350_v31, %v4899_v33  ;;  %v3020_v51 = vadd.f32 %v2939_v24, %v2938_v7  ;;  %v2955_v9 = vrot.slane %v2954_v21, 1 }
 0x348   :  { %v2962_v48 = vrot.slane %v2961_v1, 1  ;;  %v2967_v6 = vrot.slane %v2966_v15, 2  ;;  %v2927_v45 = vmul.f32 %v2829_v46, %v5108_v47  ;;  %v2926_v52 = vmul.f32 %v2825_v59, %v5110_v54  ;;  %v3679_v3 = vpop.eup %3678 }
 0x349   :  { %v2972_v5 = vrot.slane %v2971_v28, 4  ;;  %v3009_v39 = vrot.slane %v3008_v11, 2  ;;  %v3015_v12 = vadd.f32 %v3014_v53, %v3013_v18  ;;  %v2374_v25 = vmul.f32 %v3675_v26, %v5183_v57  ;;  %v5190_v33 = vpop.eup %3680 }
 0x34a   :  { %v2968_v35 = vadd.f32 %v2967_v6, %v2966_v15  ;;  %v2978_v14 = vadd.f32 %v2927_v45, %v2926_v52  ;;  %v3021_v47 = vrot.slane %v3020_v51, 4  ;;  %v3683_v40 = vpop.eup %3682  ;;  %3684 = vpow2.f32 %v1618_v16 }
 0x34b   :  { %v2973_v17 = vadd.f32 %v2972_v5, %v2971_v28  ;;  %v2837_v63 = vpop.permute.xlu1 %2836  ;;  %v2833_v34 = vpop.permute.xlu0 %2832  ;;  %v3010_v10 = vadd.f32 %v3009_v39, %v3008_v11  ;;  %v3016_v36 = vrot.slane %v3015_v12, 2  ;;  %v1616_v43 = vmul.f32 1.442695, %v1554_v0 }
 0x34c   :  { %v2979_v54 = vrot.slane %v2978_v14, 4  ;;  %v2929_v50 = vmul.f32 %v2837_v63, %v5121_v56  ;;  %v2963_v37 = vadd.f32 %v2962_v48, %v2961_v1  ;;  %v2928_v18 = vmul.f32 %v2833_v34, %v5123_v2 }
 0x34d   :  { %v2974_v38 = vrot.slane %v2973_v17, 2  ;;  %v3017_v27 = vadd.f32 %v3016_v36, %v3015_v12  ;;  %v2969_v13 = vrot.slane %v2968_v35, 1  ;;  %v3022_v30 = vadd.f32 %v3021_v47, %v3020_v51 }
 0x34e   :  { %v2980_v22 = vadd.f32 %v2979_v54, %v2978_v14  ;;  %v2379_v49 = vadd.f32 %v2374_v25, %v4909_v60  ;;  %v2956_v31 = vadd.f32 %v2955_v9, %v2954_v21  ;;  %v2985_v15 = vadd.f32 %v2929_v50, %v2928_v18 }
 0x34f   :  { %v2975_v24 = vadd.f32 %v2974_v38, %v2973_v17  ;;  %v2845_v7 = vpop.permute.xlu1 %2844  ;;  %v2841_v26 = vpop.permute.xlu0 %2840  ;;  %v3011_v28 = vrot.slane %v3010_v10, 1  ;;  %v3018_v16 = vrot.slane %v3017_v27, 1  ;;  %v3023_v59 = vrot.slane %v3022_v30, 2 }
 0x350   :  { %v2981_v46 = vrot.slane %v2980_v22, 2  ;;  %v2931_v56 = vmul.f32 %v2845_v7, %v5134_v29  ;;  %v2930_v0 = vmul.f32 %v2841_v26, %v5136_v4  ;;  %v3117_v2 = vsel %vm3078_vm11, %v2963_v37, %v2956_v31  ;;  %v5414_v7 = vld [vmem:[#allocation24_spill] sm:$0xff] }
 0x351   :  { %v2986_v1 = vrot.slane %v2985_v15, 4  ;;  %3686 = vpow2.f32 %v1616_v43  ;;  %v2970_v11 = vadd.f32 %v2969_v13, %v2968_v35  ;;  %v2976_v53 = vrot.slane %v2975_v24, 1 }
 0x352   :  { %v2992_v60 = vadd.f32 %v2931_v56, %v2930_v0  ;;  %v2398_v21 = vmul.f32 %v3679_v3, %v2379_v49  ;;  %v2982_v48 = vadd.f32 %v2981_v46, %v2980_v22  ;;  %v3012_v52 = vadd.f32 %v3011_v28, %v3010_v10  ;;  %v5415_v0 = vld [vmem:[#allocation27_spill] sm:$0xff] }
 0x353   :  { %v2987_v6 = vadd.f32 %v2986_v1, %v2985_v15  ;;  %v2853_v45 = vpop.permute.xlu1 %2852  ;;  %v3024_v5 = vadd.f32 %v3023_v59, %v3022_v30  ;;  %v2849_v39 = vpop.permute.xlu0 %2848  ;;  %v3019_v4 = vadd.f32 %v3018_v16, %v3017_v27  ;;  %v2941_v35 = vmul.f32 %v4988_v8, %v5183_v57 }
 0x354   :  { %v2993_v12 = vrot.slane %v2992_v60, 4  ;;  %v2933_v29 = vmul.f32 %v2853_v45, %v5144_v44  ;;  %v2932_v51 = vmul.f32 %v2849_v39, %v5146_v62  ;;  %v2403_v25 = vadd.f32 %v2398_v21, %v4919_v61 }
 0x355   :  { %v2988_v9 = vrot.slane %v2987_v6, 2  ;;  %v3025_v14 = vrot.slane %v3024_v5, 1  ;;  %v2977_v3 = vadd.f32 %v2976_v53, %v2975_v24  ;;  %v2354_v34 = vadd.f32 %v5177_v58, %v4902_v42  ;;  %v5412_v58 = vld [vmem:[#allocation21_spill] sm:$0xff] }
 0x356   :  { %v2994_v17 = vadd.f32 %v2993_v12, %v2992_v60  ;;  %v2999_v63 = vadd.f32 %v2933_v29, %v2932_v51  ;;  %v2983_v10 = vrot.slane %v2982_v48, 1  ;;  %v2422_v47 = vmul.f32 %v3683_v40, %v2403_v25 }
 0x357   :  { %v2989_v36 = vadd.f32 %v2988_v9, %v2987_v6  ;;  %v3026_v44 = vadd.f32 %v3025_v14, %v3024_v5  ;;  %v2943_v62 = vmul.f32 %v5000_v19, %v2379_v49  ;;  %v2373_v43 = vmul.f32 %v5179_v20, %v2354_v34  ;;  %v3685_v61 = vpop.eup %3684 }
 0x358   :  { %v2995_v54 = vrot.slane %v2994_v17, 2  ;;  %v3000_v50 = vrot.slane %v2999_v63, 4  ;;  %v2427_v8 = vadd.f32 %v2422_v47, %v4940_v23  ;;  %v2940_v57 = vmul.f32 %v4990_v55, %v2354_v34  ;;  %v5413_v23 = vld [vmem:[#allocation26_spill] sm:$0xff]  ;;  %v5423_v47 = vld [vmem:[#allocation29_spill] sm:$0xff] }
 0x359   :  { %v2990_v37 = vrot.slane %v2989_v36, 1  ;;  %v3124_v38 = vsel %vm3078_vm11, %v3019_v4, %v3012_v52  ;;  %v2378_v27 = vadd.f32 %v2373_v43, %v5412_v58  ;;  %v3118_v13 = vsel %vm3080_vm12, %v2970_v11, %v3117_v2  ;;  %v5416_v2 = vld [vmem:[#allocation22_spill] sm:$0xff]  ;;  %v5418_v52 = vld [vmem:[#allocation28_spill] sm:$0xff]  ;;  %v5419_v4 = vld [vmem:[#allocation51_spill] sm:$0xff] }
 0x35a   :  { %v2996_v18 = vadd.f32 %v2995_v54, %v2994_v17  ;;  %v3001_v42 = vadd.f32 %v3000_v50, %v2999_v63  ;;  %v3125_v40 = vsel %vm3080_vm12, %v3026_v44, %v3124_v38  ;;  %v2984_v22 = vadd.f32 %v2983_v10, %v2982_v48  ;;  %v5417_v48 = vld [vmem:[#allocation33_spill] sm:$0xff]  ;;  %v5421_v63 = vld [vmem:[#allocation16_spill] sm:$0xff] }
 0x35b   :  { %v2446_v19 = vmul.f32 %v3685_v61, %v2427_v8  ;;  %v3027_v30 = vadd.f32 %v2941_v35, %v2940_v57  ;;  %v2397_v31 = vmul.f32 %v5185_v32, %v2378_v27  ;;  %v2942_v24 = vmul.f32 %v5413_v23, %v2378_v27  ;;  %v2913_v61 = vpop.permute.xlu0 %2912 }
 0x35c   :  { %v2997_v20 = vrot.slane %v2996_v18, 1  ;;  %v3002_v49 = vrot.slane %v3001_v42, 2  ;;  %v3119_v55 = vsel %vm3082_vm13, %v2977_v3, %v3118_v13  ;;  %v2991_v15 = vadd.f32 %v2990_v37, %v2989_v36  ;;  %v2917_v3 = vpop.permute.xlu1 %2916 }
 0x35d   :  { %v2451_v26 = vadd.f32 %v2446_v19, %v5414_v7  ;;  %v3028_v28 = vrot.slane %v3027_v30, 4  ;;  %v2945_v16 = vmul.f32 %v5415_v0, %v2403_v25  ;;  %v2402_v1 = vadd.f32 %v2397_v31, %v5416_v2  ;;  %v5420_v25 = vld [vmem:[#allocation34_spill] sm:$0xff] }
 0x35e   :  { %v3687_v46 = vpop.eup %3686  ;;  %v3003_v56 = vadd.f32 %v3002_v49, %v3001_v42  ;;  %v3034_v59 = vadd.f32 %v2943_v62, %v2942_v24  ;;  %v3120_v11 = vsel %vm3084_vm14, %v2984_v22, %v3119_v55  ;;  %v2998_v53 = vadd.f32 %v2997_v20, %v2996_v18  ;;  %v5424_v62 = vld [vmem:[#allocation14_spill] sm:$0xff]  ;;  %v5425_v18 = vld [vmem:[#allocation25_spill] sm:$0xff] }
 0x35f   :  { %v3029_v60 = vadd.f32 %v3028_v28, %v3027_v30  ;;  %v2421_v21 = vmul.f32 %v5190_v33, %v2402_v1  ;;  %v2944_v6 = vmul.f32 %v5417_v48, %v2402_v1  ;;  %v2947_v5 = vmul.f32 %v5418_v52, %v2427_v8  ;;  %v5422_v33 = vld [vmem:[#allocation23_spill] sm:$0xff]  ;;  %v5426_v48 = vld [vmem:[#allocation17_spill] sm:$0xff] }
 0x360   :  { %v3004_v32 = vrot.slane %v3003_v56, 1  ;;  %v3035_v45 = vrot.slane %v3034_v59, 4  ;;  %v3121_v39 = vsel %vm3086_vm15, %v2991_v15, %v3120_v11  ;;  %v3161_v35 = vadd.f32 1.0, %v5420_v25  ;;  %v5427_v52 = vld [vmem:[#allocation19_spill] sm:$0xff] }
 0x361   :  { %v3030_v12 = vrot.slane %v3029_v60, 2  ;;  %v2426_v51 = vadd.f32 %v2421_v21, %v5419_v4  ;;  %v3041_v14 = vadd.f32 %v2945_v16, %v2944_v6  ;;  %v3122_v17 = vsel %vm3088_vm1, %v2998_v53, %v3121_v39 }
 0x362   :  { %v3005_v29 = vadd.f32 %v3004_v32, %v3003_v56  ;;  %v3036_v9 = vadd.f32 %v3035_v45, %v3034_v59  ;;  %v3140_v34 = vmul.f32 %v5422_v33, %v5421_v63  ;;  %v3172_v43 = vmul.f32 %v5169_v41, %v5424_v62 }
 0x363   :  { %v3031_v10 = vadd.f32 %v3030_v12, %v3029_v60  ;;  %v2445_v36 = vmul.f32 %v3687_v46, %v2426_v51  ;;  %v2946_v44 = vmul.f32 %v5423_v47, %v2426_v51  ;;  %v3042_v54 = vrot.slane %v3041_v14, 4 }
 0x364   :  { %v3123_v50 = vsel %vm3090_vm2, %v3005_v29, %v3122_v17  ;;  %v3037_v57 = vrot.slane %v3036_v9, 2  ;;  %v2949_v38 = vmul.f32 %v2917_v3, %v2451_v26  ;;  %3688 = vrcp.f32 %v3161_v35 }
 0x365   :  { %v3144_v37 = vadd.f32 %v3140_v34, %v3123_v50  ;;  %v3032_v8 = vrot.slane %v3031_v10, 1  ;;  %v2450_v42 = vadd.f32 %v2445_v36, %v5425_v18  ;;  %v3043_v58 = vadd.f32 %v3042_v54, %v3041_v14 }
 0x366   :  { %v3048_v27 = vadd.f32 %v2947_v5, %v2946_v44  ;;  %v3038_v19 = vadd.f32 %v3037_v57, %v3036_v9  ;;  %v3141_v6 = vmul.f32 %v5422_v33, %v5426_v48 }
 0x367   :  { %v3176_v13 = vmul.f32 %v3172_v43, %v3144_v37  ;;  %v3033_v22 = vadd.f32 %v3032_v8, %v3031_v10  ;;  %v3044_v30 = vrot.slane %v3043_v58, 2  ;;  %v2948_v49 = vmul.f32 %v2913_v61, %v2450_v42 }
 0x368   :  { %v3049_v20 = vrot.slane %v3048_v27, 4  ;;  %v3039_v31 = vrot.slane %v3038_v19, 1 }
 0x369   :  { %3499 = vmatprep.mubr.f32.mxu1 %v3176_v13  ;;  %v3126_v41 = vsel %vm3082_vm13, %v3033_v22, %v3125_v40  ;;  %v3055_v24 = vadd.f32 %v2949_v38, %v2948_v49  ;;  %v3045_v55 = vadd.f32 %v3044_v30, %v3043_v58 }
 0x36a   :  { %v3050_v23 = vadd.f32 %v3049_v20, %v3048_v27  ;;  %v3040_v15 = vadd.f32 %v3039_v31, %v3038_v19 }
 0x36b   :  { %v3056_v26 = vrot.slane %v3055_v24, 4  ;;  %v3046_v28 = vrot.slane %v3045_v55, 1 }
 0x36c   :  { %v3051_v7 = vrot.slane %v3050_v23, 2  ;;  %v3127_v46 = vsel %vm3084_vm14, %v3040_v15, %v3126_v41 }
 0x36d   :  { %v3057_v0 = vadd.f32 %v3056_v26, %v3055_v24  ;;  %v3047_v16 = vadd.f32 %v3046_v28, %v3045_v55 }
 0x36e   :  { %v3052_v56 = vadd.f32 %v3051_v7, %v3050_v23 }
 0x36f   :  { %v3058_v2 = vrot.slane %v3057_v0, 2  ;;  %v3128_v59 = vsel %vm3086_vm15, %v3047_v16, %v3127_v46 }
 0x370   :  { %v3053_v1 = vrot.slane %v3052_v56, 1 }
 0x371   :  { %v3059_v11 = vadd.f32 %v3058_v2, %v3057_v0  ;;  %v3689_v32 = vpop.eup %3688 }
 0x372   :  { %v3054_v53 = vadd.f32 %v3053_v1, %v3052_v56  ;;  %v3173_v5 = vmul.f32 %v3689_v32, %v5427_v52 }
 0x373   :  { %v3060_v60 = vrot.slane %v3059_v11, 1 }
 0x374   :  { %v3129_v40 = vsel %vm3088_vm1, %v3054_v53, %v3128_v59 }
 0x375   :  { %v3061_v21 = vadd.f32 %v3060_v60, %v3059_v11 }
 0x377   :  { %v3130_v45 = vsel %vm3090_vm2, %v3061_v21, %v3129_v40 }
 0x378   :  { %v3145_v39 = vadd.f32 %v3141_v6, %v3130_v45 }
 0x37a   :  { %v3177_v12 = vmul.f32 %v3173_v5, %v3145_v39 }
 0x37c   :  { %3500 = vmatmul.mubr.f32.gmra.mxu1 %v3177_v12 }
 0x3be   :  { %v3498_v29 = vpop.f32.mrf.mxu1 }
 0x3c0   :  { %v3260_v4 = vpop.f32.mrf.mxu1 }
 0x43c   :  { %v3501_v51 = vpop.f32.mrf.mxu1 }
 0x43d   :  { %3283 = vrot.lane.b32.xlu1 %v3501_v51, %s3763_s6 }
 0x43e   :  { %v3270_v9 = vpop.f32.mrf.mxu1 }
 0x43f   :  { %3281 = vrot.lane.b32.xlu0 %v3270_v9, %s3763_s6 }
 0x4af   :  { %v3284_v14 = vpop.permute.xlu1 %3283 }
 0x4b0   :  { %v3288_v25 = vsel %vm73_vm0, %v3498_v29, %v3284_v14 }
 0x4b1   :  { %3290 = vst [vmem:[#allocation9 + $0x8] sm:$0xff] %v3288_v25  ;;  %v3282_v35 = vpop.permute.xlu0 %3281 }
 0x4b2   :  { %v3287_v3 = vsel %vm73_vm0, %v3260_v4, %v3282_v35 }
 0x4b3   :  { %3289 = vst [vmem:[#allocation9] sm:$0xff] %v3287_v3 }
 0x4b4   :  { %3742 = shalt.err (!%p3739_p0)
}
 0x4b5   :  { %3302 = dma.vmem_to_hbm [thread:$0]  %s3297_s21, 256, %s5257_s7, [#allocation6], %s3759_s9, %s3759_s9, %s3760_s10  }
 0x4b6   :  { %3755 = dma.done.wait [#allocation6], 256  }
 0x4b7   :  { %3756 = vsyncadd [#allocation6], 4294967040 }
 0x4b8   :  { %3306 = vsyncpa [#allocation5], 1 }
 0x4b9   :  { %3307 = vsyncpa [#allocation8], 1 }
 0x4ba   :  { %3308 = vsyncpa [#allocation6], 1 }

</bundles_post_ra>
